<compile_context>
chip_gen: v5e
topology: v5e:2x2
jax: 0.10.0
libtpu: 0.0.40
codegen_flags: <defaults>
</compile_context>

<pallas_src>
import jax
import jax.numpy as jnp
from jax.experimental import pallas as pl
from jax.experimental.pallas import tpu as pltpu

LEAKY_SLOPE = 0.1


def _leaky(x):
    return jnp.where(x > 0, x, LEAKY_SLOPE * x)


# --------------------------------------------------------------------------
# Fused DABlock kernel: one grid step = one image, everything VMEM-resident.
# --------------------------------------------------------------------------
def _dablock_kernel(feat_ref, deg_ref,
                    d1w1_ref, d1w2_ref, d2w1_ref, d2w2_ref,
                    c1w_ref, c1b_ref, c2w_ref, c2b_ref,
                    out_ref, pad_ref):
    _, H, W, C = feat_ref.shape

    feat = feat_ref[0].reshape(H * W, C).astype(jnp.float32)    # (HW, C)
    deg = deg_ref[0].astype(jnp.float32)                        # (1, C)

    # In-kernel zero padding: zero the scratch once per image; only the 1-pixel
    # border needs to stay zero (interior is fully rewritten before each conv).
    pad_ref[...] = jnp.zeros_like(pad_ref)

    def da_scale(x, w1_ref, w2_ref):
        # DA_conv: s = sigmoid(W2 @ leaky(W1 @ [avgpool(x); deg])); x * (1 + s)
        pooled = jnp.mean(x, axis=0, keepdims=True)             # (1, C) global avg pool
        v = jnp.concatenate([pooled, deg], axis=1)              # (1, 2C)
        h = _leaky(jnp.dot(v, w1_ref[...],
                           preferred_element_type=jnp.float32))
        s = jax.nn.sigmoid(jnp.dot(h, w2_ref[...],
                                   preferred_element_type=jnp.float32))
        return x * (1.0 + s)                                    # feat + feat*s

    def conv3x3(x, w_ref, b_ref):
        # 3x3 SAME conv as ONE im2col MXU matmul: (HW, 9C) @ (9C, Cout).
        pad_ref[1:H + 1, 1:W + 1, :] = x.reshape(H, W, C)
        taps = [pad_ref[dy:dy + H, dx:dx + W, :].reshape(H * W, C)
                for dy in range(3) for dx in range(3)]          # [dy, dx] order
        col = jnp.concatenate(taps, axis=1)                     # (HW, 9C)
        y = jnp.dot(col, w_ref[...], preferred_element_type=jnp.float32)
        return y + b_ref[...]                                   # bias broadcast

    o = _leaky(da_scale(feat, d1w1_ref, d1w2_ref))              # relu(da_conv1(x))
    o = _leaky(conv3x3(o, c1w_ref, c1b_ref))                    # relu(conv1(out))
    o = _leaky(da_scale(o, d2w1_ref, d2w2_ref))                 # relu(da_conv2([out, x1]))
    o = conv3x3(o, c2w_ref, c2b_ref) + feat                     # conv2(out) + x0

    out_ref[0] = o.reshape(H, W, C).astype(out_ref.dtype)


# --------------------------------------------------------------------------
# Wrappers
# --------------------------------------------------------------------------
def dablock_forward_nhwc(feat, deg, p):
    """feat: (B, H, W, C) NHWC, deg: (B, C)."""
    B, H, W, C = feat.shape
    hid = p["da1_w1"].shape[1]
    # HWIO (3,3,C,C) -> (9C, C); row index = dy*3C + dx*C + ci matches the
    # [dy, dx] tap order used to build the im2col columns in the kernel.
    c1w = p["conv1_w"].reshape(9 * C, C)
    c2w = p["conv2_w"].reshape(9 * C, C)
    c1b = p["conv1_b"].reshape(1, C)
    c2b = p["conv2_b"].reshape(1, C)
    deg3 = deg.reshape(B, 1, C)

    full2d = lambda b: (0, 0)   # constant index map: weights DMA'd once

    return pl.pallas_call(
        _dablock_kernel,
        out_shape=jax.ShapeDtypeStruct((B, H, W, C), feat.dtype),
        grid=(B,),
        in_specs=[
            pl.BlockSpec((1, H, W, C), lambda b: (b, 0, 0, 0)),   # feat
            pl.BlockSpec((1, 1, C), lambda b: (b, 0, 0)),          # deg
            pl.BlockSpec((2 * C, hid), full2d),                    # da1 w1
            pl.BlockSpec((hid, C), full2d),                        # da1 w2
            pl.BlockSpec((2 * C, hid), full2d),                    # da2 w1
            pl.BlockSpec((hid, C), full2d),                        # da2 w2
            pl.BlockSpec((9 * C, C), full2d),                      # conv1 w (im2col)
            pl.BlockSpec((1, C), full2d),                          # conv1 b
            pl.BlockSpec((9 * C, C), full2d),                      # conv2 w (im2col)
            pl.BlockSpec((1, C), full2d),                          # conv2 b
        ],
        out_specs=pl.BlockSpec((1, H, W, C), lambda b: (b, 0, 0, 0)),
        scratch_shapes=[pltpu.VMEM((H + 2, W + 2, C), jnp.float32)],
        compiler_params=pltpu.CompilerParams(
            dimension_semantics=("parallel",)),
    )(feat, deg3, p["da1_w1"], p["da1_w2"], p["da2_w1"], p["da2_w2"],
      c1w, c1b, c2w, c2b)


def dablock_forward(feat_nchw, deg, p):
    # PyTorch-compatible NCHW entry point.  The two boundary transposes are
    # plain XLA ops; an NHWC-native model should call dablock_forward_nhwc
    # directly so they disappear entirely.
    feat = jnp.transpose(feat_nchw, (0, 2, 3, 1))
    out = dablock_forward_nhwc(feat, deg, p)
    return jnp.transpose(out, (0, 3, 1, 2))


# --------------------------------------------------------------------------
# Plain-JAX reference (for correctness check), pinned to HIGHEST precision so
# the f32 comparison is meaningful.
# --------------------------------------------------------------------------
def _conv_ref(x, w, b):
    y = jax.lax.conv_general_dilated(
        x, w, window_strides=(1, 1), padding="SAME",
        dimension_numbers=("NHWC", "HWIO", "NHWC"),
        precision=jax.lax.Precision.HIGHEST)
    return y + b.reshape(1, 1, 1, -1)


def dablock_ref(feat_nchw, deg, p):
    feat = jnp.transpose(feat_nchw, (0, 2, 3, 1))
    hi = jax.lax.Precision.HIGHEST

    def da(x, w1, w2):
        pooled = jnp.mean(x, axis=(1, 2))                       # (B, C)
        v = jnp.concatenate([pooled, deg], axis=1)              # (B, 2C)
        h = _leaky(jnp.dot(v, w1, precision=hi))
        s = jax.nn.sigmoid(jnp.dot(h, w2, precision=hi))        # (B, C)
        return x * (1.0 + s[:, None, None, :])

    out = _leaky(da(feat, p["da1_w1"], p["da1_w2"]))
    out = _leaky(_conv_ref(out, p["conv1_w"], p["conv1_b"]))
    out = _leaky(da(out, p["da2_w1"], p["da2_w2"]))
    out = _conv_ref(out, p["conv2_w"], p["conv2_b"]) + feat
    return jnp.transpose(out, (0, 3, 1, 2))


# --------------------------------------------------------------------------
if __name__ == "__main__":
    B, C, H, W = 2, 64, 16, 16          # n_feat=64 (module default), small spatial
    reduction = 8
    hid = 2 * C // reduction

    key = jax.random.PRNGKey(0)
    ks = jax.random.split(key, 10)
    f32 = jnp.float32
    params = {
        "da1_w1": 0.10 * jax.random.normal(ks[0], (2 * C, hid), f32),
        "da1_w2": 0.10 * jax.random.normal(ks[1], (hid, C), f32),
        "da2_w1": 0.10 * jax.random.normal(ks[2], (2 * C, hid), f32),
        "da2_w2": 0.10 * jax.random.normal(ks[3], (hid, C), f32),
        "conv1_w": 0.05 * jax.random.normal(ks[4], (3, 3, C, C), f32),  # HWIO
        "conv1_b": 0.05 * jax.random.normal(ks[5], (C,), f32),
        "conv2_w": 0.05 * jax.random.normal(ks[6], (3, 3, C, C), f32),
        "conv2_b": 0.05 * jax.random.normal(ks[7], (C,), f32),
    }
    feat = jax.random.normal(ks[8], (B, C, H, W), f32)      # x[0]: B*C*H*W (NCHW)
    deg = jax.random.normal(ks[9], (B, C), f32)             # x[1]: B*C

    out = jax.jit(dablock_forward)(feat, deg, params)
    out = jax.block_until_ready(out)

    ref = jax.block_until_ready(dablock_ref(feat, deg, params))
    assert out.shape == (B, C, H, W)
    max_err = float(jnp.max(jnp.abs(out - ref)))
    assert jnp.allclose(out, ref, rtol=1e-4, atol=1e-4), max_err

    print("KERNEL_OK")
</pallas_src>

<mosaic_0001>
module attributes {stable_mosaic.version = 11 : i64} {
  func.func @_dablock_kernel(%arg0: i32, %arg1: memref<1x16x16x64xf32, #tpu.memory_space<vmem>>, %arg2: memref<1x1x64xf32, #tpu.memory_space<vmem>>, %arg3: memref<128x16xf32, #tpu.memory_space<vmem>>, %arg4: memref<16x64xf32, #tpu.memory_space<vmem>>, %arg5: memref<128x16xf32, #tpu.memory_space<vmem>>, %arg6: memref<16x64xf32, #tpu.memory_space<vmem>>, %arg7: memref<576x64xf32, #tpu.memory_space<vmem>>, %arg8: memref<1x64xf32, #tpu.memory_space<vmem>>, %arg9: memref<576x64xf32, #tpu.memory_space<vmem>>, %arg10: memref<1x64xf32, #tpu.memory_space<vmem>>, %arg11: memref<1x16x16x64xf32, #tpu.memory_space<vmem>>, %arg12: memref<18x18x64xf32, #tpu.memory_space<vmem>>) attributes {dimension_semantics = [#tpu.dimension_semantics<parallel>], iteration_bounds = array<i64: 2>, scalar_prefetch = 0 : i64, scratch_operands = 1 : i64, tpu.core_type = #tpu.core_type<tc>, window_params = [{transform_indices = @transform_0, window_bounds = array<i64: 1, 16, 16, 64>}, {transform_indices = @transform_1, window_bounds = array<i64: 1, 1, 64>}, {pipeline_mode = #tpu.pipeline_mode<synchronous>, transform_indices = @transform_2, window_bounds = array<i64: 128, 16>}, {pipeline_mode = #tpu.pipeline_mode<synchronous>, transform_indices = @transform_3, window_bounds = array<i64: 16, 64>}, {pipeline_mode = #tpu.pipeline_mode<synchronous>, transform_indices = @transform_4, window_bounds = array<i64: 128, 16>}, {pipeline_mode = #tpu.pipeline_mode<synchronous>, transform_indices = @transform_5, window_bounds = array<i64: 16, 64>}, {pipeline_mode = #tpu.pipeline_mode<synchronous>, transform_indices = @transform_6, window_bounds = array<i64: 576, 64>}, {pipeline_mode = #tpu.pipeline_mode<synchronous>, transform_indices = @transform_7, window_bounds = array<i64: 1, 64>}, {pipeline_mode = #tpu.pipeline_mode<synchronous>, transform_indices = @transform_8, window_bounds = array<i64: 576, 64>}, {pipeline_mode = #tpu.pipeline_mode<synchronous>, transform_indices = @transform_9, window_bounds = array<i64: 1, 64>}, {transform_indices = @transform_10, window_bounds = array<i64: 1, 16, 16, 64>}]} {
    %c0 = arith.constant 0 : index
    %c0_0 = arith.constant 0 : index
    %c0_1 = arith.constant 0 : index
    %c0_2 = arith.constant 0 : index
    %0 = vector.load %arg1[%c0, %c0_0, %c0_1, %c0_2] : memref<1x16x16x64xf32, #tpu.memory_space<vmem>>, vector<1x16x16x64xf32>
    %1 = vector.shape_cast %0 : vector<1x16x16x64xf32> to vector<16x16x64xf32>
    %2 = vector.shape_cast %1 : vector<16x16x64xf32> to vector<256x64xf32>
    %c0_3 = arith.constant 0 : index
    %c0_4 = arith.constant 0 : index
    %c0_5 = arith.constant 0 : index
    %3 = vector.load %arg2[%c0_3, %c0_4, %c0_5] : memref<1x1x64xf32, #tpu.memory_space<vmem>>, vector<1x1x64xf32>
    %4 = vector.shape_cast %3 : vector<1x1x64xf32> to vector<1x64xf32>
    %cst = arith.constant 0.000000e+00 : f32
    %5 = vector.broadcast %cst : f32 to vector<18x18x64xf32>
    %c0_6 = arith.constant 0 : index
    %c0_7 = arith.constant 0 : index
    %c0_8 = arith.constant 0 : index
    %6 = vector.load %arg12[%c0_6, %c0_7, %c0_8] : memref<18x18x64xf32, #tpu.memory_space<vmem>>, vector<18x18x64xf32>
    tpu.vector_store %arg12[%c0_6, %c0_7, %c0_8], %5 {strides = array<i32>} : memref<18x18x64xf32, #tpu.memory_space<vmem>>, vector<18x18x64xf32>,
    %cst_9 = arith.constant dense<0.000000e+00> : vector<64xf32>
    %7 = vector.multi_reduction <add>, %2, %cst_9 [0] : vector<256x64xf32> to vector<64xf32>
    %8 = vector.shape_cast %7 : vector<64xf32> to vector<1x64xf32>
    %cst_10 = arith.constant 2.560000e+02 : f32
    %9 = vector.broadcast %cst_10 : f32 to vector<1x64xf32>
    %10 = arith.divf %8, %9 : vector<1x64xf32>
    %11 = tpu.concatenate %10, %4 in 1 : vector<1x64xf32>, vector<1x64xf32> -> vector<1x128xf32>
    %c0_11 = arith.constant 0 : index
    %c0_12 = arith.constant 0 : index
    %12 = vector.load %arg3[%c0_11, %c0_12] : memref<128x16xf32, #tpu.memory_space<vmem>>, vector<128x16xf32>
    %cst_13 = arith.constant dense<0.000000e+00> : vector<1x16xf32>
    %13 = tpu.matmul %11, %12, %cst_13 {dimension_numbers = #tpu.dot_dimension_numbers<[1], [0], [0], [1], [0, 0, 1, 1], [], []>} : vector<1x128xf32>, vector<128x16xf32>, vector<1x16xf32> -> vector<1x16xf32>
    %cst_14 = arith.constant 0.000000e+00 : f32
    %14 = vector.broadcast %cst_14 : f32 to vector<1x16xf32>
    %15 = arith.cmpf ogt, %13, %14 : vector<1x16xf32>
    %cst_15 = arith.constant 1.000000e-01 : f32
    %16 = vector.broadcast %cst_15 : f32 to vector<1x16xf32>
    %17 = arith.mulf %16, %13 : vector<1x16xf32>
    %18 = arith.select %15, %13, %17 : vector<1x16xi1>, vector<1x16xf32>
    %c0_16 = arith.constant 0 : index
    %c0_17 = arith.constant 0 : index
    %19 = vector.load %arg4[%c0_16, %c0_17] : memref<16x64xf32, #tpu.memory_space<vmem>>, vector<16x64xf32>
    %cst_18 = arith.constant dense<0.000000e+00> : vector<1x64xf32>
    %20 = tpu.matmul %18, %19, %cst_18 {dimension_numbers = #tpu.dot_dimension_numbers<[1], [0], [0], [1], [0, 0, 1, 1], [], []>} : vector<1x16xf32>, vector<16x64xf32>, vector<1x64xf32> -> vector<1x64xf32>
    %21 = arith.negf %20 : vector<1x64xf32>
    %22 = math.exp %21 : vector<1x64xf32>
    %cst_19 = arith.constant 1.000000e+00 : f32
    %23 = vector.broadcast %cst_19 : f32 to vector<1x64xf32>
    %24 = arith.addf %23, %22 : vector<1x64xf32>
    %25 = arith.divf %23, %24 : vector<1x64xf32>
    %cst_20 = arith.constant 1.000000e+00 : f32
    %26 = vector.broadcast %cst_20 : f32 to vector<1x64xf32>
    %27 = arith.addf %26, %25 : vector<1x64xf32>
    %28 = vector.broadcast %27 : vector<1x64xf32> to vector<256x64xf32>
    %29 = arith.mulf %2, %28 : vector<256x64xf32>
    %cst_21 = arith.constant 0.000000e+00 : f32
    %30 = vector.broadcast %cst_21 : f32 to vector<256x64xf32>
    %31 = arith.cmpf ogt, %29, %30 : vector<256x64xf32>
    %cst_22 = arith.constant 1.000000e-01 : f32
    %32 = vector.broadcast %cst_22 : f32 to vector<256x64xf32>
    %33 = arith.mulf %32, %29 : vector<256x64xf32>
    %34 = arith.select %31, %29, %33 : vector<256x64xi1>, vector<256x64xf32>
    %35 = vector.shape_cast %34 : vector<256x64xf32> to vector<16x16x64xf32>
    %c1 = arith.constant 1 : index
    %c1_23 = arith.constant 1 : index
    %c0_24 = arith.constant 0 : index
    %36 = vector.load %arg12[%c1, %c1_23, %c0_24] : memref<18x18x64xf32, #tpu.memory_space<vmem>>, vector<16x16x64xf32>
    tpu.vector_store %arg12[%c1, %c1_23, %c0_24], %35 {strides = array<i32>} : memref<18x18x64xf32, #tpu.memory_space<vmem>>, vector<16x16x64xf32>,
    %c0_25 = arith.constant 0 : index
    %c0_26 = arith.constant 0 : index
    %c0_27 = arith.constant 0 : index
    %37 = vector.load %arg12[%c0_25, %c0_26, %c0_27] : memref<18x18x64xf32, #tpu.memory_space<vmem>>, vector<16x16x64xf32>
    %38 = vector.shape_cast %37 : vector<16x16x64xf32> to vector<256x64xf32>
    %c0_28 = arith.constant 0 : index
    %c1_29 = arith.constant 1 : index
    %c0_30 = arith.constant 0 : index
    %39 = vector.load %arg12[%c0_28, %c1_29, %c0_30] : memref<18x18x64xf32, #tpu.memory_space<vmem>>, vector<16x16x64xf32>
    %40 = vector.shape_cast %39 : vector<16x16x64xf32> to vector<256x64xf32>
    %c0_31 = arith.constant 0 : index
    %c2 = arith.constant 2 : index
    %c0_32 = arith.constant 0 : index
    %41 = vector.load %arg12[%c0_31, %c2, %c0_32] : memref<18x18x64xf32, #tpu.memory_space<vmem>>, vector<16x16x64xf32>
    %42 = vector.shape_cast %41 : vector<16x16x64xf32> to vector<256x64xf32>
    %c1_33 = arith.constant 1 : index
    %c0_34 = arith.constant 0 : index
    %c0_35 = arith.constant 0 : index
    %43 = vector.load %arg12[%c1_33, %c0_34, %c0_35] : memref<18x18x64xf32, #tpu.memory_space<vmem>>, vector<16x16x64xf32>
    %44 = vector.shape_cast %43 : vector<16x16x64xf32> to vector<256x64xf32>
    %c1_36 = arith.constant 1 : index
    %c1_37 = arith.constant 1 : index
    %c0_38 = arith.constant 0 : index
    %45 = vector.load %arg12[%c1_36, %c1_37, %c0_38] : memref<18x18x64xf32, #tpu.memory_space<vmem>>, vector<16x16x64xf32>
    %46 = vector.shape_cast %45 : vector<16x16x64xf32> to vector<256x64xf32>
    %c1_39 = arith.constant 1 : index
    %c2_40 = arith.constant 2 : index
    %c0_41 = arith.constant 0 : index
    %47 = vector.load %arg12[%c1_39, %c2_40, %c0_41] : memref<18x18x64xf32, #tpu.memory_space<vmem>>, vector<16x16x64xf32>
    %48 = vector.shape_cast %47 : vector<16x16x64xf32> to vector<256x64xf32>
    %c2_42 = arith.constant 2 : index
    %c0_43 = arith.constant 0 : index
    %c0_44 = arith.constant 0 : index
    %49 = vector.load %arg12[%c2_42, %c0_43, %c0_44] : memref<18x18x64xf32, #tpu.memory_space<vmem>>, vector<16x16x64xf32>
    %50 = vector.shape_cast %49 : vector<16x16x64xf32> to vector<256x64xf32>
    %c2_45 = arith.constant 2 : index
    %c1_46 = arith.constant 1 : index
    %c0_47 = arith.constant 0 : index
    %51 = vector.load %arg12[%c2_45, %c1_46, %c0_47] : memref<18x18x64xf32, #tpu.memory_space<vmem>>, vector<16x16x64xf32>
    %52 = vector.shape_cast %51 : vector<16x16x64xf32> to vector<256x64xf32>
    %c2_48 = arith.constant 2 : index
    %c2_49 = arith.constant 2 : index
    %c0_50 = arith.constant 0 : index
    %53 = vector.load %arg12[%c2_48, %c2_49, %c0_50] : memref<18x18x64xf32, #tpu.memory_space<vmem>>, vector<16x16x64xf32>
    %54 = vector.shape_cast %53 : vector<16x16x64xf32> to vector<256x64xf32>
    %55 = tpu.concatenate %38, %40, %42, %44, %46, %48, %50, %52, %54 in 1 : vector<256x64xf32>, vector<256x64xf32>, vector<256x64xf32>, vector<256x64xf32>, vector<256x64xf32>, vector<256x64xf32>, vector<256x64xf32>, vector<256x64xf32>, vector<256x64xf32> -> vector<256x576xf32>
    %c0_51 = arith.constant 0 : index
    %c0_52 = arith.constant 0 : index
    %56 = vector.load %arg7[%c0_51, %c0_52] : memref<576x64xf32, #tpu.memory_space<vmem>>, vector<576x64xf32>
    %cst_53 = arith.constant dense<0.000000e+00> : vector<256x64xf32>
    %57 = tpu.matmul %55, %56, %cst_53 {dimension_numbers = #tpu.dot_dimension_numbers<[1], [0], [0], [1], [0, 0, 1, 1], [], []>} : vector<256x576xf32>, vector<576x64xf32>, vector<256x64xf32> -> vector<256x64xf32>
    %c0_54 = arith.constant 0 : index
    %c0_55 = arith.constant 0 : index
    %58 = vector.load %arg8[%c0_54, %c0_55] : memref<1x64xf32, #tpu.memory_space<vmem>>, vector<1x64xf32>
    %59 = vector.broadcast %58 : vector<1x64xf32> to vector<256x64xf32>
    %60 = arith.addf %57, %59 : vector<256x64xf32>
    %cst_56 = arith.constant 0.000000e+00 : f32
    %61 = vector.broadcast %cst_56 : f32 to vector<256x64xf32>
    %62 = arith.cmpf ogt, %60, %61 : vector<256x64xf32>
    %cst_57 = arith.constant 1.000000e-01 : f32
    %63 = vector.broadcast %cst_57 : f32 to vector<256x64xf32>
    %64 = arith.mulf %63, %60 : vector<256x64xf32>
    %65 = arith.select %62, %60, %64 : vector<256x64xi1>, vector<256x64xf32>
    %cst_58 = arith.constant dense<0.000000e+00> : vector<64xf32>
    %66 = vector.multi_reduction <add>, %65, %cst_58 [0] : vector<256x64xf32> to vector<64xf32>
    %67 = vector.shape_cast %66 : vector<64xf32> to vector<1x64xf32>
    %cst_59 = arith.constant 2.560000e+02 : f32
    %68 = vector.broadcast %cst_59 : f32 to vector<1x64xf32>
    %69 = arith.divf %67, %68 : vector<1x64xf32>
    %70 = tpu.concatenate %69, %4 in 1 : vector<1x64xf32>, vector<1x64xf32> -> vector<1x128xf32>
    %c0_60 = arith.constant 0 : index
    %c0_61 = arith.constant 0 : index
    %71 = vector.load %arg5[%c0_60, %c0_61] : memref<128x16xf32, #tpu.memory_space<vmem>>, vector<128x16xf32>
    %cst_62 = arith.constant dense<0.000000e+00> : vector<1x16xf32>
    %72 = tpu.matmul %70, %71, %cst_62 {dimension_numbers = #tpu.dot_dimension_numbers<[1], [0], [0], [1], [0, 0, 1, 1], [], []>} : vector<1x128xf32>, vector<128x16xf32>, vector<1x16xf32> -> vector<1x16xf32>
    %cst_63 = arith.constant 0.000000e+00 : f32
    %73 = vector.broadcast %cst_63 : f32 to vector<1x16xf32>
    %74 = arith.cmpf ogt, %72, %73 : vector<1x16xf32>
    %cst_64 = arith.constant 1.000000e-01 : f32
    %75 = vector.broadcast %cst_64 : f32 to vector<1x16xf32>
    %76 = arith.mulf %75, %72 : vector<1x16xf32>
    %77 = arith.select %74, %72, %76 : vector<1x16xi1>, vector<1x16xf32>
    %c0_65 = arith.constant 0 : index
    %c0_66 = arith.constant 0 : index
    %78 = vector.load %arg6[%c0_65, %c0_66] : memref<16x64xf32, #tpu.memory_space<vmem>>, vector<16x64xf32>
    %cst_67 = arith.constant dense<0.000000e+00> : vector<1x64xf32>
    %79 = tpu.matmul %77, %78, %cst_67 {dimension_numbers = #tpu.dot_dimension_numbers<[1], [0], [0], [1], [0, 0, 1, 1], [], []>} : vector<1x16xf32>, vector<16x64xf32>, vector<1x64xf32> -> vector<1x64xf32>
    %80 = arith.negf %79 : vector<1x64xf32>
    %81 = math.exp %80 : vector<1x64xf32>
    %cst_68 = arith.constant 1.000000e+00 : f32
    %82 = vector.broadcast %cst_68 : f32 to vector<1x64xf32>
    %83 = arith.addf %82, %81 : vector<1x64xf32>
    %84 = arith.divf %82, %83 : vector<1x64xf32>
    %cst_69 = arith.constant 1.000000e+00 : f32
    %85 = vector.broadcast %cst_69 : f32 to vector<1x64xf32>
    %86 = arith.addf %85, %84 : vector<1x64xf32>
    %87 = vector.broadcast %86 : vector<1x64xf32> to vector<256x64xf32>
    %88 = arith.mulf %65, %87 : vector<256x64xf32>
    %cst_70 = arith.constant 0.000000e+00 : f32
    %89 = vector.broadcast %cst_70 : f32 to vector<256x64xf32>
    %90 = arith.cmpf ogt, %88, %89 : vector<256x64xf32>
    %cst_71 = arith.constant 1.000000e-01 : f32
    %91 = vector.broadcast %cst_71 : f32 to vector<256x64xf32>
    %92 = arith.mulf %91, %88 : vector<256x64xf32>
    %93 = arith.select %90, %88, %92 : vector<256x64xi1>, vector<256x64xf32>
    %94 = vector.shape_cast %93 : vector<256x64xf32> to vector<16x16x64xf32>
    %c1_72 = arith.constant 1 : index
    %c1_73 = arith.constant 1 : index
    %c0_74 = arith.constant 0 : index
    %95 = vector.load %arg12[%c1_72, %c1_73, %c0_74] : memref<18x18x64xf32, #tpu.memory_space<vmem>>, vector<16x16x64xf32>
    tpu.vector_store %arg12[%c1_72, %c1_73, %c0_74], %94 {strides = array<i32>} : memref<18x18x64xf32, #tpu.memory_space<vmem>>, vector<16x16x64xf32>,
    %c0_75 = arith.constant 0 : index
    %c0_76 = arith.constant 0 : index
    %c0_77 = arith.constant 0 : index
    %96 = vector.load %arg12[%c0_75, %c0_76, %c0_77] : memref<18x18x64xf32, #tpu.memory_space<vmem>>, vector<16x16x64xf32>
    %97 = vector.shape_cast %96 : vector<16x16x64xf32> to vector<256x64xf32>
    %c0_78 = arith.constant 0 : index
    %c1_79 = arith.constant 1 : index
    %c0_80 = arith.constant 0 : index
    %98 = vector.load %arg12[%c0_78, %c1_79, %c0_80] : memref<18x18x64xf32, #tpu.memory_space<vmem>>, vector<16x16x64xf32>
    %99 = vector.shape_cast %98 : vector<16x16x64xf32> to vector<256x64xf32>
    %c0_81 = arith.constant 0 : index
    %c2_82 = arith.constant 2 : index
    %c0_83 = arith.constant 0 : index
    %100 = vector.load %arg12[%c0_81, %c2_82, %c0_83] : memref<18x18x64xf32, #tpu.memory_space<vmem>>, vector<16x16x64xf32>
    %101 = vector.shape_cast %100 : vector<16x16x64xf32> to vector<256x64xf32>
    %c1_84 = arith.constant 1 : index
    %c0_85 = arith.constant 0 : index
    %c0_86 = arith.constant 0 : index
    %102 = vector.load %arg12[%c1_84, %c0_85, %c0_86] : memref<18x18x64xf32, #tpu.memory_space<vmem>>, vector<16x16x64xf32>
    %103 = vector.shape_cast %102 : vector<16x16x64xf32> to vector<256x64xf32>
    %c1_87 = arith.constant 1 : index
    %c1_88 = arith.constant 1 : index
    %c0_89 = arith.constant 0 : index
    %104 = vector.load %arg12[%c1_87, %c1_88, %c0_89] : memref<18x18x64xf32, #tpu.memory_space<vmem>>, vector<16x16x64xf32>
    %105 = vector.shape_cast %104 : vector<16x16x64xf32> to vector<256x64xf32>
    %c1_90 = arith.constant 1 : index
    %c2_91 = arith.constant 2 : index
    %c0_92 = arith.constant 0 : index
    %106 = vector.load %arg12[%c1_90, %c2_91, %c0_92] : memref<18x18x64xf32, #tpu.memory_space<vmem>>, vector<16x16x64xf32>
    %107 = vector.shape_cast %106 : vector<16x16x64xf32> to vector<256x64xf32>
    %c2_93 = arith.constant 2 : index
    %c0_94 = arith.constant 0 : index
    %c0_95 = arith.constant 0 : index
    %108 = vector.load %arg12[%c2_93, %c0_94, %c0_95] : memref<18x18x64xf32, #tpu.memory_space<vmem>>, vector<16x16x64xf32>
    %109 = vector.shape_cast %108 : vector<16x16x64xf32> to vector<256x64xf32>
    %c2_96 = arith.constant 2 : index
    %c1_97 = arith.constant 1 : index
    %c0_98 = arith.constant 0 : index
    %110 = vector.load %arg12[%c2_96, %c1_97, %c0_98] : memref<18x18x64xf32, #tpu.memory_space<vmem>>, vector<16x16x64xf32>
    %111 = vector.shape_cast %110 : vector<16x16x64xf32> to vector<256x64xf32>
    %c2_99 = arith.constant 2 : index
    %c2_100 = arith.constant 2 : index
    %c0_101 = arith.constant 0 : index
    %112 = vector.load %arg12[%c2_99, %c2_100, %c0_101] : memref<18x18x64xf32, #tpu.memory_space<vmem>>, vector<16x16x64xf32>
    %113 = vector.shape_cast %112 : vector<16x16x64xf32> to vector<256x64xf32>
    %114 = tpu.concatenate %97, %99, %101, %103, %105, %107, %109, %111, %113 in 1 : vector<256x64xf32>, vector<256x64xf32>, vector<256x64xf32>, vector<256x64xf32>, vector<256x64xf32>, vector<256x64xf32>, vector<256x64xf32>, vector<256x64xf32>, vector<256x64xf32> -> vector<256x576xf32>
    %c0_102 = arith.constant 0 : index
    %c0_103 = arith.constant 0 : index
    %115 = vector.load %arg9[%c0_102, %c0_103] : memref<576x64xf32, #tpu.memory_space<vmem>>, vector<576x64xf32>
    %cst_104 = arith.constant dense<0.000000e+00> : vector<256x64xf32>
    %116 = tpu.matmul %114, %115, %cst_104 {dimension_numbers = #tpu.dot_dimension_numbers<[1], [0], [0], [1], [0, 0, 1, 1], [], []>} : vector<256x576xf32>, vector<576x64xf32>, vector<256x64xf32> -> vector<256x64xf32>
    %c0_105 = arith.constant 0 : index
    %c0_106 = arith.constant 0 : index
    %117 = vector.load %arg10[%c0_105, %c0_106] : memref<1x64xf32, #tpu.memory_space<vmem>>, vector<1x64xf32>
    %118 = vector.broadcast %117 : vector<1x64xf32> to vector<256x64xf32>
    %119 = arith.addf %116, %118 : vector<256x64xf32>
    %120 = arith.addf %119, %2 : vector<256x64xf32>
    %121 = vector.shape_cast %120 : vector<256x64xf32> to vector<16x16x64xf32>
    %c0_107 = arith.constant 0 : index
    %c0_108 = arith.constant 0 : index
    %c0_109 = arith.constant 0 : index
    %c0_110 = arith.constant 0 : index
    %122 = vector.load %arg11[%c0_107, %c0_108, %c0_109, %c0_110] : memref<1x16x16x64xf32, #tpu.memory_space<vmem>>, vector<1x16x16x64xf32>
    %123 = vector.shape_cast %122 : vector<1x16x16x64xf32> to vector<16x16x64xf32>
    %124 = vector.shape_cast %121 : vector<16x16x64xf32> to vector<1x16x16x64xf32>
    tpu.vector_store %arg11[%c0_107, %c0_108, %c0_109, %c0_110], %124 {strides = array<i32>} : memref<1x16x16x64xf32, #tpu.memory_space<vmem>>, vector<1x16x16x64xf32>,
    return
  }
  func.func @transform_0(%arg0: i32) -> (i32, i32, i32, i32) {
    %c0_i32 = arith.constant 0 : i32
    %c0_i32_0 = arith.constant 0 : i32
    %c0_i32_1 = arith.constant 0 : i32
    %c0_i32_2 = arith.constant 0 : i32
    return %arg0, %c0_i32, %c0_i32_0, %c0_i32_1 : i32, i32, i32, i32
  }
  func.func @transform_1(%arg0: i32) -> (i32, i32, i32) {
    %c0_i32 = arith.constant 0 : i32
    %c0_i32_0 = arith.constant 0 : i32
    %c0_i32_1 = arith.constant 0 : i32
    return %arg0, %c0_i32, %c0_i32_0 : i32, i32, i32
  }
  func.func @transform_2(%arg0: i32) -> (i32, i32) {
    %c0_i32 = arith.constant 0 : i32
    %c0_i32_0 = arith.constant 0 : i32
    %c0_i32_1 = arith.constant 0 : i32
    return %c0_i32, %c0_i32_0 : i32, i32
  }
  func.func @transform_3(%arg0: i32) -> (i32, i32) {
    %c0_i32 = arith.constant 0 : i32
    %c0_i32_0 = arith.constant 0 : i32
    %c0_i32_1 = arith.constant 0 : i32
    return %c0_i32, %c0_i32_0 : i32, i32
  }
  func.func @transform_4(%arg0: i32) -> (i32, i32) {
    %c0_i32 = arith.constant 0 : i32
    %c0_i32_0 = arith.constant 0 : i32
    %c0_i32_1 = arith.constant 0 : i32
    return %c0_i32, %c0_i32_0 : i32, i32
  }
  func.func @transform_5(%arg0: i32) -> (i32, i32) {
    %c0_i32 = arith.constant 0 : i32
    %c0_i32_0 = arith.constant 0 : i32
    %c0_i32_1 = arith.constant 0 : i32
    return %c0_i32, %c0_i32_0 : i32, i32
  }
  func.func @transform_6(%arg0: i32) -> (i32, i32) {
    %c0_i32 = arith.constant 0 : i32
    %c0_i32_0 = arith.constant 0 : i32
    %c0_i32_1 = arith.constant 0 : i32
    return %c0_i32, %c0_i32_0 : i32, i32
  }
  func.func @transform_7(%arg0: i32) -> (i32, i32) {
    %c0_i32 = arith.constant 0 : i32
    %c0_i32_0 = arith.constant 0 : i32
    %c0_i32_1 = arith.constant 0 : i32
    return %c0_i32, %c0_i32_0 : i32, i32
  }
  func.func @transform_8(%arg0: i32) -> (i32, i32) {
    %c0_i32 = arith.constant 0 : i32
    %c0_i32_0 = arith.constant 0 : i32
    %c0_i32_1 = arith.constant 0 : i32
    return %c0_i32, %c0_i32_0 : i32, i32
  }
  func.func @transform_9(%arg0: i32) -> (i32, i32) {
    %c0_i32 = arith.constant 0 : i32
    %c0_i32_0 = arith.constant 0 : i32
    %c0_i32_1 = arith.constant 0 : i32
    return %c0_i32, %c0_i32_0 : i32, i32
  }
  func.func @transform_10(%arg0: i32) -> (i32, i32, i32, i32) {
    %c0_i32 = arith.constant 0 : i32
    %c0_i32_0 = arith.constant 0 : i32
    %c0_i32_1 = arith.constant 0 : i32
    %c0_i32_2 = arith.constant 0 : i32
    return %arg0, %c0_i32, %c0_i32_0, %c0_i32_1 : i32, i32, i32, i32
  }
}

</mosaic_0001>

<bundles_post_ra>
// kernel: dablock_forward.1
= control target key start
LH: loop header
LB: loop body
LE: loop exit
PB: predicated region body
PF: predicated region fallthrough
CT: control target
= control target key end

     0   :  { %s8920_s0 = inlined_call_operand.hbm [shape: f32[2,16,16,64], index: 0, kind: input, shape index: {}]   ;;  %s8921_s1 = inlined_call_operand.vmem [shape: f32[2,1,64], index: 1, kind: input, shape index: {}]   ;;  %s8922_s2 = inlined_call_operand.vmem [shape: f32[128,16], index: 2, kind: input, shape index: {}]   ;;  %s8923_s3 = inlined_call_operand.vmem [shape: f32[16,64], index: 3, kind: input, shape index: {}]   ;;  %s8924_s4 = inlined_call_operand.vmem [shape: f32[128,16], index: 4, kind: input, shape index: {}]   ;;  %s8925_s5 = inlined_call_operand.vmem [shape: f32[16,64], index: 5, kind: input, shape index: {}]   ;;  %s8926_s6 = inlined_call_operand.hbm [shape: f32[576,64], index: 6, kind: input, shape index: {}]   ;;  %s8927_s7 = inlined_call_operand.vmem [shape: f32[1,64], index: 7, kind: input, shape index: {}]   ;;  %s8928_s8 = inlined_call_operand.hbm [shape: f32[576,64], index: 8, kind: input, shape index: {}]   ;;  %s8929_s9 = inlined_call_operand.vmem [shape: f32[1,64], index: 9, kind: input, shape index: {}]   ;;  %s8930_s10 = inlined_call_operand.hbm [shape: f32[2,16,16,64], index: 10, kind: output, shape index: {}]  }
   0x1   :  { %8954 = sst [smem:[#allocation59_spill]] %s8926_s6 }
   0x2   :  { %8955 = sst [smem:[#allocation60_spill]] %s8928_s8 }
   0x3   :  { %15 = vsyncpa [#allocation4], 0 }
   0x4   :  { %17 = vsyncpa [#allocation4 + $0x1], 0 }
   0x5   :  { %18 = vsyncpa [#allocation7], 0 }
   0x6   :  { %19 = vsyncpa [#allocation5], 0 }
   0x7   :  { %21 = vsyncpa [#allocation5 + $0x1], 0  ;;  %s5764_s13 = smov 0   ;;  %s5766_s14 = smov 0  }
   0x8   :  { %s5768_s15 = smov 0   ;;  %s5770_s16 = smov 0  }
   0x9 LB: > { %8956 = sst [smem:[#allocation13_spill]] %s5694_s15  ;;  %s5785_s17 = sadd.s32 4294967295, %s5698_s16   ;;  %s5698_s16 = sphi %s5770_s16, %s9104_s16   ;;  %s5694_s15 = sphi %s5768_s15, %s9101_s15   ;;  %s5690_s14 = sphi %s5766_s14, %s9103_s14   ;;  %s5686_s13 = sphi %s5764_s13, %s9102_s13  }
   0xa   : > { %s4770_s18 = sadd.s32 4294967294, %s5698_s16   ;;  %p47_p0 = scmp.ne.s32.totalorder %s5690_s14, %s5686_s13 }
   0xb   : > { %p48_p1 = scmp.eq.s32.totalorder %s5785_s17, 0  ;;  %p265_p2 = scmp.eq.s32.totalorder %s5785_s17, 1 }
   0xc   : > { %p271_p3 = scmp.eq.s32.totalorder %s4770_s18, 1  ;;  %p4771_p5 = scmp.ge.s32.totalorder %s5698_s16, 1 }
   0xd   : > { %p5794_p4 = por %p48_p1, %p47_p0  ;;  %p278_p7 = scmp.lt.s32.totalorder %s5698_s16, 3 }
   0xe   : > { %p5799_p6 = por %p271_p3, %p47_p0  ;;  %s8959_s6 = sld [smem:[#allocation59_spill]] }
   0xf   : > { %p5807_p8 = pnand %p4771_p5, %p278_p7  ;;  %s5700_s25 = smov [#allocation6]  }
  0x10   : > { %s303_s26 = sshll.u32 %s5700_s25, 4  ;;  %s8961_s8 = sld [smem:[#allocation60_spill]]  ;;  %s304_s26 = int_to_ptr.vmem [resolvable:$true] %s303_s26 }
  0x11   : > { %p4902_p9 = pneg %p5807_p8  ;;  %s8931_s30 = smov 128  }
  0x12   : > { %s8932_s11 = smov 8   ;;  %s5703_s12 = smov [#allocation8]  }
  0x13   : > { %p4903_p10 = pnand %p4902_p9, %p48_p1  ;;  %s320_s18 = sshll.u32 %s5703_s12, 4  ;;  %s321_s18 = int_to_ptr.vmem [resolvable:$true] %s320_s18 }
  0x14   : > { %s301_s23 = sshll.u32 %s8959_s6, 4  ;;  %s5826_s21 = sadd.s32 1, %s5698_s16   ;;  %s302_s23 = int_to_ptr.hbm [resolvable:$true] %s301_s23 }
  0x15   : > { %4905 = dma.hbm_to_vmem [thread:$0]  (!%p4903_p10), %s302_s23, 9216, %s304_s26, [#allocation7], %s8931_s30, %s8931_s30, %s8932_s11  }
  0x16   : > { %s318_s29 = sshll.u32 %s8961_s8, 4  ;;  %s34_s22 = sadd.s32 1, %s5694_s15  ;;  %s319_s29 = int_to_ptr.hbm [resolvable:$true] %s318_s29 }
  0x17   : > { %4908 = dma.hbm_to_vmem [thread:$0]  (!%p4903_p10), %s319_s29, 9216, %s321_s18, [#allocation7], %s8931_s30, %s8931_s30, %s8932_s11  }
  0x18   : > { %s31_s25 = ssub.s32 %s5698_s16, %s5826_s21  ;;  %p41_p12 = scmp.ne.s32.totalorder %s5694_s15, %s5690_s14 }
  0x19   : > { %p32_p13 = scmp.eq.s32.totalorder %s31_s25, 0  ;;  %p42_p0 = scmp.eq.s32.totalorder %s5698_s16, 0 }
  0x1a   : > { %p5836_p3 = por %p265_p2, %p41_p12  ;;  %p4919_p5 = scmp.lt.s32.totalorder %s5698_s16, 2 }
  0x1b   : > { %s5842_s23 = scalar_select %p32_p13, %s5694_s15, %s34_s22  }
  0x1c   : > { %p43_p7 = por %p42_p0, %p41_p12  ;;  %s337_s26 = sand.u32 1, %s5694_s15  }
  0x1d   : > { %8963 = sst [smem:[#allocation14_spill]] %s5842_s23  ;;  %s4775_s28 = sshll.u32 %s337_s26, 8 }
  0x1e   : > { %s4856_s29 = sshll.u32 %s5698_s16, 8  ;;  %s341_s11 = scalar_lea.vmem [#allocation3], %s4775_s28 }
  0x1f   : > { %s346_s30 = scalar_lea.hbm %s8920_s0, %s4856_s29  ;;  %s349_s6 = sshll.u32 %s341_s11, 4  ;;  %s350_s6 = int_to_ptr.vmem [resolvable:$true] %s349_s6 }
  0x20   : > { %s347_s25 = sshll.u32 %s346_s30, 4  ;;  %p5849_p2 = pnand %p4919_p5, %p43_p7  ;;  %s348_s25 = int_to_ptr.hbm [resolvable:$true] %s347_s25 }
  0x21   : > { %s338_s22 = scalar_lea.sflag [#allocation4], %s337_s26  ;;  %s5598_s23 = sshra.s32 %s348_s25, 4  ;;  %s5599_s23 = int_to_ptr.hbm [resolvable:$true] %s5598_s23 }
  0x22   : > { %s5600_s15 = scalar_lea.hbm %s5599_s23, 256  ;;  %p5602_p10 = pneg %p5849_p2 }
  0x23   : > { %p5601_p9 = scmp.ne.s32.totalorder %s5599_s23, %s5600_s15  ;;  %s5605_s30 = scalar_lea.hbm %s8920_s0, 512 }
  0x24   : > { %p5606_p0 = scmp.lt.s32.totalorder %s5599_s23, %s8920_s0  ;;  %p5607_p5 = scmp.lt.s32.totalorder %s5605_s30, %s5600_s15 }
  0x25   : > { %p5603_p12 = pnand %p5602_p10, %p5601_p9 }
  0x26   : > { %p5608_p7 = por %p5607_p5, %p5606_p0 }
  0x27   : > { %p5604_p13 = pneg %p5603_p12 }
  0x29   : > { %p5609_p11 = pnand %p5608_p7, %p5604_p13 }
  0x2b   : > { %5612 = shalt.err (!%p5609_p11)
}
  0x2c   : > { %s8965_s26 = smov 8   ;;  %s8966_s18 = smov 128  }
  0x2d   : > { %4912 = dma.hbm_to_vmem [thread:$0]  (!%p5849_p2), %s348_s25, 4096, %s350_s6, %s338_s22, %s8966_s18, %s8966_s18, %s8965_s26  }
  0x2e   : > { %367 = sbr.rel (%p5807_p8) target bundleno = 2205 (0x89d), region = 60 }
  0x33   : > { %s5869_s29 = sand.u32 1, %s5690_s14  }
  0x34   : > { %s4779_s15 = sshll.u32 %s5869_s29, 8  ;;  %s370_s23 = scalar_lea.sflag [#allocation4], %s5869_s29 }
  0x35   : > { %s5875_s28 = scalar_lea.vmem [#allocation3], %s4779_s15 }
  0x36   : > { %5673 = dma.done.wait (%p5794_p4), %s370_s23, 4096  }
  0x37   : > { %5675 = vsyncadd (%p5794_p4), %s370_s23, 4294963200 }
  0x38   : > { %5677 = dma.done.wait (%p48_p1), [#allocation7], 18432  }
  0x39   : > { %5679 = vsyncadd (%p48_p1), [#allocation7], 4294948864  ;;  %p424_p8 = scmp.lt.s32.totalorder %s5785_s17, 1  ;;  %v614_v1 = vld [vmem:[%s8922_s2 + $0x78] sm:$0xff]  ;;  %v613_v2 = vld [vmem:[%s8922_s2 + $0x70] sm:$0xff]  ;;  %s5704_s12 = smov 64  }
  0x3a   : > { %615 = vmatpush.msra.mxu0 %v614_v1  ;;  %v612_v3 = vld [vmem:[%s8922_s2 + $0x68] sm:$0xff]  ;;  %v611_v4 = vld [vmem:[%s8922_s2 + $0x60] sm:$0xff]  ;;  %v610_v5 = vld [vmem:[%s8922_s2 + $0x58] sm:$0xff]  ;;  %vm460_vm0 = vcmask 523264   ;;  %vm463_vm1 = vcmask 517120   ;;  %vm640_vm4 = vcmask 130048  }
  0x3b   : > { %s425_s6 = scalar_select %p424_p8, %s5785_s17, 1  ;;  %v5907_v6 = vld [vmem:[%s5875_s28] sm:$0xff]  ;;  %v5910_v7 = vld [vmem:[%s5875_s28 + $0x8] sm:$0xff]  ;;  %v5920_v11 = vld [vmem:[%s5875_s28 + $0x10] sm:$0xff] }
  0x3c   : > { %616 = vmatpush.msra.mxu0 %v613_v2  ;;  %v609_v8 = vld [vmem:[%s8922_s2 + $0x50] sm:$0xff]  ;;  %v516_v9 = vsel %vm460_vm0, %v5907_v6, 0.0  ;;  %v517_v10 = vsel %vm460_vm0, %v5910_v7, 0.0  ;;  %v608_v13 = vld [vmem:[%s8922_s2 + $0x48] sm:$0xff]  ;;  %v519_v14 = vsel %vm460_vm0, %v5920_v11, 0.0  ;;  %v607_v17 = vld [vmem:[%s8922_s2 + $0x40] sm:$0xff] }
  0x3d   : > { %s426_s25 = scalar_lea.vmem %s8921_s1, %s425_s6  ;;  %v518_v12 = vadd.f32 %v517_v10, %v516_v9  ;;  %v5928_v15 = vld [vmem:[%s5875_s28 + $0x18] sm:$0xff]  ;;  %v5936_v19 = vld [vmem:[%s5875_s28 + $0x20] sm:$0xff]  ;;  %v606_v21 = vld [vmem:[%s8922_s2 + $0x38] sm:$0xff]  ;;  %s8703_s22 = scalar_lea.vmem [#allocation9], %s4779_s15 }
  0x3e   : > { %v5489_v0 = vld [vmem:[%s426_s25] ss:$0 sm:$0xff]  ;;  %617 = vmatpush.msra.mxu0 %v612_v3  ;;  %v521_v18 = vsel %vm460_vm0, %v5928_v15, 0.0  ;;  %v523_v22 = vsel %vm460_vm0, %v5936_v19, 0.0  ;;  %v5944_v23 = vld [vmem:[%s5875_s28 + $0x28] sm:$0xff]  ;;  %v605_v25 = vld [vmem:[%s8922_s2 + $0x30] sm:$0xff] }
  0x3f   : > { %595 = vrot.lane.b32.xlu0 %v5489_v0, %s5704_s12  ;;  %v520_v16 = vadd.f32 %v519_v14, %v518_v12  ;;  %v525_v26 = vsel %vm460_vm0, %v5944_v23, 0.0  ;;  %v5952_v27 = vld [vmem:[%s5875_s28 + $0x30] sm:$0xff]  ;;  %v604_v29 = vld [vmem:[%s8922_s2 + $0x28] sm:$0xff]  ;;  %v5968_v35 = vld [vmem:[%s5875_s28 + $0x40] sm:$0xff]  ;;  %s4857_s30 = sshll.u32 %s5785_s17, 8  ;;  %s4666_s23 = sshll.u32 %s8703_s22, 4  ;;  %s4667_s23 = int_to_ptr.vmem [resolvable:$true] %s4666_s23 }
  0x40   : > { %618 = vmatpush.msra.mxu0 %v611_v4  ;;  %v527_v30 = vsel %vm460_vm0, %v5952_v27, 0.0  ;;  %v5960_v31 = vld [vmem:[%s5875_s28 + $0x38] sm:$0xff]  ;;  %v603_v33 = vld [vmem:[%s8922_s2 + $0x20] sm:$0xff]  ;;  %v602_v37 = vld [vmem:[%s8922_s2 + $0x18] sm:$0xff]  ;;  %v531_v38 = vsel %vm460_vm0, %v5968_v35, 0.0  ;;  %s4665_s18 = scalar_lea.hbm %s8930_s10, %s4857_s30  ;;  %s4654_s17 = scalar_lea.sflag [#allocation5], %s5869_s29 }
  0x41   : > { %v522_v20 = vadd.f32 %v521_v18, %v520_v16  ;;  %v529_v34 = vsel %vm460_vm0, %v5960_v31, 0.0  ;;  %v5976_v39 = vld [vmem:[%s5875_s28 + $0x48] sm:$0xff]  ;;  %v601_v41 = vld [vmem:[%s8922_s2 + $0x10] sm:$0xff]  ;;  %v5984_v43 = vld [vmem:[%s5875_s28 + $0x50] sm:$0xff]  ;;  %s4668_s6 = sshll.u32 %s4665_s18, 4  ;;  %s5648_s15 = scalar_lea.hbm %s8930_s10, 512  ;;  %s4669_s6 = int_to_ptr.hbm [resolvable:$true] %s4668_s6 }
  0x42   : > { %619 = vmatpush.msra.mxu0 %v610_v5  ;;  %v533_v42 = vsel %vm460_vm0, %v5976_v39, 0.0  ;;  %v600_v45 = vld [vmem:[%s8922_s2 + $0x8] sm:$0xff]  ;;  %v535_v46 = vsel %vm460_vm0, %v5984_v43, 0.0  ;;  %v5997_v50 = vld [vmem:[%s5875_s28 + $0x60] sm:$0xff]  ;;  %v6002_v53 = vld [vmem:[%s5875_s28 + $0x68] sm:$0xff]  ;;  %s5642_s8 = sshra.s32 %s4669_s6, 4  ;;  %s5643_s8 = int_to_ptr.hbm [resolvable:$true] %s5642_s8 }
  0x43   : > { %v524_v24 = vadd.f32 %v523_v22, %v522_v20  ;;  %v5992_v47 = vld [vmem:[%s5875_s28 + $0x58] sm:$0xff]  ;;  %v539_v52 = vsel %vm460_vm0, %v5997_v50, 0.0  ;;  %v541_v55 = vsel %vm460_vm0, %v6002_v53, 0.0  ;;  %v6007_v56 = vld [vmem:[%s5875_s28 + $0x70] sm:$0xff]  ;;  %v6017_v62 = vld [vmem:[%s5875_s28 + $0x80] sm:$0xff]  ;;  %s5644_s24 = scalar_lea.hbm %s5643_s8, 256  ;;  %p5649_p2 = scmp.lt.s32.totalorder %s5643_s8, %s8930_s10 }
  0x44   : > { %620 = vmatpush.msra.mxu0 %v609_v8  ;;  %v537_v49 = vsel %vm460_vm0, %v5992_v47, 0.0  ;;  %v543_v58 = vsel %vm460_vm0, %v6007_v56, 0.0  ;;  %v6012_v59 = vld [vmem:[%s5875_s28 + $0x78] sm:$0xff]  ;;  %v547_v0 = vsel %vm460_vm0, %v6017_v62, 0.0  ;;  %v6022_v1 = vld [vmem:[%s5875_s28 + $0x88] sm:$0xff]  ;;  %v6027_v4 = vld [vmem:[%s5875_s28 + $0x90] sm:$0xff]  ;;  %p5645_p1 = scmp.ne.s32.totalorder %s5643_s8, %s5644_s24  ;;  %p5650_p9 = scmp.lt.s32.totalorder %s5648_s15, %s5644_s24 }
  0x45   : > { %v526_v28 = vadd.f32 %v525_v26, %v524_v24  ;;  %v545_v61 = vsel %vm460_vm0, %v6012_v59, 0.0  ;;  %v549_v3 = vsel %vm460_vm0, %v6022_v1, 0.0  ;;  %v551_v8 = vsel %vm460_vm0, %v6027_v4, 0.0  ;;  %v6032_v9 = vld [vmem:[%s5875_s28 + $0x98] sm:$0xff] }
  0x46   : > { %621 = vmatpush.msra.mxu0 %v608_v13  ;;  %v553_v12 = vsel %vm460_vm0, %v6032_v9, 0.0  ;;  %v6037_v13 = vld [vmem:[%s5875_s28 + $0xa0] sm:$0xff]  ;;  %p5646_p4 = pnand %p5645_p1, %p5836_p3  ;;  %p5651_p10 = por %p5650_p9, %p5649_p2 }
  0x47   : > { %v528_v32 = vadd.f32 %v527_v30, %v526_v28  ;;  %v555_v16 = vsel %vm460_vm0, %v6037_v13, 0.0 }
  0x48   : > { %622 = vmatpush.msra.mxu0 %v607_v17  ;;  %v6042_v17 = vld [vmem:[%s5875_s28 + $0xa8] sm:$0xff]  ;;  %p5647_p11 = pneg %p5646_p4 }
  0x49   : > { %v530_v36 = vadd.f32 %v529_v34, %v528_v32  ;;  %v557_v20 = vsel %vm460_vm0, %v6042_v17, 0.0 }
  0x4a   : > { %623 = vmatpush.msra.mxu0 %v606_v21  ;;  %v6047_v21 = vld [vmem:[%s5875_s28 + $0xb0] sm:$0xff]  ;;  %p5652_p12 = pnand %p5651_p10, %p5647_p11 }
  0x4b   : > { %v532_v40 = vadd.f32 %v531_v38, %v530_v36  ;;  %v559_v24 = vsel %vm460_vm0, %v6047_v21, 0.0 }
  0x4c   : > { %624 = vmatpush.msra.mxu0 %v605_v25  ;;  %v6052_v25 = vld [vmem:[%s5875_s28 + $0xb8] sm:$0xff] }
  0x4d   : > { %v534_v44 = vadd.f32 %v533_v42, %v532_v40  ;;  %v561_v28 = vsel %vm460_vm0, %v6052_v25, 0.0 }
  0x4e   : > { %625 = vmatpush.msra.mxu0 %v604_v29  ;;  %v6057_v29 = vld [vmem:[%s5875_s28 + $0xc0] sm:$0xff] }
  0x4f   : > { %v536_v48 = vadd.f32 %v535_v46, %v534_v44  ;;  %v563_v32 = vsel %vm460_vm0, %v6057_v29, 0.0 }
  0x50   : > { %626 = vmatpush.msra.mxu0 %v603_v33  ;;  %v6062_v33 = vld [vmem:[%s5875_s28 + $0xc8] sm:$0xff] }
  0x51   : > { %v538_v51 = vadd.f32 %v537_v49, %v536_v48  ;;  %v565_v36 = vsel %vm460_vm0, %v6062_v33, 0.0  ;;  %v6082_v49 = vld [vmem:[%s5875_s28 + $0xe8] sm:$0xff] }
  0x52   : > { %627 = vmatpush.msra.mxu0 %v602_v37  ;;  %v6067_v37 = vld [vmem:[%s5875_s28 + $0xd0] sm:$0xff] }
  0x53   : > { %v540_v54 = vadd.f32 %v539_v52, %v538_v51  ;;  %v567_v40 = vsel %vm460_vm0, %v6067_v37, 0.0  ;;  %v573_v52 = vsel %vm460_vm0, %v6082_v49, 0.0 }
  0x54   : > { %628 = vmatpush.msra.mxu0 %v601_v41  ;;  %v6072_v41 = vld [vmem:[%s5875_s28 + $0xd8] sm:$0xff] }
  0x55   : > { %v542_v57 = vadd.f32 %v541_v55, %v540_v54  ;;  %v569_v44 = vsel %vm460_vm0, %v6072_v41, 0.0  ;;  %v6087_v54 = vld [vmem:[%s5875_s28 + $0xf0] sm:$0xff] }
  0x56   : > { %629 = vmatpush.msra.mxu0 %v600_v45  ;;  %v6077_v45 = vld [vmem:[%s5875_s28 + $0xe0] sm:$0xff] }
  0x57   : > { %v544_v60 = vadd.f32 %v543_v58, %v542_v57  ;;  %v571_v48 = vsel %vm460_vm0, %v6077_v45, 0.0  ;;  %v575_v57 = vsel %vm460_vm0, %v6087_v54, 0.0  ;;  %v6092_v58 = vld [vmem:[%s5875_s28 + $0xf8] sm:$0xff] }
  0x59   : > { %v546_v63 = vadd.f32 %v545_v61, %v544_v60  ;;  %v577_v61 = vsel %vm460_vm0, %v6092_v58, 0.0 }
  0x5b   : > { %v548_v2 = vadd.f32 %v547_v0, %v546_v63  ;;  %v599_v63 = vld [vmem:[%s8922_s2] sm:$0xff]  ;;  %v5705_v0 = vmov 0.0  }
  0x5c   : > { %630 = vmatpush.msra.mxu0 %v599_v63  ;;  %507 = vst.msk [vmem:[#allocation2 + $0x168] sm:$0xff] %vm460_vm0, %v5705_v0 }
  0x5d   : > { %v550_v5 = vadd.f32 %v549_v3, %v548_v2  ;;  %v5706_v3 = vmov 256.0   ;;  %508 = vst.msk [vmem:[#allocation2 + $0x170] sm:$0xff] %vm460_vm0, %v5705_v0 }
  0x5e   : > { %5492 = vrcp.f32 %v5706_v3  ;;  %509 = vst.msk [vmem:[#allocation2 + $0x178] sm:$0x3] %vm463_vm1, %v5705_v0 }
  0x5f   : > { %v552_v10 = vadd.f32 %v551_v8, %v550_v5  ;;  %510 = vst.msk [vmem:[#allocation2 + $0x180] sm:$0xff] %vm460_vm0, %v5705_v0 }
  0x60   : > { %511 = vst.msk [vmem:[#allocation2 + $0x188] sm:$0xff] %vm460_vm0, %v5705_v0 }
  0x61   : > { %v554_v14 = vadd.f32 %v553_v12, %v552_v10  ;;  %512 = vst.msk [vmem:[#allocation2 + $0x190] sm:$0x3] %vm463_vm1, %v5705_v0 }
  0x62   : > { %461 = vst.msk [vmem:[#allocation2] sm:$0xff] %vm460_vm0, %v5705_v0 }
  0x63   : > { %v556_v18 = vadd.f32 %v555_v16, %v554_v14  ;;  %462 = vst.msk [vmem:[#allocation2 + $0x8] sm:$0xff] %vm460_vm0, %v5705_v0 }
  0x64   : > { %v5493_v8 = vpop.eup %5492  ;;  %464 = vst.msk [vmem:[#allocation2 + $0x10] sm:$0x3] %vm463_vm1, %v5705_v0 }
  0x65   : > { %v558_v22 = vadd.f32 %v557_v20, %v556_v18  ;;  %v586_v12 = vmul.f32 256.0, %v5493_v8  ;;  %465 = vst.msk [vmem:[#allocation2 + $0x18] sm:$0xff] %vm460_vm0, %v5705_v0  ;;  %vm590_vm2 = vweird.f32 %v5493_v8 }
  0x66   : > { %466 = vst.msk [vmem:[#allocation2 + $0x20] sm:$0xff] %vm460_vm0, %v5705_v0 }
  0x67   : > { %v560_v26 = vadd.f32 %v559_v24, %v558_v22  ;;  %467 = vst.msk [vmem:[#allocation2 + $0x28] sm:$0x3] %vm463_vm1, %v5705_v0  ;;  %v587_v16 = vsub.f32 1.0, %v586_v12 }
  0x68   : > { %468 = vst.msk [vmem:[#allocation2 + $0x30] sm:$0xff] %vm460_vm0, %v5705_v0 }
  0x69   : > { %v562_v30 = vadd.f32 %v561_v28, %v560_v26  ;;  %469 = vst.msk [vmem:[#allocation2 + $0x38] sm:$0xff] %vm460_vm0, %v5705_v0  ;;  %v588_v20 = vmul.f32 %v5493_v8, %v587_v16 }
  0x6a   : > { %470 = vst.msk [vmem:[#allocation2 + $0x40] sm:$0x3] %vm463_vm1, %v5705_v0 }
  0x6b   : > { %v564_v34 = vadd.f32 %v563_v32, %v562_v30  ;;  %471 = vst.msk [vmem:[#allocation2 + $0x48] sm:$0xff] %vm460_vm0, %v5705_v0  ;;  %v589_v24 = vadd.f32 %v5493_v8, %v588_v20 }
  0x6c   : > { %472 = vst.msk [vmem:[#allocation2 + $0x50] sm:$0xff] %vm460_vm0, %v5705_v0 }
  0x6d   : > { %v566_v38 = vadd.f32 %v565_v36, %v564_v34  ;;  %473 = vst.msk [vmem:[#allocation2 + $0x58] sm:$0x3] %vm463_vm1, %v5705_v0  ;;  %v6149_v28 = vsel %vm590_vm2, %v5493_v8, %v589_v24  ;;  %v639_v36 = vld [vmem:[%s8923_s3 + $0x8] sm:$0xff] }
  0x6e   : > { %474 = vst.msk [vmem:[#allocation2 + $0x60] sm:$0xff] %vm460_vm0, %v5705_v0  ;;  %658 = vmatpush.msra.mxu1 %v639_v36 }
  0x6f   : > { %v568_v42 = vadd.f32 %v567_v40, %v566_v38  ;;  %475 = vst.msk [vmem:[#allocation2 + $0x68] sm:$0xff] %vm460_vm0, %v5705_v0  ;;  %v638_v38 = vld [vmem:[%s8923_s3] sm:$0xff] }
  0x70   : > { %476 = vst.msk [vmem:[#allocation2 + $0x70] sm:$0x3] %vm463_vm1, %v5705_v0  ;;  %659 = vmatpush.msra.mxu1 %v638_v38 }
  0x71   : > { %v570_v46 = vadd.f32 %v569_v44, %v568_v42  ;;  %477 = vst.msk [vmem:[#allocation2 + $0x78] sm:$0xff] %vm460_vm0, %v5705_v0 }
  0x72   : > { %478 = vst.msk [vmem:[#allocation2 + $0x80] sm:$0xff] %vm460_vm0, %v5705_v0 }
  0x73   : > { %v572_v51 = vadd.f32 %v571_v48, %v570_v46  ;;  %479 = vst.msk [vmem:[#allocation2 + $0x88] sm:$0x3] %vm463_vm1, %v5705_v0 }
  0x74   : > { %480 = vst.msk [vmem:[#allocation2 + $0x90] sm:$0xff] %vm460_vm0, %v5705_v0 }
  0x75   : > { %v574_v55 = vadd.f32 %v573_v52, %v572_v51  ;;  %8967 = vst [vmem:[#allocation15_spill] sm:$0xff] %v6149_v28 }
  0x76   : > { %481 = vst.msk [vmem:[#allocation2 + $0x98] sm:$0xff] %vm460_vm0, %v5705_v0 }
  0x77   : > { %v576_v60 = vadd.f32 %v575_v57, %v574_v55  ;;  %482 = vst.msk [vmem:[#allocation2 + $0xa0] sm:$0x3] %vm463_vm1, %v5705_v0 }
  0x78   : > { %483 = vst.msk [vmem:[#allocation2 + $0xa8] sm:$0xff] %vm460_vm0, %v5705_v0 }
  0x79   : > { %v578_v2 = vadd.f32 %v577_v61, %v576_v60  ;;  %484 = vst.msk [vmem:[#allocation2 + $0xb0] sm:$0xff] %vm460_vm0, %v5705_v0 }
  0x7a   : > { %485 = vst.msk [vmem:[#allocation2 + $0xb8] sm:$0x3] %vm463_vm1, %v5705_v0 }
  0x7b   : > { %v579_v5 = vrot.slane %v578_v2, 4  ;;  %486 = vst.msk [vmem:[#allocation2 + $0xc0] sm:$0xff] %vm460_vm0, %v5705_v0 }
  0x7c   : > { %487 = vst.msk [vmem:[#allocation2 + $0xc8] sm:$0xff] %vm460_vm0, %v5705_v0 }
  0x7d   : > { %v580_v10 = vadd.f32 %v579_v5, %v578_v2  ;;  %488 = vst.msk [vmem:[#allocation2 + $0xd0] sm:$0x3] %vm463_vm1, %v5705_v0 }
  0x7e   : > { %489 = vst.msk [vmem:[#allocation2 + $0xd8] sm:$0xff] %vm460_vm0, %v5705_v0 }
  0x7f   : > { %v581_v14 = vrot.slane %v580_v10, 2  ;;  %490 = vst.msk [vmem:[#allocation2 + $0xe0] sm:$0xff] %vm460_vm0, %v5705_v0 }
  0x80   : > { %491 = vst.msk [vmem:[#allocation2 + $0xe8] sm:$0x3] %vm463_vm1, %v5705_v0 }
  0x81   : > { %v582_v18 = vadd.f32 %v581_v14, %v580_v10  ;;  %492 = vst.msk [vmem:[#allocation2 + $0xf0] sm:$0xff] %vm460_vm0, %v5705_v0 }
  0x82   : > { %493 = vst.msk [vmem:[#allocation2 + $0xf8] sm:$0xff] %vm460_vm0, %v5705_v0 }
  0x83   : > { %v583_v22 = vrot.slane %v582_v18, 1  ;;  %494 = vst.msk [vmem:[#allocation2 + $0x100] sm:$0x3] %vm463_vm1, %v5705_v0 }
  0x84   : > { %495 = vst.msk [vmem:[#allocation2 + $0x108] sm:$0xff] %vm460_vm0, %v5705_v0 }
  0x85   : > { %v584_v26 = vadd.f32 %v583_v22, %v582_v18  ;;  %496 = vst.msk [vmem:[#allocation2 + $0x110] sm:$0xff] %vm460_vm0, %v5705_v0 }
  0x86   : > { %497 = vst.msk [vmem:[#allocation2 + $0x118] sm:$0x3] %vm463_vm1, %v5705_v0 }
  0x87   : > { %v592_v30 = vmul.f32 %v6149_v28, %v584_v26  ;;  %498 = vst.msk [vmem:[#allocation2 + $0x120] sm:$0xff] %vm460_vm0, %v5705_v0 }
  0x88   : > { %499 = vst.msk [vmem:[#allocation2 + $0x128] sm:$0xff] %vm460_vm0, %v5705_v0 }
  0x89   : > { %500 = vst.msk [vmem:[#allocation2 + $0x130] sm:$0x3] %vm463_vm1, %v5705_v0 }
  0x8a   : > { %501 = vst.msk [vmem:[#allocation2 + $0x138] sm:$0xff] %vm460_vm0, %v5705_v0 }
  0x8b   : > { %502 = vst.msk [vmem:[#allocation2 + $0x140] sm:$0xff] %vm460_vm0, %v5705_v0 }
  0x8c   : > { %503 = vst.msk [vmem:[#allocation2 + $0x148] sm:$0x3] %vm463_vm1, %v5705_v0 }
  0x8d   : > { %504 = vst.msk [vmem:[#allocation2 + $0x150] sm:$0xff] %vm460_vm0, %v5705_v0 }
  0x8e   : > { %505 = vst.msk [vmem:[#allocation2 + $0x158] sm:$0xff] %vm460_vm0, %v5705_v0 }
  0x8f   : > { %506 = vst.msk [vmem:[#allocation2 + $0x160] sm:$0x3] %vm463_vm1, %v5705_v0 }
  0x90   : > { %513 = vst.msk [vmem:[#allocation2 + $0x198] sm:$0xff] %vm460_vm0, %v5705_v0 }
  0x91   : > { %514 = vst.msk [vmem:[#allocation2 + $0x1a0] sm:$0xff] %vm460_vm0, %v5705_v0 }
  0x92   : > { %515 = vst.msk [vmem:[#allocation2 + $0x1a8] sm:$0x3] %vm463_vm1, %v5705_v0 }
  0xb1   : > { %v6164_v32 = vpop.permute.xlu0 %595 }
  0xb2   : > { %8968 = vst [vmem:[#allocation16_spill] sm:$0xff] %v6164_v32  ;;  %v598_v34 = vsel %vm460_vm0, %v592_v30, %v6164_v32 }
  0xb3   : > { %631 = vmatmul.f32.vlgmr.msra.gmra.mxu0 %v598_v34 }
 0x130   : > { %v632_v40 = vpop.f32.mrf.mxu0 }
 0x131   : > { %v636_v42 = vmul.f32 0.1, %v632_v40  ;;  %vm635_vm3 = vcmp.gt.f32.partialorder %v632_v40, 0.0 }
 0x133   : > { %v637_v44 = vsel %vm635_vm3, %v632_v40, %v636_v42 }
 0x134   : > { %4783 = vmatmul.msk.f32.vlgmr.msra.gmra.mxu1 %vm640_vm4, %v637_v44 }
 0x1b1   : > { %v661_v46 = vpop.f32.mrf.mxu1 }
 0x1b2   : > { %v4784_v48 = vmul.f32 -1.442695, %v661_v46 }
 0x1b4   : > { %5494 = vpow2.f32 %v4784_v48 }
 0x1ba   : > { %v5495_v51 = vpop.eup %5494 }
 0x1bb   : > { %v667_v52 = vadd.f32 1.0, %v5495_v51 }
 0x1bd   : > { %5496 = vrcp.f32 %v667_v52  ;;  %v679_v61 = vand.u32 2147483648, %v667_v52  ;;  %v677_v0 = vand.u32 2147483647, %v667_v52  ;;  %vm673_vm6 = vweird.f32 %v667_v52 }
 0x1bf   : > { %v680_v3 = vor.u32 1.1754944e-38, %v679_v61  ;;  %vm678_vm8 = vcmp.eq.f32.partialorder %v677_v0, 8.507059e+37 }
 0x1c3   : > { %v5497_v55 = vpop.eup %5496 }
 0x1c4   : > { %v669_v57 = vmul.f32 %v5497_v55, %v667_v52  ;;  %vm674_vm5 = vweird.f32 %v5497_v55 }
 0x1c5   : > { %vm675_vm7 = vmor %vm673_vm6, %vm674_vm5 }
 0x1c6   : > { %v670_v60 = vsub.f32 1.0, %v669_v57 }
 0x1c8   : > { %v671_v63 = vmul.f32 %v5497_v55, %v670_v60 }
 0x1ca   : > { %v672_v2 = vadd.f32 %v5497_v55, %v671_v63 }
 0x1cc   : > { %v676_v5 = vsel %vm675_vm7, %v5497_v55, %v672_v2 }
 0x1cd   : > { %v681_v8 = vsel %vm678_vm8, %v680_v3, %v676_v5 }
 0x1ce   : > { %v683_v10 = vadd.f32 1.0, %v681_v8 }
 0x1d0   : > { %v6221_v12 = vperm.slane %v683_v10, 0 }
 0x1d2   : > { %v706_v14 = vmul.f32 %v6221_v12, %v6042_v17  ;;  %v707_v16 = vmul.f32 %v6221_v12, %v6047_v21  ;;  %v696_v18 = vmul.f32 %v6221_v12, %v5992_v47  ;;  %v708_v20 = vmul.f32 %v6221_v12, %v6052_v25 }
 0x1d3   : > { %v709_v22 = vmul.f32 %v6221_v12, %v6057_v29  ;;  %v710_v24 = vmul.f32 %v6221_v12, %v6062_v33  ;;  %v711_v17 = vmul.f32 %v6221_v12, %v6067_v37  ;;  %v712_v21 = vmul.f32 %v6221_v12, %v6072_v41 }
 0x1d4   : > { %vm728_vm9 = vcmp.gt.f32.partialorder %v696_v18, 0.0  ;;  %v760_v26 = vmul.f32 0.1, %v696_v18  ;;  %v713_v47 = vmul.f32 %v6221_v12, %v6077_v45  ;;  %v6243_v25 = vmul.f32 %v6221_v12, %v6082_v49 }
 0x1d5   : > { %v6247_v29 = vmul.f32 %v6221_v12, %v6087_v54  ;;  %vm738_vm10 = vcmp.gt.f32.partialorder %v706_v14, 0.0  ;;  %vm739_vm11 = vcmp.gt.f32.partialorder %v707_v16, 0.0  ;;  %vm740_vm12 = vcmp.gt.f32.partialorder %v708_v20, 0.0 }
 0x1d6   : > { %v792_v33 = vsel %vm728_vm9, %v696_v18, %v760_v26  ;;  %vm741_vm13 = vcmp.gt.f32.partialorder %v709_v22, 0.0  ;;  %v770_v37 = vmul.f32 0.1, %v706_v14  ;;  %v695_v41 = vmul.f32 %v6221_v12, %v5984_v43 }
 0x1d7   : > { %825 = vst.msk [vmem:[#allocation2 + $0x99] sm:$0xff] %vm460_vm0, %v792_v33  ;;  %v6254_v45 = vmul.f32 %v6221_v12, %v6092_v58  ;;  %v771_v49 = vmul.f32 0.1, %v707_v16  ;;  %v772_v30 = vmul.f32 0.1, %v708_v20  ;;  %vm742_vm14 = vcmp.gt.f32.partialorder %v710_v24, 0.0 }
 0x1d8   : > { %v773_v34 = vmul.f32 0.1, %v709_v22  ;;  %vm743_vm15 = vcmp.gt.f32.partialorder %v711_v17, 0.0  ;;  %v774_v54 = vmul.f32 0.1, %v710_v24  ;;  %v802_v36 = vsel %vm738_vm10, %v706_v14, %v770_v37 }
 0x1d9   : > { %vm744_vm1 = vcmp.gt.f32.partialorder %v712_v21, 0.0  ;;  %v803_v38 = vsel %vm739_vm11, %v707_v16, %v771_v49  ;;  %v685_v40 = vmul.f32 %v6221_v12, %v5907_v6  ;;  %v698_v42 = vmul.f32 %v6221_v12, %v6002_v53  ;;  %835 = vst.msk [vmem:[#allocation2 + $0x111] sm:$0xff] %vm460_vm0, %v802_v36 }
 0x1da   : > { %vm745_vm2 = vcmp.gt.f32.partialorder %v713_v47, 0.0  ;;  %vm727_vm3 = vcmp.gt.f32.partialorder %v695_v41, 0.0  ;;  %v759_v43 = vmul.f32 0.1, %v695_v41  ;;  %v804_v58 = vsel %vm740_vm12, %v708_v20, %v772_v30  ;;  %836 = vst.msk [vmem:[#allocation2 + $0x121] sm:$0xff] %vm460_vm0, %v803_v38 }
 0x1db   : > { %vm746_vm5 = vcmp.gt.f32.partialorder %v6243_v25, 0.0  ;;  %vm747_vm6 = vcmp.gt.f32.partialorder %v6247_v29, 0.0  ;;  %v775_v44 = vmul.f32 0.1, %v711_v17  ;;  %v805_v46 = vsel %vm741_vm13, %v709_v22, %v773_v34  ;;  %837 = vst.msk [vmem:[#allocation2 + $0x129] sm:$0xff] %vm460_vm0, %v804_v58 }
 0x1dc   : > { %v776_v6 = vmul.f32 0.1, %v712_v21  ;;  %v777_v48 = vmul.f32 0.1, %v713_v47  ;;  %v791_v51 = vsel %vm727_vm3, %v695_v41, %v759_v43  ;;  %v806_v53 = vsel %vm742_vm14, %v710_v24, %v774_v54  ;;  %838 = vst.msk [vmem:[#allocation2 + $0x139] sm:$0xff] %vm460_vm0, %v805_v46 }
 0x1dd   : > { %v6270_v52 = vmul.f32 %v6221_v12, %v6022_v1  ;;  %824 = vst.msk [vmem:[#allocation2 + $0x91] sm:$0xff] %vm460_vm0, %v791_v51  ;;  %vm717_vm7 = vcmp.gt.f32.partialorder %v685_v40, 0.0  ;;  %vm730_vm8 = vcmp.gt.f32.partialorder %v698_v42, 0.0  ;;  %v749_v57 = vmul.f32 0.1, %v685_v40 }
 0x1de   : > { %v891_v55 = vld [vmem:[#allocation2 + $0x99] sm:$0xff]  ;;  %v778_v60 = vmul.f32 0.1, %v6243_v25  ;;  %v762_v61 = vmul.f32 0.1, %v698_v42  ;;  %v697_v63 = vmul.f32 %v6221_v12, %v5997_v50  ;;  %v687_v1 = vmul.f32 %v6221_v12, %v5920_v11  ;;  %839 = vst.msk [vmem:[#allocation2 + $0x141] sm:$0xff] %vm460_vm0, %v806_v53 }
 0x1df   : > { %1193 = vrot.lane.b32.xlu1 %v891_v55, %s5704_s12  ;;  %v779_v0 = vmul.f32 0.1, %v6247_v29  ;;  %v807_v2 = vsel %vm743_vm15, %v711_v17, %v775_v44  ;;  %v781_v3 = vsel %vm717_vm7, %v685_v40, %v749_v57  ;;  %v700_v5 = vmul.f32 %v6221_v12, %v6012_v59 }
 0x1e0   : > { %v780_v8 = vmul.f32 0.1, %v6254_v45  ;;  %v808_v10 = vsel %vm744_vm1, %v712_v21, %v776_v6  ;;  %v794_v14 = vsel %vm730_vm8, %v698_v42, %v762_v61  ;;  %814 = vst.msk [vmem:[#allocation2 + $0x19] sm:$0xff] %vm460_vm0, %v781_v3  ;;  %v686_v11 = vmul.f32 %v6221_v12, %v5910_v7 }
 0x1e1   : > { %vm748_vm9 = vcmp.gt.f32.partialorder %v6254_v45, 0.0  ;;  %v809_v50 = vsel %vm745_vm2, %v713_v47, %v777_v48  ;;  %827 = vst.msk [vmem:[#allocation2 + $0xb1] sm:$0xff] %vm460_vm0, %v794_v14  ;;  %v761_v16 = vmul.f32 0.1, %v697_v63  ;;  %v699_v59 = vmul.f32 %v6221_v12, %v6007_v56 }
 0x1e2   : > { %v810_v18 = vsel %vm746_vm5, %v6243_v25, %v778_v60  ;;  %840 = vst.msk [vmem:[#allocation2 + $0x151] sm:$0xff] %vm460_vm0, %v807_v2  ;;  %vm729_vm10 = vcmp.gt.f32.partialorder %v697_v63, 0.0  ;;  %v751_v20 = vmul.f32 0.1, %v687_v1  ;;  %v688_v7 = vmul.f32 %v6221_v12, %v5928_v15 }
 0x1e3   : > { %v811_v22 = vsel %vm747_vm6, %v6247_v29, %v779_v0  ;;  %841 = vst.msk [vmem:[#allocation2 + $0x159] sm:$0xff] %vm460_vm0, %v808_v10  ;;  %vm719_vm11 = vcmp.gt.f32.partialorder %v687_v1, 0.0  ;;  %v764_v24 = vmul.f32 0.1, %v700_v5  ;;  %v701_v56 = vmul.f32 %v6221_v12, %v6017_v62 }
 0x1e4   : > { %v703_v26 = vmul.f32 %v6221_v12, %v6027_v4  ;;  %v6309_v17 = vld [vmem:[#allocation2 + $0x91] sm:$0xff]  ;;  %v812_v15 = vsel %vm748_vm9, %v6254_v45, %v780_v8  ;;  %842 = vst.msk [vmem:[#allocation2 + $0x169] sm:$0xff] %vm460_vm0, %v809_v50  ;;  %vm732_vm12 = vcmp.gt.f32.partialorder %v700_v5, 0.0  ;;  %v750_v21 = vmul.f32 0.1, %v686_v11 }
 0x1e5   : > { %1191 = vrot.lane.b32.xlu0 %v6309_v17, %s5704_s12  ;;  %843 = vst.msk [vmem:[#allocation2 + $0x171] sm:$0xff] %vm460_vm0, %v810_v18  ;;  %v793_v62 = vsel %vm729_vm10, %v697_v63, %v761_v16  ;;  %vm718_vm13 = vcmp.gt.f32.partialorder %v686_v11, 0.0  ;;  %v763_v47 = vmul.f32 0.1, %v699_v59  ;;  %v689_v4 = vmul.f32 %v6221_v12, %v5936_v19 }
 0x1e6   : > { %v704_v25 = vmul.f32 %v6221_v12, %v6032_v9  ;;  %844 = vst.msk [vmem:[#allocation2 + $0x181] sm:$0xff] %vm460_vm0, %v811_v22  ;;  %v783_v29 = vsel %vm719_vm11, %v687_v1, %v751_v20  ;;  %vm731_vm14 = vcmp.gt.f32.partialorder %v699_v59, 0.0  ;;  %v752_v33 = vmul.f32 0.1, %v688_v7 }
 0x1e7   : > { %v6325_v37 = vld [vmem:[#allocation2 + $0x18] sm:$0xff]  ;;  %845 = vst.msk [vmem:[#allocation2 + $0x189] sm:$0xff] %vm460_vm0, %v812_v15  ;;  %v796_v41 = vsel %vm732_vm12, %v700_v5, %v764_v24  ;;  %vm720_vm15 = vcmp.gt.f32.partialorder %v688_v7, 0.0  ;;  %v765_v45 = vmul.f32 0.1, %v701_v56  ;;  %v690_v49 = vmul.f32 %v6221_v12, %v5944_v23 }
 0x1e8   : > { %v705_v19 = vmul.f32 %v6221_v12, %v6037_v13  ;;  %v6332_v9 = vld [vmem:[#allocation2 + $0xb1] sm:$0xff]  ;;  %826 = vst.msk [vmem:[#allocation2 + $0xa9] sm:$0xff] %vm460_vm0, %v793_v62  ;;  %v782_v30 = vsel %vm718_vm13, %v686_v11, %v750_v21  ;;  %vm733_vm1 = vcmp.gt.f32.partialorder %v701_v56, 0.0  ;;  %v767_v34 = vmul.f32 0.1, %v703_v26  ;;  %v880_v21 = vld [vmem:[#allocation2 + $0x19] sm:$0xff] }
 0x1e9   : > { %v4964_v54 = vpack.i.bf16 %v6325_v37, %v6332_v9  ;;  %816 = vst.msk [vmem:[#allocation2 + $0x31] sm:$0xff] %vm460_vm0, %v783_v29  ;;  %v795_v36 = vsel %vm731_vm14, %v699_v59, %v763_v47  ;;  %vm735_vm2 = vcmp.gt.f32.partialorder %v703_v26, 0.0  ;;  %v753_v23 = vmul.f32 0.1, %v689_v4  ;;  %v878_v59 = vld [vmem:[#allocation2 + $0x1] sm:$0xff]  ;;  %v879_v47 = vld [vmem:[#allocation2 + $0x9] sm:$0xff] }
 0x1ea   : > { %829 = vst.msk [vmem:[#allocation2 + $0xc9] sm:$0xff] %vm460_vm0, %v796_v41  ;;  %v784_v13 = vsel %vm720_vm15, %v688_v7, %v752_v33  ;;  %vm721_vm3 = vcmp.gt.f32.partialorder %v689_v4, 0.0  ;;  %v766_v38 = vmul.f32 0.1, %v6270_v52  ;;  %v691_v40 = vmul.f32 %v6221_v12, %v5952_v27  ;;  %v6413_v29 = vld [vmem:[#allocation2 + $0x111] sm:$0xff] }
 0x1eb   : > { %4965 = vrot.lane.b32.xlu2 %v4964_v54, %s5704_s12  ;;  %815 = vst.msk [vmem:[#allocation2 + $0x21] sm:$0xff] %vm460_vm0, %v782_v30  ;;  %v797_v42 = vsel %vm733_vm1, %v701_v56, %v765_v45  ;;  %vm734_vm5 = vcmp.gt.f32.partialorder %v6270_v52, 0.0  ;;  %v754_v43 = vmul.f32 0.1, %v690_v49  ;;  %v692_v58 = vmul.f32 %v6221_v12, %v5960_v31 }
 0x1ec   : > { %v768_v44 = vmul.f32 0.1, %v704_v25  ;;  %828 = vst.msk [vmem:[#allocation2 + $0xc1] sm:$0xff] %vm460_vm0, %v795_v36  ;;  %v799_v46 = vsel %vm735_vm2, %v703_v26, %v767_v34  ;;  %vm722_vm6 = vcmp.gt.f32.partialorder %v690_v49, 0.0  ;;  %v693_v6 = vmul.f32 %v6221_v12, %v5968_v35  ;;  %v6425_v36 = vld [vmem:[#allocation2 + $0x129] sm:$0xff] }
 0x1ed   : > { %v769_v27 = vmul.f32 0.1, %v705_v19  ;;  %817 = vst.msk [vmem:[#allocation2 + $0x39] sm:$0xff] %vm460_vm0, %v784_v13  ;;  %v785_v48 = vsel %vm721_vm3, %v689_v4, %v753_v23  ;;  %vm736_vm7 = vcmp.gt.f32.partialorder %v704_v25, 0.0  ;;  %v694_v51 = vmul.f32 %v6221_v12, %v5976_v39 }
 0x1ee   : > { %vm737_vm8 = vcmp.gt.f32.partialorder %v705_v19, 0.0  ;;  %830 = vst.msk [vmem:[#allocation2 + $0xd9] sm:$0xff] %vm460_vm0, %v797_v42  ;;  %v798_v31 = vsel %vm734_vm5, %v6270_v52, %v766_v38  ;;  %v755_v53 = vmul.f32 0.1, %v691_v40  ;;  %v786_v35 = vsel %vm722_vm6, %v690_v49, %v754_v43  ;;  %v1806_v38 = vld [vmem:[#allocation6 + $0xf8] sm:$0xff]  ;;  %v1805_v42 = vld [vmem:[#allocation6 + $0xf0] sm:$0xff] }
 0x1ef   : > { %v6358_v55 = vld [vmem:[#allocation2 + $0xa9] sm:$0xff]  ;;  %832 = vst.msk [vmem:[#allocation2 + $0xf1] sm:$0xff] %vm460_vm0, %v799_v46  ;;  %vm723_vm9 = vcmp.gt.f32.partialorder %v691_v40, 0.0  ;;  %v756_v57 = vmul.f32 0.1, %v692_v58  ;;  %v800_v39 = vsel %vm736_vm7, %v704_v25, %v768_v44  ;;  %vm724_vm10 = vcmp.gt.f32.partialorder %v692_v58, 0.0  ;;  %2060 = vmatpush.msra.mxu3 %v1806_v38 }
 0x1f0   : > { %1195 = vrot.lane.b32.xlu1 %v6358_v55, %s5704_s12  ;;  %v6363_v60 = vld [vmem:[#allocation2 + $0x30] sm:$0xff]  ;;  %818 = vst.msk [vmem:[#allocation2 + $0x49] sm:$0xff] %vm460_vm0, %v785_v48  ;;  %v757_v12 = vmul.f32 0.1, %v693_v6  ;;  %v801_v52 = vsel %vm737_vm8, %v705_v19, %v769_v27  ;;  %vm725_vm11 = vcmp.gt.f32.partialorder %v693_v6, 0.0  ;;  %v787_v2 = vsel %vm723_vm9, %v691_v40, %v755_v53  ;;  %v6420_v19 = vld [vmem:[#allocation2 + $0x121] sm:$0xff] }
 0x1f1   : > { %v6366_v61 = vld [vmem:[#allocation2 + $0xc9] sm:$0xff]  ;;  %831 = vst.msk [vmem:[#allocation2 + $0xe1] sm:$0xff] %vm460_vm0, %v798_v31  ;;  %v758_v63 = vmul.f32 0.1, %v694_v51  ;;  %vm726_vm12 = vcmp.gt.f32.partialorder %v694_v51, 0.0  ;;  %v788_v5 = vsel %vm724_vm10, %v692_v58, %v756_v57  ;;  %v6418_v49 = vld [vmem:[#allocation2 + $0x31] sm:$0xff]  ;;  %2061 = vmatpush.msra.mxu3 %v1805_v42 }
 0x1f2   : > { %v4974_v1 = vpack.i.bf16 %v6363_v60, %v6366_v61  ;;  %v6372_v0 = vld [vmem:[#allocation2 + $0x20] sm:$0xff]  ;;  %819 = vst.msk [vmem:[#allocation2 + $0x51] sm:$0xff] %vm460_vm0, %v786_v35  ;;  %v789_v14 = vsel %vm725_vm11, %v693_v6, %v757_v12  ;;  %v5019_v54 = vpack.i.bf16 %v6418_v49, %v6420_v19  ;;  %v1804_v43 = vld [vmem:[#allocation6 + $0xe8] sm:$0xff]  ;;  %v1803_v46 = vld [vmem:[#allocation6 + $0xe0] sm:$0xff] }
 0x1f3   : > { %v6376_v3 = vld [vmem:[#allocation2 + $0xc1] sm:$0xff]  ;;  %833 = vst.msk [vmem:[#allocation2 + $0xf9] sm:$0xff] %vm460_vm0, %v800_v39  ;;  %v790_v50 = vsel %vm726_vm12, %v694_v51, %v758_v63  ;;  %v6432_v44 = vld [vmem:[#allocation2 + $0x139] sm:$0xff]  ;;  %v6437_v27 = vld [vmem:[#allocation2 + $0x90] sm:$0xff]  ;;  %2062 = vmatpush.msra.mxu3 %v1804_v43 }
 0x1f4   : > { %4975 = vrot.lane.b32.xlu0 %v4974_v1, %s5704_s12  ;;  %v4969_v8 = vpack.i.bf16 %v6372_v0, %v6376_v3  ;;  %v6382_v10 = vld [vmem:[#allocation2 + $0x38] sm:$0xff]  ;;  %834 = vst.msk [vmem:[#allocation2 + $0x109] sm:$0xff] %vm460_vm0, %v801_v52  ;;  %v881_v30 = vld [vmem:[#allocation2 + $0x21] sm:$0xff]  ;;  %v1799_v1 = vld [vmem:[#allocation6 + $0xc0] sm:$0xff] }
 0x1f5   : > { %v6385_v11 = vld [vmem:[#allocation2 + $0xd9] sm:$0xff]  ;;  %820 = vst.msk [vmem:[#allocation2 + $0x61] sm:$0xff] %vm460_vm0, %v787_v2  ;;  %v6441_v51 = vld [vmem:[#allocation2 + $0x141] sm:$0xff]  ;;  %2063 = vmatpush.msra.mxu3 %v1803_v46  ;;  %v6453_v63 = vld [vmem:[#allocation2 + $0x151] sm:$0xff] }
 0x1f6   : > { %4970 = vrot.lane.b32.xlu2 %v4969_v8, %s5704_s12  ;;  %v4979_v16 = vpack.i.bf16 %v6382_v10, %v6385_v11  ;;  %821 = vst.msk [vmem:[#allocation2 + $0x69] sm:$0xff] %vm460_vm0, %v788_v5  ;;  %v6392_v18 = vld [vmem:[#allocation2 + $0xf1] sm:$0xff]  ;;  %v6435_v6 = vld [vmem:[#allocation2 + $0x39] sm:$0xff]  ;;  %v1802_v35 = vld [vmem:[#allocation6 + $0xd8] sm:$0xff] }
 0x1f7   : > { %822 = vst.msk [vmem:[#allocation2 + $0x79] sm:$0xff] %vm460_vm0, %v789_v14  ;;  %v6399_v7 = vld [vmem:[#allocation2 + $0x48] sm:$0xff]  ;;  %v4989_v22 = vpack.i.bf16 %v878_v59, %v6392_v18  ;;  %v6443_v31 = vld [vmem:[#allocation2 + $0x98] sm:$0xff]  ;;  %v5029_v53 = vpack.i.bf16 %v6437_v27, %v6435_v6  ;;  %2064 = vmatpush.msra.mxu3 %v1802_v35  ;;  %v1801_v39 = vld [vmem:[#allocation6 + $0xd0] sm:$0xff] }
 0x1f8   : > { %4980 = vrot.lane.b32.xlu1 %v4979_v16, %s5704_s12  ;;  %823 = vst.msk [vmem:[#allocation2 + $0x81] sm:$0xff] %vm460_vm0, %v790_v50  ;;  %v6397_v20 = vld [vmem:[#allocation2 + $0xe1] sm:$0xff]  ;;  %v6430_v58 = vld [vmem:[#allocation2 + $0x49] sm:$0xff]  ;;  %v5039_v57 = vpack.i.bf16 %v6441_v51, %v6443_v31  ;;  %v1800_v12 = vld [vmem:[#allocation6 + $0xc8] sm:$0xff] }
 0x1f9   : > { %8969 = vst [vmem:[#allocation17_spill] sm:$0xff] %v6399_v7  ;;  %v947_v56 = vld [vmem:[#allocation2 + $0x50] sm:$0xff]  ;;  %v4984_v26 = vpack.i.bf16 %v6399_v7, %v6397_v20  ;;  %v5034_v48 = vpack.i.bf16 %v6430_v58, %v6432_v44  ;;  %2065 = vmatpush.msra.mxu3 %v1801_v39  ;;  %v6458_v5 = vld [vmem:[#allocation2 + $0xa8] sm:$0xff]  ;;  %v6462_v14 = vld [vmem:[#allocation2 + $0x159] sm:$0xff] }
 0x1fa   : > { %v6402_v24 = vld [vmem:[#allocation2 + $0xf9] sm:$0xff]  ;;  %v6456_v2 = vld [vmem:[#allocation2 + $0x51] sm:$0xff]  ;;  %v1798_v59 = vld [vmem:[#allocation6 + $0xb8] sm:$0xff] }
 0x1fb   : > { %v4994_v15 = vpack.i.bf16 %v6402_v24, %v947_v56  ;;  %v6409_v62 = vld [vmem:[#allocation2 + $0x109] sm:$0xff]  ;;  %2066 = vmatpush.msra.mxu3 %v1800_v12  ;;  %v5044_v16 = vpack.i.bf16 %v6458_v5, %v6456_v2  ;;  %v1797_v56 = vld [vmem:[#allocation6 + $0xb0] sm:$0xff]  ;;  %v1792_v46 = vld [vmem:[#allocation6 + $0x88] sm:$0xff] }
 0x1fc   : > { %4990 = vrot.lane.b32.xlu0 %v4989_v22, %s5704_s12  ;;  %v948_v4 = vld [vmem:[#allocation2 + $0x60] sm:$0xff]  ;;  %v5004_v25 = vpack.i.bf16 %v880_v21, %v6409_v62  ;;  %v6464_v50 = vld [vmem:[#allocation2 + $0xb0] sm:$0xff]  ;;  %v1786_v43 = vld [vmem:[#allocation6 + $0x58] sm:$0xff] }
 0x1fd   : > { %v949_v33 = vld [vmem:[#allocation2 + $0x68] sm:$0xff]  ;;  %v4999_v41 = vpack.i.bf16 %v948_v4, %v879_v47  ;;  %2067 = vmatpush.msra.mxu3 %v1799_v1  ;;  %v5054_v22 = vpack.i.bf16 %v6462_v14, %v6464_v50  ;;  %v1789_v4 = vld [vmem:[#allocation6 + $0x70] sm:$0xff]  ;;  %v6494_v35 = vld [vmem:[#allocation2 + $0xd8] sm:$0xff] }
 0x1fe   : > { %4985 = vrot.lane.b32.xlu2 %v4984_v26, %s5704_s12  ;;  %v5009_v45 = vpack.i.bf16 %v6413_v29, %v949_v33  ;;  %v950_v34 = vld [vmem:[#allocation2 + $0x78] sm:$0xff]  ;;  %v6451_v52 = vld [vmem:[#allocation2 + $0x61] sm:$0xff]  ;;  %v6474_v47 = vld [vmem:[#allocation2 + $0x169] sm:$0xff] }
 0x1ff   : > { %v951_v23 = vld [vmem:[#allocation2 + $0x80] sm:$0xff]  ;;  %v5014_v13 = vpack.i.bf16 %v950_v34, %v881_v30  ;;  %v5049_v8 = vpack.i.bf16 %v6451_v52, %v6453_v63  ;;  %2068 = vmatpush.msra.mxu3 %v1798_v59  ;;  %v1790_v26 = vld [vmem:[#allocation6 + $0x78] sm:$0xff]  ;;  %v6483_v30 = vld [vmem:[#allocation2 + $0x171] sm:$0xff] }
 0x200   : > { %4995 = vrot.lane.b32.xlu1 %v4994_v15, %s5704_s12  ;;  %v5024_v40 = vpack.i.bf16 %v6425_v36, %v951_v23  ;;  %v1796_v15 = vld [vmem:[#allocation6 + $0xa8] sm:$0xff]  ;;  %4858 = vmatpush.msra.mxu2 %v1790_v26  ;;  %v6477_v33 = vld [vmem:[#allocation2 + $0x69] sm:$0xff]  ;;  %v1793_v42 = vld [vmem:[#allocation6 + $0x90] sm:$0xff] }
 0x201   : > { %v6472_v21 = vld [vmem:[#allocation2 + $0x79] sm:$0xff]  ;;  %2069 = vmatpush.msra.mxu3 %v1797_v56  ;;  %1947 = vmatpush.msrb.mxu1 %v1790_v26  ;;  %v6485_v34 = vld [vmem:[#allocation2 + $0xc8] sm:$0xff]  ;;  %v1783_v12 = vld [vmem:[#allocation6 + $0x40] sm:$0xff] }
 0x202   : > { %4859 = vmatpush.msra.mxu2 %v1789_v4  ;;  %v1788_v23 = vld [vmem:[#allocation6 + $0x68] sm:$0xff]  ;;  %v5069_v38 = vpack.i.bf16 %v6483_v30, %v6485_v34  ;;  %v6498_v39 = vld [vmem:[#allocation2 + $0x81] sm:$0xff]  ;;  %v1779_v26 = vld [vmem:[#allocation6 + $0x20] sm:$0xff] }
 0x203   : > { %2070 = vmatpush.msra.mxu3 %v1796_v15  ;;  %1948 = vmatpush.msrb.mxu1 %v1789_v4  ;;  %v6502_v1 = vld [vmem:[#allocation2 + $0x1a] sm:$0xff]  ;;  %v6506_v59 = vld [vmem:[#allocation2 + $0x22] sm:$0xff]  ;;  %v6514_v15 = vld [vmem:[#allocation2 + $0xf0] sm:$0xff] }
 0x204   : > { %5005 = vrot.lane.b32.xlu0 %v5004_v25, %s5704_s12  ;;  %v1795_v25 = vld [vmem:[#allocation6 + $0xa0] sm:$0xff]  ;;  %4860 = vmatpush.msra.mxu2 %v1788_v23  ;;  %v6510_v56 = vld [vmem:[#allocation2 + $0xe0] sm:$0xff]  ;;  %v1778_v4 = vld [vmem:[#allocation6 + $0x18] sm:$0xff] }
 0x205   : > { %2071 = vmatpush.msra.mxu3 %v1795_v25  ;;  %1949 = vmatpush.msrb.mxu1 %v1788_v23  ;;  %v1777_v25 = vld [vmem:[#allocation6 + $0x10] sm:$0xff]  ;;  %v6522_v23 = vld [vmem:[#allocation2 + $0x32] sm:$0xff] }
 0x206   : > { %5000 = vrot.lane.b32.xlu2 %v4999_v41, %s5704_s12  ;;  %v6479_v41 = vld [vmem:[#allocation2 + $0xc0] sm:$0xff]  ;;  %v971_v7 = vld [vmem:[#allocation2 + $0x170] sm:$0xff] }
 0x207   : > { %v6564_v32 = vld [vmem:[#allocation2 + $0x7a] sm:$0xff] }
 0x208   : > { %5010 = vrot.lane.b32.xlu1 %v5009_v45, %s5704_s12  ;;  %v5064_v45 = vpack.i.bf16 %v6472_v21, %v6474_v47  ;;  %8978 = vst [vmem:[#allocation26_spill] sm:$0xff] %v6564_v32 }
 0x20c   : > { %5020 = vrot.lane.b32.xlu0 %v5019_v54, %s5704_s12  ;;  %v5059_v54 = vpack.i.bf16 %v6479_v41, %v6477_v33 }
 0x20e   : > { %5015 = vrot.lane.b32.xlu2 %v5014_v13, %s5704_s12  ;;  %v1794_v13 = vld [vmem:[#allocation6 + $0x98] sm:$0xff] }
 0x20f   : > { %2072 = vmatpush.msra.mxu3 %v1794_v13  ;;  %v1775_v13 = vld [vmem:[#allocation6] sm:$0xff] }
 0x210   : > { %5025 = vrot.lane.b32.xlu1 %v5024_v40, %s5704_s12  ;;  %v1787_v40 = vld [vmem:[#allocation6 + $0x60] sm:$0xff] }
 0x211   : > { %4861 = vmatpush.msra.mxu2 %v1787_v40  ;;  %2073 = vmatpush.msra.mxu3 %v1793_v42  ;;  %v6528_v42 = vld [vmem:[#allocation2 + $0x110] sm:$0xff] }
 0x212   : > { %1950 = vmatpush.msrb.mxu1 %v1787_v40  ;;  %v6526_v40 = vld [vmem:[#allocation2 + $0x3a] sm:$0xff]  ;;  %8971 = vst [vmem:[#allocation19_spill] sm:$0xff] %v6528_v42 }
 0x213   : > { %4862 = vmatpush.msra.mxu2 %v1786_v43  ;;  %2074 = vmatpush.msra.mxu3 %v1792_v46 }
 0x214   : > { %5035 = vrot.lane.b32.xlu0 %v5034_v48, %s5704_s12  ;;  %v1785_v48 = vld [vmem:[#allocation6 + $0x50] sm:$0xff]  ;;  %1951 = vmatpush.msrb.mxu1 %v1786_v43  ;;  %v6530_v43 = vld [vmem:[#allocation2 + $0x4a] sm:$0xff] }
 0x215   : > { %4863 = vmatpush.msra.mxu2 %v1785_v48  ;;  %v5074_v46 = vpack.i.bf16 %v6528_v42, %v6530_v43  ;;  %v6578_v42 = vld [vmem:[#allocation2 + $0x150] sm:$0xff] }
 0x216   : > { %5030 = vrot.lane.b32.xlu2 %v5029_v53, %s5704_s12  ;;  %v1791_v53 = vld [vmem:[#allocation6 + $0x80] sm:$0xff]  ;;  %1952 = vmatpush.msrb.mxu1 %v1785_v48  ;;  %v6536_v48 = vld [vmem:[#allocation2 + $0x120] sm:$0xff]  ;;  %8980 = vst [vmem:[#allocation28_spill] sm:$0xff] %v6578_v42 }
 0x217   : > { %2075 = vmatpush.msra.mxu3 %v1791_v53  ;;  %8972 = vst [vmem:[#allocation20_spill] sm:$0xff] %v6536_v48  ;;  %v6538_v53 = vld [vmem:[#allocation2 + $0x52] sm:$0xff] }
 0x218   : > { %5040 = vrot.lane.b32.xlu1 %v5039_v57, %s5704_s12  ;;  %v1784_v57 = vld [vmem:[#allocation6 + $0x48] sm:$0xff] }
 0x219   : > { %4864 = vmatpush.msra.mxu2 %v1784_v57  ;;  %1953 = vmatpush.msrb.mxu1 %v1784_v57  ;;  %v6541_v57 = vld [vmem:[#allocation2 + $0x108] sm:$0xff] }
 0x21a   : > { %8973 = vst [vmem:[#allocation21_spill] sm:$0xff] %v6541_v57 }
 0x21b   : > { %4865 = vmatpush.msra.mxu2 %v1783_v12  ;;  %1954 = vmatpush.msrb.mxu1 %v1783_v12 }
 0x21c   : > { %5050 = vrot.lane.b32.xlu0 %v5049_v8, %s5704_s12  ;;  %v1782_v8 = vld [vmem:[#allocation6 + $0x38] sm:$0xff] }
 0x21d   : > { %4866 = vmatpush.msra.mxu2 %v1782_v8  ;;  %1955 = vmatpush.msrb.mxu1 %v1782_v8  ;;  %v910_v8 = vld [vmem:[#allocation2 + $0x2] sm:$0xff] }
 0x21e   : > { %5045 = vrot.lane.b32.xlu2 %v5044_v16, %s5704_s12  ;;  %v1781_v16 = vld [vmem:[#allocation6 + $0x30] sm:$0xff] }
 0x21f   : > { %4867 = vmatpush.msra.mxu2 %v1781_v16  ;;  %1956 = vmatpush.msrb.mxu1 %v1781_v16 }
 0x220   : > { %5055 = vrot.lane.b32.xlu1 %v5054_v22, %s5704_s12  ;;  %v1780_v22 = vld [vmem:[#allocation6 + $0x28] sm:$0xff] }
 0x221   : > { %4868 = vmatpush.msra.mxu2 %v1780_v22  ;;  %1957 = vmatpush.msrb.mxu1 %v1780_v22  ;;  %v5079_v22 = vpack.i.bf16 %v6536_v48, %v6538_v53 }
 0x223   : > { %4869 = vmatpush.msra.mxu2 %v1779_v26  ;;  %1958 = vmatpush.msrb.mxu1 %v1779_v26  ;;  %v6550_v26 = vld [vmem:[#allocation2 + $0x138] sm:$0xff] }
 0x224   : > { %5065 = vrot.lane.b32.xlu0 %v5064_v45, %s5704_s12  ;;  %v6518_v45 = vld [vmem:[#allocation2 + $0xf8] sm:$0xff]  ;;  %8974 = vst [vmem:[#allocation22_spill] sm:$0xff] %v6550_v26 }
 0x225   : > { %4870 = vmatpush.msra.mxu2 %v1778_v4  ;;  %8970 = vst [vmem:[#allocation18_spill] sm:$0xff] %v6518_v45  ;;  %1959 = vmatpush.msrb.mxu1 %v1778_v4  ;;  %v6552_v4 = vld [vmem:[#allocation2 + $0x6a] sm:$0xff] }
 0x226   : > { %5060 = vrot.lane.b32.xlu2 %v5059_v54, %s5704_s12  ;;  %v1776_v54 = vld [vmem:[#allocation6 + $0x8] sm:$0xff]  ;;  %8975 = vst [vmem:[#allocation23_spill] sm:$0xff] %v6552_v4 }
 0x227   : > { %4871 = vmatpush.msra.mxu2 %v1777_v25  ;;  %1960 = vmatpush.msrb.mxu1 %v1777_v25 }
 0x228   : > { %5070 = vrot.lane.b32.xlu1 %v5069_v38, %s5704_s12  ;;  %v1846_v38 = vld [vmem:[#allocation6 + $0x238] sm:$0xff] }
 0x229   : > { %4872 = vmatpush.msra.mxu2 %v1776_v54  ;;  %1961 = vmatpush.msrb.mxu1 %v1776_v54  ;;  %v6556_v54 = vld [vmem:[#allocation2 + $0x128] sm:$0xff] }
 0x22a   : > { %8976 = vst [vmem:[#allocation24_spill] sm:$0xff] %v6556_v54 }
 0x22b   : > { %4873 = vmatpush.msra.mxu2 %v1775_v13  ;;  %1962 = vmatpush.msrb.mxu1 %v1775_v13  ;;  %v6558_v13 = vld [vmem:[#allocation2 + $0x62] sm:$0xff] }
 0x22c   : > { %1327 = vrot.lane.b32.xlu0 %v6494_v35, %s5704_s12  ;;  %v5084_v28 = vpack.i.bf16 %v6556_v54, %v6558_v13 }
 0x22d   : > { %2407 = vmatpush.msrb.mxu2 %v1846_v38  ;;  %v5089_v38 = vpack.i.bf16 %v6550_v26, %v6552_v4  ;;  %v911_v26 = vld [vmem:[#allocation2 + $0xa] sm:$0xff] }
 0x22e   : > { %1189 = vrot.lane.b32.xlu2 %v6498_v39, %s5704_s12 }
 0x230   : > { %1423 = vrot.lane.b32.xlu1 %v6502_v1, %s5704_s12 }
 0x234   : > { %1425 = vrot.lane.b32.xlu0 %v6506_v59, %s5704_s12 }
 0x236   : > { %1329 = vrot.lane.b32.xlu2 %v6510_v56, %s5704_s12 }
 0x238   : > { %1331 = vrot.lane.b32.xlu1 %v6514_v15, %s5704_s12 }
 0x23c   : > { %1333 = vrot.lane.b32.xlu0 %v6518_v45, %s5704_s12  ;;  %v6591_v45 = vld [vmem:[#allocation2 + $0xb2] sm:$0xff] }
 0x23e   : > { %1427 = vrot.lane.b32.xlu2 %v6522_v23, %s5704_s12 }
 0x240   : > { %1429 = vrot.lane.b32.xlu1 %v6526_v40, %s5704_s12 }
 0x244   : > { %5075 = vrot.lane.b32.xlu0 %v5074_v46, %s5704_s12  ;;  %v6562_v46 = vld [vmem:[#allocation2 + $0x140] sm:$0xff] }
 0x245   : > { %v6543_v12 = vpop.permute.xlu2 %4965  ;;  %8977 = vst [vmem:[#allocation25_spill] sm:$0xff] %v6562_v46 }
 0x246   : > { %1335 = vrot.lane.b32.xlu2 %v6541_v57, %s5704_s12  ;;  %v4968_v16 = vunpack.i.h.bf16 %v6543_v12 }
 0x248   : > { %5080 = vrot.lane.b32.xlu1 %v5079_v22, %s5704_s12  ;;  %v1679_v25 = vsel %vm460_vm0, %v910_v8, %v4968_v16  ;;  %v5094_v8 = vpack.i.bf16 %v6562_v46, %v6564_v32  ;;  %v969_v16 = vld [vmem:[#allocation2 + $0x158] sm:$0xff]  ;;  %v970_v46 = vld [vmem:[#allocation2 + $0x168] sm:$0xff] }
 0x249   : > { %2076 = vmatmul.f32.vlgmr.msra.gmra.mxu3 %v1679_v25  ;;  %v6572_v22 = vld [vmem:[#allocation2 + $0x92] sm:$0xff]  ;;  %v6584_v32 = vld [vmem:[#allocation2 + $0x9a] sm:$0xff] }
 0x24a   : > { %8979 = vst [vmem:[#allocation27_spill] sm:$0xff] %v6572_v22  ;;  %v5104_v54 = vpack.i.bf16 %v969_v16, %v6572_v22  ;;  %v5109_v4 = vpack.i.bf16 %v970_v46, %v6584_v32 }
 0x24c   : > { %5090 = vrot.lane.b32.xlu0 %v5089_v38, %s5704_s12  ;;  %v6580_v38 = vld [vmem:[#allocation2 + $0x82] sm:$0xff] }
 0x24e   : > { %5085 = vrot.lane.b32.xlu2 %v5084_v28, %s5704_s12  ;;  %v1845_v28 = vld [vmem:[#allocation6 + $0x230] sm:$0xff] }
 0x24f   : > { %2408 = vmatpush.msrb.mxu2 %v1845_v28  ;;  %v972_v28 = vld [vmem:[#allocation2 + $0x180] sm:$0xff] }
 0x250   : > { %v6574_v25 = vpop.permute.xlu2 %4970  ;;  %5095 = vrot.lane.b32.xlu1 %v5094_v8, %s5704_s12  ;;  %v5099_v8 = vpack.i.bf16 %v6578_v42, %v6580_v38  ;;  %v973_v42 = vld [vmem:[#allocation2 + $0x188] sm:$0xff] }
 0x251   : > { %v4973_v48 = vunpack.i.h.bf16 %v6574_v25 }
 0x253   : > { %v1680_v57 = vsel %vm460_vm0, %v911_v26, %v4973_v48  ;;  %v1194_v48 = vpop.permute.xlu1 %1193  ;;  %v6598_v26 = vld [vmem:[#allocation2 + $0xaa] sm:$0xff] }
 0x254   : > { %2079 = vmatmul.f32.gmra.mxu3 %v1680_v57  ;;  %5105 = vrot.lane.b32.xlu0 %v5104_v54, %s5704_s12  ;;  %v5119_v54 = vpack.i.bf16 %v6591_v45, %v971_v7  ;;  %v5114_v46 = vpack.i.bf16 %v6418_v49, %v6598_v26  ;;  %v1660_v7 = vsel %vm460_vm0, %v6443_v31, %v1194_v48  ;;  %v6625_v48 = vld [vmem:[#allocation2 + $0xe2] sm:$0xff] }
 0x256   : > { %5100 = vrot.lane.b32.xlu2 %v5099_v8, %s5704_s12  ;;  %v1838_v8 = vld [vmem:[#allocation6 + $0x1f8] sm:$0xff] }
 0x257   : > { %v1192_v16 = vpop.permute.xlu0 %1191  ;;  %4874 = vmatpush.msrb.mxu3 %v1838_v8  ;;  %2286 = vmatpush.msrb.mxu0 %v1838_v8  ;;  %v1844_v8 = vld [vmem:[#allocation6 + $0x228] sm:$0xff] }
 0x258   : > { %v6593_v22 = vpop.permute.xlu2 %4985  ;;  %5110 = vrot.lane.b32.xlu1 %v5109_v4, %s5704_s12  ;;  %v1659_v57 = vsel %vm460_vm0, %v6437_v27, %v1192_v16  ;;  %v5124_v4 = vpack.i.bf16 %v972_v28, %v6435_v6  ;;  %v6606_v27 = vld [vmem:[#allocation2 + $0xca] sm:$0xff]  ;;  %2409 = vmatpush.msrb.mxu2 %v1844_v8  ;;  %v6653_v8 = vld [vmem:[#allocation2 + $0xfa] sm:$0xff] }
 0x259   : > { %1999 = vmatmul.f32.vlgmr.msra.gmra.mxu2 %v1659_v57  ;;  %v6613_v57 = vld [vmem:[#allocation2 + $0xc2] sm:$0xff]  ;;  %v5134_v49 = vpack.i.bf16 %v6606_v27, %v973_v42 }
 0x25a   : > { %v5129_v6 = vpack.i.bf16 %v6430_v58, %v6613_v57 }
 0x25c   : > { %5120 = vrot.lane.b32.xlu0 %v5119_v54, %s5704_s12 }
 0x25e   : > { %5115 = vrot.lane.b32.xlu2 %v5114_v46, %s5704_s12  ;;  %v5139_v46 = vpack.i.bf16 %v6392_v18, %v6456_v2  ;;  %v5149_v18 = vpack.i.bf16 %v6625_v48, %v6402_v24  ;;  %v5154_v24 = vpack.i.bf16 %v6409_v62, %v6477_v33  ;;  %v5164_v62 = vpack.i.bf16 %v6653_v8, %v6413_v29  ;;  %v6676_v29 = vld [vmem:[#allocation2 + $0x112] sm:$0xff] }
 0x260   : > { %v6608_v16 = vpop.permute.xlu2 %5000  ;;  %5125 = vrot.lane.b32.xlu1 %v5124_v4, %s5704_s12 }
 0x261   : > { %2002 = vmatmul.f32.gmra.mxu2 %v1660_v7  ;;  %v6634_v7 = vld [vmem:[#allocation2 + $0xda] sm:$0xff] }
 0x262   : > { %v1196_v54 = vpop.permute.xlu1 %1195 }
 0x263   : > { %v1661_v42 = vsel %vm460_vm0, %v6458_v5, %v1196_v54  ;;  %v5144_v5 = vpack.i.bf16 %v6451_v52, %v6634_v7  ;;  %v1837_v54 = vld [vmem:[#allocation6 + $0x1f0] sm:$0xff] }
 0x264   : > { %5135 = vrot.lane.b32.xlu0 %v5134_v49, %s5704_s12  ;;  %4875 = vmatpush.msrb.mxu3 %v1837_v54 }
 0x265   : > { %2287 = vmatpush.msrb.mxu0 %v1837_v54  ;;  %v5169_v54 = vpack.i.bf16 %v6420_v19, %v6498_v39  ;;  %v5179_v19 = vpack.i.bf16 %v6676_v29, %v6425_v36 }
 0x266   : > { %v6619_v28 = vpop.permute.xlu0 %4975  ;;  %5130 = vrot.lane.b32.xlu2 %v5129_v6, %s5704_s12  ;;  %v4967_v6 = vunpack.i.l.bf16 %v6543_v12 }
 0x267   : > { %v4978_v31 = vunpack.i.h.bf16 %v6619_v28 }
 0x268   : > { %v6627_v4 = vpop.permute.xlu2 %5015  ;;  %5140 = vrot.lane.b32.xlu1 %v5139_v46, %s5704_s12  ;;  %v846_v46 = vld [vmem:[#allocation2] sm:$0xff]  ;;  %v1662_v52 = vsel %vm460_vm0, %v6464_v50, %v4967_v6  ;;  %v4988_v50 = vunpack.i.h.bf16 %v6593_v22  ;;  %v5002_v6 = vunpack.i.l.bf16 %v6608_v16 }
 0x269   : > { %v1681_v58 = vsel %vm460_vm0, %v6502_v1, %v4978_v31  ;;  %2005 = vmatmul.f32.gmra.mxu2 %v1661_v42 }
 0x26a   : > { %2082 = vmatmul.f32.gmra.mxu3 %v1681_v58  ;;  %v6638_v2 = vpop.permute.xlu1 %4980 }
 0x26b   : > { %v4983_v49 = vunpack.i.h.bf16 %v6638_v2 }
 0x26c   : > { %5150 = vrot.lane.b32.xlu0 %v5149_v18, %s5704_s12  ;;  %v6661_v18 = vld [vmem:[#allocation2 + $0xf2] sm:$0xff] }
 0x26d   : > { %v1682_v12 = vsel %vm460_vm0, %v6506_v59, %v4983_v49  ;;  %v4972_v59 = vunpack.i.l.bf16 %v6574_v25  ;;  %v5159_v49 = vpack.i.bf16 %v6472_v21, %v6661_v18 }
 0x26e   : > { %v6645_v1 = vpop.permute.xlu0 %4990  ;;  %5145 = vrot.lane.b32.xlu2 %v5144_v5, %s5704_s12  ;;  %v847_v5 = vld [vmem:[#allocation2 + $0x8] sm:$0xff] }
 0x26f   : > { %v4993_v31 = vunpack.i.h.bf16 %v6645_v1  ;;  %v1663_v25 = vsel %vm460_vm0, %v6479_v41, %v4972_v59  ;;  %v1648_v21 = vsel %vm460_vm0, %v847_v5, %v5002_v6  ;;  %v4977_v41 = vunpack.i.l.bf16 %v6619_v28 }
 0x270   : > { %v6655_v42 = vpop.permute.xlu2 %5030  ;;  %5155 = vrot.lane.b32.xlu1 %v5154_v24, %s5704_s12  ;;  %v1683_v24 = vsel %vm460_vm0, %v6522_v23, %v4988_v50  ;;  %v6702_v50 = vld [vmem:[#allocation2 + $0x12a] sm:$0xff] }
 0x271   : > { %v1647_v58 = vsel %vm460_vm0, %v846_v46, %v4993_v31  ;;  %2008 = vmatmul.f32.gmra.mxu2 %v1662_v52  ;;  %v6686_v31 = vld [vmem:[#allocation2 + $0x10a] sm:$0xff] }
 0x272   : > { %1963 = vmatmul.f32.vlgmr.msrb.gmra.mxu1 %v1647_v58  ;;  %2085 = vmatmul.f32.gmra.mxu3 %v1682_v12  ;;  %v6665_v33 = vpop.permute.xlu1 %4995  ;;  %v1843_v52 = vld [vmem:[#allocation6 + $0x220] sm:$0xff]  ;;  %v1080_v58 = vld [vmem:[#allocation2 + $0x99] sm:$0xff]  ;;  %v5174_v23 = vpack.i.bf16 %v6309_v17, %v6686_v31  ;;  %v1664_v17 = vsel %vm460_vm0, %v6485_v34, %v4977_v41  ;;  %v4982_v34 = vunpack.i.l.bf16 %v6638_v2  ;;  %v6728_v2 = vld [vmem:[#allocation2 + $0x142] sm:$0xff] }
 0x273   : > { %2410 = vmatpush.msrb.mxu2 %v1843_v52  ;;  %v4997_v59 = vunpack.i.l.bf16 %v6665_v33  ;;  %v5184_v36 = vpack.i.bf16 %v6432_v44, %v1080_v58  ;;  %v5194_v44 = vpack.i.bf16 %v6702_v50, %v6441_v51  ;;  %v5017_v52 = vunpack.i.l.bf16 %v6627_v4  ;;  %v1833_v58 = vld [vmem:[#allocation6 + $0x1d0] sm:$0xff] }
 0x274   : > { %5165 = vrot.lane.b32.xlu0 %v5164_v62, %s5704_s12  ;;  %v1836_v62 = vld [vmem:[#allocation6 + $0x1e8] sm:$0xff]  ;;  %v5199_v51 = vpack.i.bf16 %v6453_v63, %v6332_v9  ;;  %v1821_v41 = vld [vmem:[#allocation6 + $0x170] sm:$0xff] }
 0x275   : > { %4876 = vmatpush.msrb.mxu3 %v1836_v62  ;;  %2288 = vmatpush.msrb.mxu0 %v1836_v62  ;;  %v1684_v5 = vsel %vm460_vm0, %v6526_v40, %v4997_v59  ;;  %v1834_v40 = vld [vmem:[#allocation6 + $0x1d8] sm:$0xff]  ;;  %v6739_v63 = vld [vmem:[#allocation2 + $0x13a] sm:$0xff] }
 0x276   : > { %5160 = vrot.lane.b32.xlu2 %v5159_v49, %s5704_s12  ;;  %v6688_v12 = vpop.permute.xlu0 %5005  ;;  %v1832_v62 = vld [vmem:[#allocation6 + $0x1c8] sm:$0xff] }
 0x277   : > { %v5008_v49 = vunpack.i.h.bf16 %v6688_v12 }
 0x278   : > { %v6678_v46 = vpop.permute.xlu2 %5045  ;;  %5170 = vrot.lane.b32.xlu1 %v5169_v54, %s5704_s12  ;;  %v6713_v54 = vld [vmem:[#allocation2 + $0x122] sm:$0xff] }
 0x279   : > { %2011 = vmatmul.f32.gmra.mxu2 %v1663_v25  ;;  %v1649_v28 = vsel %vm460_vm0, %v6325_v37, %v5008_v49  ;;  %v5189_v37 = vpack.i.bf16 %v6358_v55, %v6713_v54  ;;  %v5209_v49 = vpack.i.bf16 %v6728_v2, %v6462_v14  ;;  %v5214_v14 = vpack.i.bf16 %v6474_v47, %v6366_v61  ;;  %v6765_v47 = vld [vmem:[#allocation2 + $0x152] sm:$0xff] }
 0x27a   : > { %1966 = vmatmul.f32.gmra.mxu1 %v1648_v21  ;;  %2088 = vmatmul.f32.gmra.mxu3 %v1683_v24  ;;  %v6692_v39 = vpop.permute.xlu1 %5010  ;;  %v1822_v21 = vld [vmem:[#allocation6 + $0x178] sm:$0xff]  ;;  %v1835_v24 = vld [vmem:[#allocation6 + $0x1e0] sm:$0xff] }
 0x27b   : > { %2173 = vmatpush.msra.mxu1 %v1822_v21  ;;  %2289 = vmatpush.msrb.mxu0 %v1835_v24  ;;  %v1829_v21 = vld [vmem:[#allocation6 + $0x1b0] sm:$0xff] }
 0x27c   : > { %5180 = vrot.lane.b32.xlu0 %v5179_v19, %s5704_s12  ;;  %4877 = vmatpush.msrb.mxu3 %v1835_v24  ;;  %v5003_v19 = vunpack.i.h.bf16 %v6608_v16  ;;  %v1665_v16 = vsel %vm460_vm0, %v6494_v35, %v4982_v34  ;;  %v1831_v35 = vld [vmem:[#allocation6 + $0x1c0] sm:$0xff]  ;;  %v1842_v24 = vld [vmem:[#allocation6 + $0x218] sm:$0xff] }
 0x27d   : > { %2290 = vmatpush.msrb.mxu0 %v1834_v40  ;;  %2174 = vmatpush.msra.mxu1 %v1821_v41  ;;  %v1826_v41 = vld [vmem:[#allocation6 + $0x198] sm:$0xff] }
 0x27e   : > { %5175 = vrot.lane.b32.xlu2 %v5174_v23, %s5704_s12  ;;  %4878 = vmatpush.msrb.mxu3 %v1834_v40  ;;  %v1650_v23 = vsel %vm460_vm0, %v6372_v0, %v5017_v52  ;;  %v1685_v9 = vsel %vm460_vm0, %v6530_v43, %v5003_v19  ;;  %v6741_v59 = vpop.permute.xlu0 %5020  ;;  %v4987_v0 = vunpack.i.l.bf16 %v6593_v22  ;;  %v5204_v43 = vpack.i.bf16 %v6376_v3, %v6739_v63  ;;  %v1033_v22 = vld [vmem:[#allocation2 + $0x15a] sm:$0xff] }
 0x27f   : > { %2291 = vmatpush.msrb.mxu0 %v1833_v58  ;;  %2411 = vmatpush.msrb.mxu2 %v1842_v24  ;;  %v1828_v40 = vld [vmem:[#allocation6 + $0x1a8] sm:$0xff]  ;;  %v5224_v19 = vpack.i.bf16 %v1033_v22, %v6483_v30  ;;  %v5032_v30 = vunpack.i.l.bf16 %v6655_v42  ;;  %v8982_v22 = vld [vmem:[#allocation17_spill] sm:$0xff] }
 0x280   : > { %v6704_v6 = vpop.permute.xlu2 %5060  ;;  %5185 = vrot.lane.b32.xlu1 %v5184_v36, %s5704_s12  ;;  %4879 = vmatpush.msrb.mxu3 %v1833_v58  ;;  %v1666_v3 = vsel %vm460_vm0, %v6510_v56, %v4987_v0  ;;  %v1819_v56 = vld [vmem:[#allocation6 + $0x160] sm:$0xff]  ;;  %v1099_v58 = vld [vmem:[#allocation2 + $0x181] sm:$0xff] }
 0x281   : > { %2014 = vmatmul.f32.gmra.mxu2 %v1664_v17  ;;  %v1820_v17 = vld [vmem:[#allocation6 + $0x168] sm:$0xff]  ;;  %2292 = vmatpush.msrb.mxu0 %v1832_v62  ;;  %v1823_v0 = vld [vmem:[#allocation6 + $0x180] sm:$0xff] }
 0x282   : > { %1969 = vmatmul.f32.gmra.mxu1 %v1649_v28  ;;  %2091 = vmatmul.f32.gmra.mxu3 %v1684_v5  ;;  %v6717_v25 = vpop.permute.xlu1 %5025  ;;  %v1830_v28 = vld [vmem:[#allocation6 + $0x1b8] sm:$0xff]  ;;  %v5012_v5 = vunpack.i.l.bf16 %v6692_v39 }
 0x283   : > { %2175 = vmatpush.msra.mxu1 %v1820_v17  ;;  %4880 = vmatpush.msrb.mxu3 %v1832_v62  ;;  %v1818_v17 = vld [vmem:[#allocation6 + $0x158] sm:$0xff] }
 0x284   : > { %5195 = vrot.lane.b32.xlu0 %v5194_v44, %s5704_s12  ;;  %v5023_v44 = vunpack.i.h.bf16 %v6741_v59  ;;  %2293 = vmatpush.msrb.mxu0 %v1831_v35  ;;  %v1686_v61 = vsel %vm460_vm0, %v6538_v53, %v5012_v5  ;;  %v5219_v53 = vpack.i.bf16 %v6385_v11, %v6765_v47  ;;  %v6795_v5 = vld [vmem:[#allocation2 + $0x16a] sm:$0xff] }
 0x285   : > { %4881 = vmatpush.msrb.mxu3 %v1831_v35  ;;  %2176 = vmatpush.msra.mxu1 %v1819_v56  ;;  %v1841_v56 = vld [vmem:[#allocation6 + $0x210] sm:$0xff] }
 0x286   : > { %5190 = vrot.lane.b32.xlu2 %v5189_v37, %s5704_s12  ;;  %2294 = vmatpush.msrb.mxu0 %v1830_v28  ;;  %v1651_v37 = vsel %vm460_vm0, %v6363_v60, %v5023_v44  ;;  %v4992_v60 = vunpack.i.l.bf16 %v6645_v1  ;;  %v6799_v44 = vld [vmem:[#allocation2 + $0x172] sm:$0xff] }
 0x287   : > { %4882 = vmatpush.msrb.mxu3 %v1830_v28  ;;  %2177 = vmatpush.msra.mxu1 %v1818_v17  ;;  %v1811_v17 = vld [vmem:[#allocation6 + $0x120] sm:$0xff] }
 0x288   : > { %v6730_v55 = vpop.permute.xlu2 %1189  ;;  %5200 = vrot.lane.b32.xlu1 %v5199_v51, %s5704_s12  ;;  %2295 = vmatpush.msrb.mxu0 %v1829_v21  ;;  %v1827_v51 = vld [vmem:[#allocation6 + $0x1a0] sm:$0xff]  ;;  %v1667_v11 = vsel %vm460_vm0, %v6514_v15, %v4992_v60  ;;  %v4998_v15 = vunpack.i.h.bf16 %v6665_v33  ;;  %v1101_v60 = vld [vmem:[#allocation2 + $0x199] sm:$0xff] }
 0x289   : > { %2017 = vmatmul.f32.gmra.mxu2 %v1665_v16  ;;  %4883 = vmatpush.msrb.mxu3 %v1829_v21  ;;  %v5018_v16 = vunpack.i.h.bf16 %v6627_v4  ;;  %v1652_v4 = vsel %vm460_vm0, %v6382_v10, %v5032_v30  ;;  %v1817_v10 = vld [vmem:[#allocation6 + $0x150] sm:$0xff]  ;;  %v8981_v21 = vld [vmem:[#allocation18_spill] sm:$0xff]  ;;  %v5047_v30 = vunpack.i.l.bf16 %v6678_v46 }
 0x28a   : > { %1972 = vmatmul.f32.gmra.mxu1 %v1650_v23  ;;  %2094 = vmatmul.f32.gmra.mxu3 %v1685_v9  ;;  %v6745_v36 = vpop.permute.xlu1 %5040  ;;  %v5229_v23 = vpack.i.bf16 %v1099_v58, %v6397_v20  ;;  %v1825_v9 = vld [vmem:[#allocation6 + $0x190] sm:$0xff]  ;;  %v1824_v20 = vld [vmem:[#allocation6 + $0x188] sm:$0xff]  ;;  %v1668_v24 = vsel %vm460_vm0, %v8981_v21, %v4998_v15  ;;  %v1810_v15 = vld [vmem:[#allocation6 + $0x118] sm:$0xff] }
 0x28b   : > { %2296 = vmatpush.msrb.mxu0 %v1828_v40  ;;  %4884 = vmatpush.msrb.mxu3 %v1828_v40  ;;  %v1687_v62 = vsel %vm460_vm0, %v6558_v13, %v5018_v16  ;;  %v5027_v13 = vunpack.i.l.bf16 %v6717_v25  ;;  %v1815_v40 = vld [vmem:[#allocation6 + $0x140] sm:$0xff]  ;;  %v1036_v58 = vld [vmem:[#allocation2 + $0x182] sm:$0xff]  ;;  %v5033_v16 = vunpack.i.h.bf16 %v6655_v42 }
 0x28c   : > { %5210 = vrot.lane.b32.xlu0 %v5209_v49, %s5704_s12  ;;  %v6787_v49 = vpop.permute.xlu0 %5035  ;;  %2178 = vmatpush.msra.mxu1 %v1817_v10  ;;  %v5013_v10 = vunpack.i.h.bf16 %v6692_v39  ;;  %v1037_v21 = vld [vmem:[#allocation2 + $0x18a] sm:$0xff] }
 0x28d   : > { %2297 = vmatpush.msrb.mxu0 %v1827_v51  ;;  %4885 = vmatpush.msrb.mxu3 %v1827_v51  ;;  %v5038_v28 = vunpack.i.h.bf16 %v6787_v49  ;;  %v1814_v51 = vld [vmem:[#allocation6 + $0x138] sm:$0xff] }
 0x28e   : > { %5205 = vrot.lane.b32.xlu2 %v5204_v43, %s5704_s12  ;;  %v1100_v43 = vld [vmem:[#allocation2 + $0x189] sm:$0xff]  ;;  %2412 = vmatpush.msrb.mxu2 %v1841_v56 }
 0x28f   : > { %2298 = vmatpush.msrb.mxu0 %v1826_v41  ;;  %4886 = vmatpush.msrb.mxu3 %v1826_v41  ;;  %v1813_v41 = vld [vmem:[#allocation6 + $0x130] sm:$0xff] }
 0x290   : > { %v6756_v34 = vpop.permute.xlu2 %1329  ;;  %5215 = vrot.lane.b32.xlu1 %v5214_v14, %s5704_s12  ;;  %v1816_v14 = vld [vmem:[#allocation6 + $0x148] sm:$0xff] }
 0x291   : > { %2020 = vmatmul.f32.gmra.mxu2 %v1666_v3  ;;  %2299 = vmatpush.msrb.mxu0 %v1825_v9  ;;  %v1653_v3 = vsel %vm460_vm0, %v8982_v22, %v5038_v28  ;;  %v5042_v28 = vunpack.i.l.bf16 %v6745_v36 }
 0x292   : > { %1975 = vmatmul.f32.gmra.mxu1 %v1651_v37  ;;  %2097 = vmatmul.f32.gmra.mxu3 %v1686_v61  ;;  %v6768_v52 = vpop.permute.xlu1 %5055  ;;  %v8983_v37 = vld [vmem:[#allocation23_spill] sm:$0xff] }
 0x293   : > { %2300 = vmatpush.msrb.mxu0 %v1824_v20  ;;  %4887 = vmatpush.msrb.mxu3 %v1825_v9  ;;  %v1688_v61 = vsel %vm460_vm0, %v8983_v37, %v5027_v13  ;;  %v1809_v13 = vld [vmem:[#allocation6 + $0x110] sm:$0xff]  ;;  %v8986_v37 = vld [vmem:[#allocation19_spill] sm:$0xff] }
 0x294   : > { %5225 = vrot.lane.b32.xlu0 %v5224_v19, %s5704_s12  ;;  %2179 = vmatpush.msra.mxu1 %v1816_v14 }
 0x295   : > { %2301 = vmatpush.msrb.mxu0 %v1823_v0  ;;  %4888 = vmatpush.msrb.mxu3 %v1824_v20  ;;  %v8985_v20 = vld [vmem:[#allocation26_spill] sm:$0xff] }
 0x296   : > { %5220 = vrot.lane.b32.xlu2 %v5219_v53, %s5704_s12  ;;  %2180 = vmatpush.msra.mxu1 %v1815_v40  ;;  %v5007_v53 = vunpack.i.l.bf16 %v6688_v12  ;;  %v1689_v42 = vsel %vm460_vm0, %v8985_v20, %v5033_v16  ;;  %v1690_v40 = vsel %vm460_vm0, %v6580_v38, %v5042_v28  ;;  %v8987_v38 = vld [vmem:[#allocation20_spill] sm:$0xff]  ;;  %v1039_v20 = vld [vmem:[#allocation2 + $0x30] sm:$0xff] }
 0x297   : > { %4889 = vmatpush.msrb.mxu3 %v1823_v0  ;;  %v6828_v0 = vpop.permute.xlu0 %5050  ;;  %v6870_v28 = vld [vmem:[#allocation2 + $0x78] sm:$0xff] }
 0x298   : > { %v6778_v1 = vpop.permute.xlu2 %1427  ;;  %5230 = vrot.lane.b32.xlu1 %v5229_v23, %s5704_s12  ;;  %2181 = vmatpush.msra.mxu1 %v1814_v51  ;;  %v1812_v23 = vld [vmem:[#allocation6 + $0x128] sm:$0xff]  ;;  %v5053_v14 = vunpack.i.h.bf16 %v6828_v0  ;;  %v1807_v51 = vld [vmem:[#allocation6 + $0x100] sm:$0xff] }
 0x299   : > { %2023 = vmatmul.f32.gmra.mxu2 %v1667_v11  ;;  %v6820_v11 = vld [vmem:[#allocation2 + $0x50] sm:$0xff] }
 0x29a   : > { %1978 = vmatmul.f32.gmra.mxu1 %v1652_v4  ;;  %2100 = vmatmul.f32.gmra.mxu3 %v1687_v62  ;;  %v6789_v35 = vpop.permute.xlu1 %5070  ;;  %v8984_v4 = vld [vmem:[#allocation21_spill] sm:$0xff]  ;;  %v1654_v62 = vsel %vm460_vm0, %v6820_v11, %v5047_v30  ;;  %v6853_v30 = vld [vmem:[#allocation2 + $0x68] sm:$0xff] }
 0x29b   : > { %2182 = vmatpush.msra.mxu1 %v1813_v41  ;;  %v1669_v12 = vsel %vm460_vm0, %v8984_v4, %v5007_v53  ;;  %v5062_v53 = vunpack.i.l.bf16 %v6704_v6  ;;  %v1840_v41 = vld [vmem:[#allocation6 + $0x208] sm:$0xff] }
 0x29c   : > { %1609 = vrot.lane.b32.xlu0 %v1100_v43, %s5704_s12  ;;  %2413 = vmatpush.msrb.mxu2 %v1840_v41 }
 0x29d   : > { %2183 = vmatpush.msra.mxu1 %v1812_v23 }
 0x29e   : > { %1479 = vrot.lane.b32.xlu2 %v6795_v5, %s5704_s12 }
 0x29f   : > { %2184 = vmatpush.msra.mxu1 %v1811_v17 }
 0x2a0   : > { %v6801_v33 = vpop.permute.xlu2 %1335  ;;  %1481 = vrot.lane.b32.xlu1 %v6799_v44, %s5704_s12 }
 0x2a1   : > { %2026 = vmatmul.f32.gmra.mxu2 %v1668_v24  ;;  %2185 = vmatpush.msra.mxu1 %v1810_v15  ;;  %v1808_v24 = vld [vmem:[#allocation6 + $0x108] sm:$0xff]  ;;  %v5028_v15 = vunpack.i.h.bf16 %v6717_v25 }
 0x2a2   : > { %1981 = vmatmul.f32.gmra.mxu1 %v1653_v3  ;;  %2103 = vmatmul.f32.gmra.mxu3 %v1688_v61  ;;  %v6811_v19 = vpop.permute.xlu1 %1423  ;;  %v6838_v3 = vld [vmem:[#allocation2 + $0x60] sm:$0xff]  ;;  %v1670_v61 = vsel %vm460_vm0, %v8986_v37, %v5013_v10  ;;  %v5057_v10 = vunpack.i.l.bf16 %v6768_v52 }
 0x2a3   : > { %2186 = vmatpush.msra.mxu1 %v1809_v13  ;;  %v1655_v39 = vsel %vm460_vm0, %v6838_v3, %v5053_v14  ;;  %v8989_v14 = vld [vmem:[#allocation24_spill] sm:$0xff] }
 0x2a4   : > { %1483 = vrot.lane.b32.xlu0 %v1036_v58, %s5704_s12  ;;  %v5022_v58 = vunpack.i.l.bf16 %v6741_v59  ;;  %v1692_v37 = vsel %vm460_vm0, %v6584_v32, %v5057_v10 }
 0x2a5   : > { %2187 = vmatpush.msra.mxu1 %v1808_v24 }
 0x2a6   : > { %1611 = vrot.lane.b32.xlu2 %v1101_v60, %s5704_s12  ;;  %v5048_v60 = vunpack.i.h.bf16 %v6678_v46  ;;  %v1671_v23 = vsel %vm460_vm0, %v8987_v38, %v5022_v58  ;;  %v6862_v46 = vpop.permute.xlu0 %5065  ;;  %v5072_v38 = vunpack.i.l.bf16 %v6789_v35 }
 0x2a7   : > { %2188 = vmatpush.msra.mxu1 %v1807_v51  ;;  %v5068_v13 = vunpack.i.h.bf16 %v6862_v46  ;;  %v8990_v51 = vld [vmem:[#allocation22_spill] sm:$0xff] }
 0x2a8   : > { %v6818_v9 = vpop.permute.xlu2 %5085 }
 0x2a9   : > { %2029 = vmatmul.f32.gmra.mxu2 %v1669_v12  ;;  %v1656_v12 = vsel %vm460_vm0, %v6853_v30, %v5062_v53  ;;  %v1657_v24 = vsel %vm460_vm0, %v6870_v28, %v5068_v13  ;;  %v8992_v13 = vld [vmem:[#allocation28_spill] sm:$0xff] }
 0x2aa   : > { %1984 = vmatmul.f32.gmra.mxu1 %v1654_v62  ;;  %2106 = vmatmul.f32.gmra.mxu3 %v1689_v42  ;;  %v6830_v43 = vpop.permute.xlu1 %1331  ;;  %v8988_v62 = vld [vmem:[#allocation27_spill] sm:$0xff] }
 0x2ab   : > { %v1691_v59 = vsel %vm460_vm0, %v8988_v62, %v5048_v60 }
 0x2ae   : > { %1485 = vrot.lane.b32.xlu2 %v1037_v21, %s5704_s12  ;;  %v1672_v21 = vsel %vm460_vm0, %v8989_v14, %v5028_v15  ;;  %v1328_v41 = vpop.permute.xlu0 %1327 }
 0x2b0   : > { %v6836_v22 = vpop.permute.xlu2 %5100 }
 0x2b1   : > { %2032 = vmatmul.f32.gmra.mxu2 %v1670_v61  ;;  %v5037_v61 = vunpack.i.l.bf16 %v6787_v49  ;;  %v1839_v49 = vld [vmem:[#allocation6 + $0x200] sm:$0xff] }
 0x2b2   : > { %1987 = vmatmul.f32.gmra.mxu1 %v1655_v39  ;;  %2109 = vmatmul.f32.gmra.mxu3 %v1690_v40  ;;  %v6846_v56 = vpop.permute.xlu1 %1429  ;;  %v5063_v39 = vunpack.i.h.bf16 %v6704_v6  ;;  %v6882_v40 = vld [vmem:[#allocation2 + $0x80] sm:$0xff]  ;;  %v5043_v6 = vunpack.i.h.bf16 %v6745_v36 }
 0x2b3   : > { %v1673_v58 = vsel %vm460_vm0, %v8990_v51, %v5037_v61  ;;  %v1658_v60 = vsel %vm460_vm0, %v6882_v40, %v6730_v55  ;;  %2414 = vmatpush.msrb.mxu2 %v1839_v49  ;;  %v1041_v61 = vld [vmem:[#allocation2 + $0x48] sm:$0xff] }
 0x2b4   : > { %v1693_v32 = vsel %vm460_vm0, %v6598_v26, %v5063_v39  ;;  %v1694_v26 = vsel %vm460_vm0, %v6591_v45, %v5072_v38  ;;  %v5067_v38 = vunpack.i.l.bf16 %v6862_v46  ;;  %v1697_v46 = vsel %vm460_vm0, %v6634_v7, %v6830_v43  ;;  %v6962_v43 = vld [vmem:[#allocation2 + $0x170] sm:$0xff] }
 0x2b6   : > { %v1426_v15 = vpop.permute.xlu0 %1425 }
 0x2b8   : > { %v6851_v16 = vpop.permute.xlu2 %5115 }
 0x2b9   : > { %v5118_v4 = vunpack.i.h.bf16 %v6851_v16  ;;  %2035 = vmatmul.f32.gmra.mxu2 %v1671_v23  ;;  %v8991_v23 = vld [vmem:[#allocation25_spill] sm:$0xff] }
 0x2ba   : > { %1990 = vmatmul.f32.gmra.mxu1 %v1656_v12  ;;  %2112 = vmatmul.f32.gmra.mxu3 %v1691_v59  ;;  %v6864_v42 = vpop.permute.xlu1 %5080  ;;  %v5502_v12 = vld [vmem:[#allocation2 + $0x19] sm:$0xff]  ;;  %v5052_v59 = vunpack.i.l.bf16 %v6828_v0 }
 0x2bb   : > { %v1743_v17 = vsel %vm460_vm0, %v1039_v20, %v5118_v4  ;;  %v1674_v4 = vsel %vm460_vm0, %v8991_v23, %v5043_v6  ;;  %v1711_v55 = vsel %vm460_vm0, %v5502_v12, %v6811_v19  ;;  %v1040_v20 = vld [vmem:[#allocation2 + $0x38] sm:$0xff]  ;;  %v975_v19 = vld [vmem:[#allocation2 + $0x21] sm:$0xff] }
 0x2bc   : > { %2302 = vmatmul.f32.vlgmr.msrb.gmra.mxu0 %v1743_v17  ;;  %v1675_v45 = vsel %vm460_vm0, %v8992_v13, %v5052_v59  ;;  %v5073_v59 = vunpack.i.h.bf16 %v6789_v35 }
 0x2c0   : > { %v6906_v10 = vpop.permute.xlu2 %5130 }
 0x2c1   : > { %2038 = vmatmul.f32.gmra.mxu2 %v1672_v21  ;;  %v5133_v14 = vunpack.i.h.bf16 %v6906_v10  ;;  %v1695_v21 = vsel %vm460_vm0, %v6613_v57, %v1328_v41  ;;  %v1334_v57 = vpop.permute.xlu0 %1333 }
 0x2c2   : > { %1993 = vmatmul.f32.gmra.mxu1 %v1657_v24  ;;  %2115 = vmatmul.f32.gmra.mxu3 %v1692_v37  ;;  %v6878_v25 = vpop.permute.xlu1 %5095  ;;  %v1712_v24 = vsel %vm460_vm0, %v975_v19, %v1426_v15  ;;  %v5058_v37 = vunpack.i.h.bf16 %v6768_v52  ;;  %v1696_v52 = vsel %vm460_vm0, %v6606_v27, %v6756_v34  ;;  %v977_v27 = vld [vmem:[#allocation2 + $0x39] sm:$0xff] }
 0x2c3   : > { %v1745_v51 = vsel %vm460_vm0, %v1041_v61, %v5133_v14  ;;  %v1698_v14 = vsel %vm460_vm0, %v6625_v48, %v1334_v57  ;;  %v979_v48 = vld [vmem:[#allocation2 + $0x51] sm:$0xff] }
 0x2c4   : > { %v1103_v57 = vld [vmem:[#allocation2 + $0x32] sm:$0xff] }
 0x2c9   : > { %2041 = vmatmul.f32.gmra.mxu2 %v1673_v58 }
 0x2ca   : > { %1996 = vmatmul.f32.gmra.mxu1 %v1658_v60  ;;  %2118 = vmatmul.f32.gmra.mxu3 %v1693_v32  ;;  %v6891_v53 = vpop.permute.xlu1 %5110  ;;  %v6922_v60 = vld [vmem:[#allocation2 + $0x158] sm:$0xff] }
 0x2cb   : > { %v976_v32 = vld [vmem:[#allocation2 + $0x31] sm:$0xff]  ;;  %v1676_v49 = vsel %vm460_vm0, %v6922_v60, %v5058_v37 }
 0x2cc   : > { %v6914_v0 = vpop.f32.mrf.mxu3  ;;  %v1713_v41 = vsel %vm460_vm0, %v976_v32, %v6778_v1 }
 0x2cd   : > { %8993 = vst [vmem:[#allocation18_spill] sm:$0xff] %v6914_v0 }
 0x2d1   : > { %2044 = vmatmul.f32.gmra.mxu2 %v1674_v4 }
 0x2d2   : > { %2121 = vmatmul.f32.gmra.mxu3 %v1694_v26  ;;  %2189 = vmatmul.f32.vlgmr.msra.gmra.mxu1 %v1711_v55  ;;  %v6901_v62 = vpop.permute.xlu1 %5125  ;;  %v6939_v55 = vpop.permute.xlu2 %5145  ;;  %v6941_v26 = vld [vmem:[#allocation2 + $0x168] sm:$0xff] }
 0x2d3   : > { %v5127_v36 = vunpack.i.l.bf16 %v6901_v62  ;;  %v1677_v34 = vsel %vm460_vm0, %v6941_v26, %v5067_v38  ;;  %v5148_v1 = vunpack.i.h.bf16 %v6939_v55 }
 0x2d5   : > { %v1744_v17 = vsel %vm460_vm0, %v1040_v20, %v5127_v36  ;;  %v1714_v36 = vsel %vm460_vm0, %v977_v27, %v6846_v56  ;;  %v1747_v19 = vsel %vm460_vm0, %v6838_v3, %v5148_v1  ;;  %v978_v56 = vld [vmem:[#allocation2 + $0x49] sm:$0xff]  ;;  %v1104_v1 = vld [vmem:[#allocation2 + $0x3a] sm:$0xff] }
 0x2d6   : > { %2305 = vmatmul.f32.gmra.mxu0 %v1744_v17 }
 0x2d7   : > { %v6935_v4 = vpop.f32.mrf.mxu3 }
 0x2d9   : > { %2047 = vmatmul.f32.gmra.mxu2 %v1675_v45  ;;  %v1678_v45 = vsel %vm460_vm0, %v6962_v43, %v5073_v59 }
 0x2da   : > { %2124 = vmatmul.f32.gmra.mxu3 %v1695_v21  ;;  %2192 = vmatmul.f32.gmra.mxu1 %v1712_v24  ;;  %v6920_v58 = vpop.permute.xlu1 %5140  ;;  %v5082_v24 = vunpack.i.l.bf16 %v6864_v42 }
 0x2db   : > { %v5142_v6 = vunpack.i.l.bf16 %v6920_v58 }
 0x2dc   : > { %v6917_v39 = vpop.f32.mrf.mxu2 }
 0x2dd   : > { %v1746_v12 = vsel %vm460_vm0, %v6820_v11, %v5142_v6  ;;  %v5076_v11 = vpop.permute.xlu0 %5075  ;;  %v1699_v6 = vsel %vm460_vm0, %v6661_v18, %v6801_v33  ;;  %v980_v33 = vld [vmem:[#allocation2 + $0x61] sm:$0xff] }
 0x2de   : > { %2308 = vmatmul.f32.gmra.mxu0 %v1745_v51  ;;  %v5077_v17 = vunpack.i.l.bf16 %v5076_v11  ;;  %v6977_v51 = vpop.permute.xlu2 %5160  ;;  %v5078_v38 = vunpack.i.h.bf16 %v5076_v11 }
 0x2e0   : > { %v1715_v21 = vsel %vm460_vm0, %v978_v56, %v5077_v17  ;;  %v5083_v17 = vunpack.i.h.bf16 %v6864_v42 }
 0x2e1   : > { %2050 = vmatmul.f32.gmra.mxu2 %v1676_v49  ;;  %v5163_v49 = vunpack.i.h.bf16 %v6977_v51 }
 0x2e2   : > { %2127 = vmatmul.f32.gmra.mxu3 %v1696_v52  ;;  %2195 = vmatmul.f32.gmra.mxu1 %v1713_v41  ;;  %v6958_v13 = vpop.permute.xlu1 %5155  ;;  %v1716_v52 = vsel %vm460_vm0, %v979_v48, %v5082_v24  ;;  %v5087_v41 = vunpack.i.l.bf16 %v6818_v9  ;;  %v1047_v48 = vld [vmem:[#allocation2 + $0x90] sm:$0xff] }
 0x2e3   : > { %v5157_v35 = vunpack.i.l.bf16 %v6958_v13  ;;  %v1749_v27 = vsel %vm460_vm0, %v6870_v28, %v5163_v49  ;;  %v5097_v49 = vunpack.i.l.bf16 %v6878_v25 }
 0x2e4   : > { %v6933_v23 = vpop.f32.mrf.mxu2  ;;  %v1717_v59 = vsel %vm460_vm0, %v980_v33, %v5087_v41 }
 0x2e5   : > { %v1748_v61 = vsel %vm460_vm0, %v6853_v30, %v5157_v35  ;;  %v5091_v11 = vpop.permute.xlu0 %5090 }
 0x2e6   : > { %2311 = vmatmul.f32.gmra.mxu0 %v1746_v12  ;;  %v7010_v35 = vpop.permute.xlu2 %5175 }
 0x2e7   : > { %v5178_v24 = vunpack.i.h.bf16 %v7010_v35 }
 0x2e9   : > { %2053 = vmatmul.f32.gmra.mxu2 %v1677_v34 }
 0x2ea   : > { %2130 = vmatmul.f32.gmra.mxu3 %v1697_v46  ;;  %2198 = vmatmul.f32.gmra.mxu1 %v1714_v36  ;;  %v6994_v34 = vpop.permute.xlu1 %5170  ;;  %v1700_v36 = vsel %vm460_vm0, %v6653_v8, %v5078_v38  ;;  %v982_v38 = vld [vmem:[#allocation2 + $0x79] sm:$0xff] }
 0x2eb   : > { %v5172_v46 = vunpack.i.l.bf16 %v6994_v34 }
 0x2ec   : > { %v6952_v20 = vpop.f32.mrf.mxu2 }
 0x2ed   : > { %v6954_v15 = vpop.f32.mrf.mxu3 }
 0x2ee   : > { %2314 = vmatmul.f32.gmra.mxu0 %v1747_v19  ;;  %v5092_v19 = vunpack.i.l.bf16 %v5091_v11 }
 0x2ef   : > { %v6960_v7 = vpop.f32.mrf.mxu1 }
 0x2f1   : > { %2056 = vmatmul.f32.gmra.mxu2 %v1678_v45  ;;  %v1750_v45 = vsel %vm460_vm0, %v6882_v40, %v5172_v46  ;;  %v1048_v46 = vld [vmem:[#allocation2 + $0x98] sm:$0xff] }
 0x2f2   : > { %2133 = vmatmul.f32.gmra.mxu3 %v1698_v14  ;;  %2201 = vmatmul.f32.gmra.mxu1 %v1715_v21  ;;  %v981_v14 = vld [vmem:[#allocation2 + $0x69] sm:$0xff]  ;;  %v7026_v41 = vpop.permute.xlu1 %5185 }
 0x2f3   : > { %v1105_v21 = vld [vmem:[#allocation2 + $0x4a] sm:$0xff]  ;;  %v1718_v42 = vsel %vm460_vm0, %v981_v14, %v5092_v19  ;;  %v5187_v33 = vunpack.i.l.bf16 %v7026_v41  ;;  %v7041_v14 = vpop.permute.xlu2 %5190 }
 0x2f4   : > { %v6970_v3 = vpop.f32.mrf.mxu2 }
 0x2f5   : > { %v6973_v37 = vpop.f32.mrf.mxu3 }
 0x2f6   : > { %2317 = vmatmul.f32.gmra.mxu0 %v1748_v61  ;;  %v1701_v61 = vsel %vm460_vm0, %v6686_v31, %v5083_v17  ;;  %v5093_v17 = vunpack.i.h.bf16 %v5091_v11  ;;  %v5106_v11 = vpop.permute.xlu0 %5105 }
 0x2f7   : > { %v6979_v32 = vpop.f32.mrf.mxu1 }
 0x2f9   : > { %4785 = vmatmul.msk.f32.vlgmr.msrb.gmra.mxu2 %vm460_vm0, %v1103_v57  ;;  %v5088_v57 = vunpack.i.h.bf16 %v6818_v9  ;;  %v1719_v9 = vsel %vm460_vm0, %v982_v38, %v5097_v49  ;;  %v5107_v38 = vunpack.i.l.bf16 %v5106_v11 }
 0x2fa   : > { %2136 = vmatmul.f32.gmra.mxu3 %v1699_v6  ;;  %2204 = vmatmul.f32.gmra.mxu1 %v1716_v52  ;;  %v1751_v52 = vsel %vm460_vm0, %v1047_v48, %v5178_v24  ;;  %v1107_v24 = vld [vmem:[#allocation2 + $0x62] sm:$0xff] }
 0x2fc   : > { %v6987_v30 = vpop.f32.mrf.mxu2 }
 0x2fd   : > { %v6990_v12 = vpop.f32.mrf.mxu3 }
 0x2fe   : > { %2320 = vmatmul.f32.gmra.mxu0 %v1749_v27  ;;  %v1106_v27 = vld [vmem:[#allocation2 + $0x52] sm:$0xff] }
 0x2ff   : > { %v6996_v18 = vpop.f32.mrf.mxu1 }
 0x301   : > { %4786 = vmatmul.msk.f32.gmra.mxu2 %vm460_vm0, %v1104_v1  ;;  %v1702_v1 = vsel %vm460_vm0, %v6676_v29, %v5088_v57  ;;  %v1049_v57 = vld [vmem:[#allocation2 + $0xa8] sm:$0xff] }
 0x302   : > { %2139 = vmatmul.f32.gmra.mxu3 %v1700_v36  ;;  %2207 = vmatmul.f32.gmra.mxu1 %v1717_v59  ;;  %v5102_v59 = vunpack.i.l.bf16 %v6836_v22 }
 0x304   : > { %v7003_v28 = vpop.f32.mrf.mxu2 }
 0x305   : > { %v7006_v56 = vpop.f32.mrf.mxu3 }
 0x306   : > { %2323 = vmatmul.f32.gmra.mxu0 %v1750_v45  ;;  %v1752_v45 = vsel %vm460_vm0, %v1048_v46, %v5187_v33  ;;  %v1108_v46 = vld [vmem:[#allocation2 + $0x6a] sm:$0xff] }
 0x307   : > { %v7012_v8 = vpop.f32.mrf.mxu1 }
 0x309   : > { %4787 = vmatmul.msk.f32.gmra.mxu2 %vm460_vm0, %v1105_v21  ;;  %v983_v21 = vld [vmem:[#allocation2 + $0x81] sm:$0xff] }
 0x30a   : > { %2142 = vmatmul.f32.gmra.mxu3 %v1701_v61  ;;  %2210 = vmatmul.f32.gmra.mxu1 %v1718_v42  ;;  %v5193_v61 = vunpack.i.h.bf16 %v7041_v14  ;;  %v1703_v42 = vsel %vm460_vm0, %v6713_v54, %v5093_v17  ;;  %v1720_v48 = vsel %vm460_vm0, %v983_v21, %v5102_v59 }
 0x30c   : > { %v7019_v40 = vpop.f32.mrf.mxu2  ;;  %v1753_v33 = vsel %vm460_vm0, %v1049_v57, %v5193_v61  ;;  %v5112_v61 = vunpack.i.l.bf16 %v6891_v53  ;;  %v7072_v57 = vpop.permute.xlu2 %5205 }
 0x30d   : > { %v7023_v6 = vpop.f32.mrf.mxu3 }
 0x30e   : > { %2326 = vmatmul.f32.gmra.mxu0 %v1751_v52  ;;  %v5098_v52 = vunpack.i.h.bf16 %v6878_v25  ;;  %v1050_v25 = vld [vmem:[#allocation2 + $0xb0] sm:$0xff] }
 0x30f   : > { %v7028_v31 = vpop.f32.mrf.mxu1 }
 0x310   : > { %v1704_v17 = vsel %vm460_vm0, %v6702_v50, %v5098_v52  ;;  %v985_v52 = vld [vmem:[#allocation2 + $0x99] sm:$0xff] }
 0x311   : > { %4788 = vmatmul.msk.f32.gmra.mxu2 %vm460_vm0, %v1106_v27 }
 0x312   : > { %2145 = vmatmul.f32.gmra.mxu3 %v1702_v1  ;;  %2213 = vmatmul.f32.gmra.mxu1 %v1719_v9  ;;  %v7056_v1 = vpop.permute.xlu1 %5200  ;;  %v984_v9 = vld [vmem:[#allocation2 + $0x91] sm:$0xff] }
 0x313   : > { %v5202_v59 = vunpack.i.l.bf16 %v7056_v1 }
 0x314   : > { %v7035_v36 = vpop.f32.mrf.mxu2 }
 0x315   : > { %v7038_v19 = vpop.f32.mrf.mxu3 }
 0x316   : > { %2329 = vmatmul.f32.gmra.mxu0 %v1752_v45  ;;  %v1721_v45 = vsel %vm460_vm0, %v984_v9, %v5107_v38  ;;  %v1109_v38 = vld [vmem:[#allocation2 + $0x7a] sm:$0xff] }
 0x317   : > { %v7043_v29 = vpop.f32.mrf.mxu1 }
 0x319   : > { %4789 = vmatmul.msk.f32.gmra.mxu2 %vm460_vm0, %v1107_v24  ;;  %v5103_v24 = vunpack.i.h.bf16 %v6836_v22  ;;  %v1722_v22 = vsel %vm460_vm0, %v985_v52, %v5112_v61  ;;  %v1110_v61 = vld [vmem:[#allocation2 + $0x82] sm:$0xff] }
 0x31a   : > { %2148 = vmatmul.f32.gmra.mxu3 %v1703_v42  ;;  %2216 = vmatmul.f32.gmra.mxu1 %v1720_v48  ;;  %v1754_v48 = vsel %vm460_vm0, %v1050_v25, %v5202_v59 }
 0x31b   : > { %v1705_v9 = vsel %vm460_vm0, %v6739_v63, %v5103_v24  ;;  %v986_v24 = vld [vmem:[#allocation2 + $0xa9] sm:$0xff] }
 0x31c   : > { %v7050_v49 = vpop.f32.mrf.mxu2 }
 0x31d   : > { %v7053_v27 = vpop.f32.mrf.mxu3 }
 0x31e   : > { %8994 = vst [vmem:[#allocation17_spill] sm:$0xff] %v7053_v27  ;;  %2332 = vmatmul.f32.gmra.mxu0 %v1753_v33  ;;  %v5208_v33 = vunpack.i.h.bf16 %v7072_v57  ;;  %v7102_v27 = vpop.permute.xlu2 %5220 }
 0x31f   : > { %v7058_v54 = vpop.f32.mrf.mxu1 }
 0x321   : > { %4790 = vmatmul.msk.f32.gmra.mxu2 %vm460_vm0, %v1108_v46  ;;  %v1051_v46 = vld [vmem:[#allocation2 + $0xc0] sm:$0xff] }
 0x322   : > { %2151 = vmatmul.f32.gmra.mxu3 %v1704_v17  ;;  %2219 = vmatmul.f32.gmra.mxu1 %v1721_v45  ;;  %v5117_v17 = vunpack.i.l.bf16 %v6851_v16  ;;  %v5108_v45 = vunpack.i.h.bf16 %v5106_v11  ;;  %v5121_v16 = vpop.permute.xlu0 %5120  ;;  %v1052_v11 = vld [vmem:[#allocation2 + $0xc8] sm:$0xff] }
 0x324   : > { %v7065_v21 = vpop.f32.mrf.mxu2 }
 0x325   : > { %v7069_v42 = vpop.f32.mrf.mxu3 }
 0x326   : > { %8995 = vst [vmem:[#allocation23_spill] sm:$0xff] %v7069_v42  ;;  %2335 = vmatmul.f32.gmra.mxu0 %v1754_v48  ;;  %v1755_v48 = vsel %vm460_vm0, %v1051_v46, %v5208_v33  ;;  %v7087_v42 = vpop.permute.xlu1 %5215  ;;  %v5123_v46 = vunpack.i.h.bf16 %v5121_v16 }
 0x327   : > { %v7074_v50 = vpop.f32.mrf.mxu1  ;;  %v5217_v52 = vunpack.i.l.bf16 %v7087_v42 }
 0x329   : > { %4791 = vmatmul.msk.f32.gmra.mxu2 %vm460_vm0, %v1109_v38  ;;  %v1706_v38 = vsel %vm460_vm0, %v6728_v2, %v5108_v45  ;;  %v987_v45 = vld [vmem:[#allocation2 + $0xb1] sm:$0xff] }
 0x32a   : > { %2154 = vmatmul.f32.gmra.mxu3 %v1705_v9  ;;  %2222 = vmatmul.f32.gmra.mxu1 %v1722_v22  ;;  %v1723_v9 = vsel %vm460_vm0, %v986_v24, %v5117_v17  ;;  %v5113_v22 = vunpack.i.h.bf16 %v6891_v53  ;;  %v7109_v17 = vld [vmem:[%s8927_s7] ss:$0 sm:$0xff]  ;;  %v1111_v24 = vld [vmem:[#allocation2 + $0x92] sm:$0xff] }
 0x32c   : > { %v7081_v59 = vpop.f32.mrf.mxu2  ;;  %v1707_v53 = vsel %vm460_vm0, %v6765_v47, %v5113_v22  ;;  %v1102_v22 = vld [vmem:[#allocation2 + $0x1a1] sm:$0xff] }
 0x32d   : > { %v7084_v25 = vpop.f32.mrf.mxu3  ;;  %1613 = vrot.lane.b32.xlu1 %v1102_v22, %s5704_s12 }
 0x32e   : > { %8996 = vst [vmem:[#allocation21_spill] sm:$0xff] %v7084_v25  ;;  %2338 = vmatmul.f32.gmra.mxu0 %v1755_v48  ;;  %v1756_v25 = vsel %vm460_vm0, %v1052_v11, %v5217_v52  ;;  %v1053_v52 = vld [vmem:[#allocation2 + $0xd8] sm:$0xff]  ;;  %v5132_v11 = vunpack.i.l.bf16 %v6906_v10  ;;  %v7122_v0 = vpop.permute.xlu1 %5230 }
 0x32f   : > { %v7089_v63 = vpop.f32.mrf.mxu1  ;;  %v5232_v10 = vunpack.i.l.bf16 %v7122_v0 }
 0x330   : > { %8997 = vst [vmem:[#allocation26_spill] sm:$0xff] %v7089_v63 }
 0x331   : > { %4792 = vmatmul.msk.f32.gmra.mxu2 %vm460_vm0, %v1110_v61  ;;  %v5223_v61 = vunpack.i.h.bf16 %v7102_v27 }
 0x332   : > { %2157 = vmatmul.f32.gmra.mxu3 %v1706_v38  ;;  %2225 = vmatmul.f32.gmra.mxu1 %v1723_v9  ;;  %v1724_v38 = vsel %vm460_vm0, %v987_v45, %v5123_v46  ;;  %v988_v45 = vld [vmem:[#allocation2 + $0xc1] sm:$0xff] }
 0x333   : > { %v1757_v63 = vsel %vm460_vm0, %v1053_v52, %v5223_v61  ;;  %v1725_v61 = vsel %vm460_vm0, %v988_v45, %v5132_v11  ;;  %v989_v45 = vld [vmem:[#allocation2 + $0xc9] sm:$0xff] }
 0x334   : > { %v7096_v33 = vpop.f32.mrf.mxu2 }
 0x335   : > { %v7099_v48 = vpop.f32.mrf.mxu3 }
 0x336   : > { %8998 = vst [vmem:[#allocation19_spill] sm:$0xff] %v7099_v48  ;;  %2341 = vmatmul.f32.gmra.mxu0 %v1756_v25  ;;  %v2001_v25 = vadd.f32 %v7109_v17, %v6917_v39  ;;  %v5122_v48 = vunpack.i.l.bf16 %v5121_v16  ;;  %v7129_v39 = vld [vmem:[#allocation2 + $0x15a] sm:$0xff] }
 0x337   : > { %v7104_v2 = vpop.f32.mrf.mxu1 }
 0x338   : > { %8999 = vst [vmem:[#allocation20_spill] sm:$0xff] %v7104_v2  ;;  %v1708_v16 = vsel %vm460_vm0, %v7129_v39, %v5122_v48 }
 0x339   : > { %4793 = vmatmul.msk.f32.gmra.mxu2 %vm460_vm0, %v1111_v24  ;;  %v1112_v24 = vld [vmem:[#allocation2 + $0x9a] sm:$0xff] }
 0x33a   : > { %2160 = vmatmul.f32.gmra.mxu3 %v1707_v53  ;;  %2228 = vmatmul.f32.gmra.mxu1 %v1724_v38  ;;  %v1054_v53 = vld [vmem:[#allocation2 + $0xe0] sm:$0xff] }
 0x33c   : > { %v7118_v9 = vpop.f32.mrf.mxu2 }
 0x33d   : > { %v2113_v2 = vpop.f32.mrf.mxu3 }
 0x33e   : > { %v7124_v47 = vadd.f32 %v2113_v2, %v2001_v25  ;;  %2344 = vmatmul.f32.gmra.mxu0 %v1757_v63  ;;  %v5136_v2 = vpop.permute.xlu0 %5135  ;;  %v2004_v63 = vadd.f32 %v7109_v17, %v6933_v23  ;;  %v5128_v25 = vunpack.i.h.bf16 %v6901_v62  ;;  %v2007_v62 = vadd.f32 %v7109_v17, %v6952_v20 }
 0x33f   : > { %v7126_v46 = vpop.f32.mrf.mxu1  ;;  %v5138_v52 = vunpack.i.h.bf16 %v5136_v2 }
 0x340   : > { %9000 = vst [vmem:[#allocation27_spill] sm:$0xff] %v7124_v47  ;;  %v1758_v47 = vsel %vm460_vm0, %v1054_v53, %v5232_v10 }
 0x341   : > { %4794 = vmatmul.msk.f32.gmra.mxu2 %vm460_vm0, %v1112_v24  ;;  %v1113_v24 = vld [vmem:[#allocation2 + $0xaa] sm:$0xff]  ;;  %v1726_v23 = vsel %vm460_vm0, %v989_v45, %v5138_v52 }
 0x342   : > { %2163 = vmatmul.f32.gmra.mxu3 %v1708_v16  ;;  %2231 = vmatmul.f32.gmra.mxu1 %v1725_v61  ;;  %v1709_v16 = vsel %vm460_vm0, %v6795_v5, %v5128_v25  ;;  %v5137_v61 = vunpack.i.l.bf16 %v5136_v2  ;;  %v990_v5 = vld [vmem:[#allocation2 + $0xd9] sm:$0xff] }
 0x343   : > { %v1114_v25 = vld [vmem:[#allocation2 + $0xb2] sm:$0xff] }
 0x344   : > { %v7138_v38 = vpop.f32.mrf.mxu2  ;;  %v1710_v52 = vsel %vm460_vm0, %v6799_v44, %v5137_v61  ;;  %v991_v44 = vld [vmem:[#allocation2 + $0xe1] sm:$0xff] }
 0x345   : > { %v2116_v22 = vpop.f32.mrf.mxu3  ;;  %v1115_v61 = vld [vmem:[#allocation2 + $0xc2] sm:$0xff] }
 0x346   : > { %v7142_v48 = vadd.f32 %v2116_v22, %v2004_v63  ;;  %2347 = vmatmul.f32.gmra.mxu0 %v1758_v47  ;;  %v5147_v47 = vunpack.i.l.bf16 %v6939_v55  ;;  %v5151_v20 = vpop.permute.xlu0 %5150  ;;  %v2010_v55 = vadd.f32 %v7109_v17, %v6970_v3 }
 0x347   : > { %v7144_v11 = vpop.f32.mrf.mxu1 }
 0x348   : > { %v1727_v45 = vsel %vm460_vm0, %v990_v5, %v5147_v47  ;;  %v1055_v47 = vld [vmem:[#allocation2 + $0xf0] sm:$0xff] }
 0x349   : > { %4795 = vmatmul.msk.f32.gmra.mxu2 %vm460_vm0, %v1113_v24  ;;  %v5143_v24 = vunpack.i.h.bf16 %v6920_v58  ;;  %v2013_v58 = vadd.f32 %v7109_v17, %v6987_v30 }
 0x34a   : > { %2166 = vmatmul.f32.gmra.mxu3 %v1709_v16  ;;  %2234 = vmatmul.f32.gmra.mxu1 %v1726_v23  ;;  %v5153_v16 = vunpack.i.h.bf16 %v5151_v20 }
 0x34c   : > { %v7152_v10 = vpop.f32.mrf.mxu2  ;;  %v1728_v5 = vsel %vm460_vm0, %v991_v44, %v5153_v16  ;;  %v992_v16 = vld [vmem:[#allocation2 + $0xf1] sm:$0xff] }
 0x34d   : > { %v2119_v63 = vpop.f32.mrf.mxu3  ;;  %v1056_v44 = vld [vmem:[#allocation2 + $0xf8] sm:$0xff] }
 0x34e   : > { %v7155_v53 = vadd.f32 %v2119_v63, %v2007_v62  ;;  %v5166_v30 = vpop.permute.xlu0 %5165 }
 0x34f   : > { %v7157_v22 = vpop.f32.mrf.mxu1 }
 0x351   : > { %4796 = vmatmul.msk.f32.gmra.mxu2 %vm460_vm0, %v1114_v25  ;;  %v1759_v25 = vsel %vm460_vm0, %v1055_v47, %v5143_v24  ;;  %v1116_v24 = vld [vmem:[#allocation2 + $0xca] sm:$0xff] }
 0x352   : > { %2169 = vmatmul.f32.gmra.mxu3 %v1710_v52  ;;  %2237 = vmatmul.f32.gmra.mxu1 %v1727_v45  ;;  %v5162_v52 = vunpack.i.l.bf16 %v6977_v51  ;;  %v5152_v45 = vunpack.i.l.bf16 %v5151_v20  ;;  %v2016_v51 = vadd.f32 %v7109_v17, %v7003_v28 }
 0x354   : > { %v7165_v2 = vpop.f32.mrf.mxu2  ;;  %v1729_v47 = vsel %vm460_vm0, %v992_v16, %v5162_v52  ;;  %v993_v52 = vld [vmem:[#allocation2 + $0xf9] sm:$0xff] }
 0x355   : > { %v2122_v23 = vpop.f32.mrf.mxu3  ;;  %v1117_v16 = vld [vmem:[#allocation2 + $0xda] sm:$0xff] }
 0x356   : > { %v7168_v62 = vadd.f32 %v2122_v23, %v2010_v55 }
 0x357   : > { %v7170_v63 = vpop.f32.mrf.mxu1 }
 0x358   : > { %9001 = vst [vmem:[#allocation24_spill] sm:$0xff] %v7168_v62 }
 0x359   : > { %4797 = vmatmul.msk.f32.gmra.mxu2 %vm460_vm0, %v1115_v61  ;;  %v1760_v61 = vsel %vm460_vm0, %v1056_v44, %v5152_v45  ;;  %v1057_v45 = vld [vmem:[#allocation2 + $0x108] sm:$0xff] }
 0x35a   : > { %2240 = vmatmul.f32.gmra.mxu1 %v1728_v5  ;;  %2350 = vmatmul.f32.vlgmr.msrb.gmra.mxu3 %v1759_v25  ;;  %v5158_v5 = vunpack.i.h.bf16 %v6958_v13  ;;  %v5168_v25 = vunpack.i.h.bf16 %v5166_v30  ;;  %v2019_v13 = vadd.f32 %v7109_v17, %v7019_v40  ;;  %v5181_v40 = vpop.permute.xlu0 %5180 }
 0x35c   : > { %v7177_v3 = vpop.f32.mrf.mxu2  ;;  %v1730_v44 = vsel %vm460_vm0, %v993_v52, %v5168_v25  ;;  %v1058_v52 = vld [vmem:[#allocation2 + $0x110] sm:$0xff] }
 0x35d   : > { %v2125_v55 = vpop.f32.mrf.mxu3 }
 0x35e   : > { %v7180_v23 = vadd.f32 %v2125_v55, %v2013_v58 }
 0x35f   : > { %v7182_v62 = vpop.f32.mrf.mxu1 }
 0x360   : > { %9002 = vst [vmem:[#allocation22_spill] sm:$0xff] %v7180_v23 }
 0x361   : > { %4798 = vmatmul.msk.f32.gmra.mxu2 %vm460_vm0, %v1116_v24  ;;  %v1761_v24 = vsel %vm460_vm0, %v1057_v45, %v5158_v5  ;;  %v994_v5 = vld [vmem:[#allocation2 + $0x109] sm:$0xff] }
 0x362   : > { %2243 = vmatmul.f32.gmra.mxu1 %v1729_v47  ;;  %2353 = vmatmul.f32.gmra.mxu3 %v1760_v61  ;;  %v5177_v47 = vunpack.i.l.bf16 %v7010_v35  ;;  %v5167_v61 = vunpack.i.l.bf16 %v5166_v30  ;;  %v1118_v45 = vld [vmem:[#allocation2 + $0xe2] sm:$0xff]  ;;  %v2022_v35 = vadd.f32 %v7109_v17, %v7035_v36 }
 0x364   : > { %v7189_v20 = vpop.f32.mrf.mxu2 }
 0x365   : > { %v2128_v58 = vpop.f32.mrf.mxu3 }
 0x366   : > { %v7192_v55 = vadd.f32 %v2128_v58, %v2016_v51  ;;  %v7204_v58 = vpop.f32.mrf.mxu0 }
 0x367   : > { %v7194_v23 = vpop.f32.mrf.mxu1 }
 0x368   : > { %9003 = vst [vmem:[#allocation25_spill] sm:$0xff] %v7192_v55 }
 0x369   : > { %4799 = vmatmul.msk.f32.gmra.mxu2 %vm460_vm0, %v1117_v16  ;;  %v1731_v16 = vsel %vm460_vm0, %v994_v5, %v5177_v47  ;;  %v1059_v5 = vld [vmem:[#allocation2 + $0x120] sm:$0xff] }
 0x36a   : > { %2246 = vmatmul.f32.gmra.mxu1 %v1730_v44  ;;  %2356 = vmatmul.f32.gmra.mxu3 %v1761_v24  ;;  %v1762_v44 = vsel %vm460_vm0, %v1058_v52, %v5167_v61  ;;  %v5173_v24 = vunpack.i.h.bf16 %v6994_v34  ;;  %v995_v61 = vld [vmem:[#allocation2 + $0x111] sm:$0xff]  ;;  %v2025_v34 = vadd.f32 %v7109_v17, %v7050_v49  ;;  %v1971_v49 = vadd.f32 %v7109_v17, %v6996_v18 }
 0x36b   : > { %v1119_v52 = vld [vmem:[#allocation2 + $0xf2] sm:$0xff] }
 0x36c   : > { %v7201_v28 = vpop.f32.mrf.mxu2  ;;  %v1763_v36 = vsel %vm460_vm0, %v1059_v5, %v5173_v24  ;;  %v996_v5 = vld [vmem:[#allocation2 + $0x121] sm:$0xff] }
 0x36d   : > { %9004 = vst [vmem:[#allocation28_spill] sm:$0xff] %v7201_v28  ;;  %v2131_v51 = vpop.f32.mrf.mxu3 }
 0x36e   : > { %v7206_v55 = vadd.f32 %v2131_v51, %v2019_v13  ;;  %v5183_v13 = vunpack.i.h.bf16 %v5181_v40 }
 0x36f   : > { %v7208_v25 = vpop.f32.mrf.mxu1 }
 0x370   : > { %9005 = vst [vmem:[#allocation29_spill] sm:$0xff] %v7206_v55  ;;  %v2306_v55 = vpop.f32.mrf.mxu0 }
 0x371   : > { %4800 = vmatmul.msk.f32.gmra.mxu2 %vm460_vm0, %v1118_v45  ;;  %v1968_v45 = vadd.f32 %v7109_v17, %v6979_v32 }
 0x372   : > { %2249 = vmatmul.f32.gmra.mxu1 %v1731_v16  ;;  %2359 = vmatmul.f32.gmra.mxu3 %v1762_v44  ;;  %v1732_v16 = vsel %vm460_vm0, %v995_v61, %v5183_v13 }
 0x374   : > { %v7215_v30 = vpop.f32.mrf.mxu2 }
 0x375   : > { %9006 = vst [vmem:[#allocation30_spill] sm:$0xff] %v7215_v30  ;;  %v2134_v51 = vpop.f32.mrf.mxu3  ;;  %v2081_v30 = vadd.f32 %v6935_v4, %v1968_v45  ;;  %v5196_v4 = vpop.permute.xlu0 %5195 }
 0x376   : > { %v7218_v28 = vadd.f32 %v2134_v51, %v2022_v35  ;;  %v5192_v35 = vunpack.i.l.bf16 %v7041_v14  ;;  %v5182_v51 = vunpack.i.l.bf16 %v5181_v40  ;;  %v5198_v45 = vunpack.i.h.bf16 %v5196_v4 }
 0x377   : > { %v7220_v47 = vpop.f32.mrf.mxu1  ;;  %v2194_v13 = vadd.f32 %v7170_v63, %v2081_v30  ;;  %v2028_v63 = vadd.f32 %v7109_v17, %v7065_v21  ;;  %v5188_v30 = vunpack.i.h.bf16 %v7026_v41  ;;  %v1974_v21 = vadd.f32 %v7109_v17, %v7012_v8 }
 0x378   : > { %9007 = vst [vmem:[#allocation31_spill] sm:$0xff] %v7218_v28  ;;  %v2309_v61 = vpop.f32.mrf.mxu0 }
 0x379   : > { %4801 = vmatmul.msk.f32.gmra.mxu2 %vm460_vm0, %v1119_v52  ;;  %v1060_v52 = vld [vmem:[#allocation2 + $0x128] sm:$0xff] }
 0x37a   : > { %2252 = vmatmul.f32.gmra.mxu1 %v1732_v16  ;;  %2362 = vmatmul.f32.gmra.mxu3 %v1763_v36  ;;  %v1120_v16 = vld [vmem:[#allocation2 + $0xfa] sm:$0xff]  ;;  %v1733_v36 = vsel %vm460_vm0, %v996_v5, %v5192_v35  ;;  %v1764_v14 = vsel %vm460_vm0, %v1060_v52, %v5182_v51  ;;  %v997_v52 = vld [vmem:[#allocation2 + $0x129] sm:$0xff] }
 0x37b   : > { %v1734_v41 = vsel %vm460_vm0, %v997_v52, %v5198_v45 }
 0x37c   : > { %v7229_v44 = vpop.f32.mrf.mxu2 }
 0x37d   : > { %v2137_v28 = vpop.f32.mrf.mxu3 }
 0x37e   : > { %v7233_v32 = vadd.f32 %v2137_v28, %v2025_v34  ;;  %v2307_v28 = vadd.f32 %v2306_v55, %v2194_v13  ;;  %v2084_v34 = vadd.f32 %v6954_v15, %v1971_v49  ;;  %v1061_v55 = vld [vmem:[#allocation2 + $0x138] sm:$0xff]  ;;  %v1121_v13 = vld [vmem:[#allocation2 + $0x10a] sm:$0xff] }
 0x37f   : > { %v7236_v24 = vpop.f32.mrf.mxu1 }
 0x380   : > { %9008 = vst [vmem:[#allocation32_spill] sm:$0xff] %v7233_v32  ;;  %v2197_v51 = vadd.f32 %v7182_v62, %v2084_v34  ;;  %v2312_v15 = vpop.f32.mrf.mxu0  ;;  %v2031_v62 = vadd.f32 %v7109_v17, %v7081_v59  ;;  %v1977_v59 = vadd.f32 %v7109_v17, %v7028_v31 }
 0x381   : > { %4802 = vmatmul.msk.f32.gmra.mxu2 %vm460_vm0, %v1120_v16  ;;  %v1765_v16 = vsel %vm460_vm0, %v1061_v55, %v5188_v30 }
 0x382   : > { %2255 = vmatmul.f32.gmra.mxu1 %v1733_v36  ;;  %2365 = vmatmul.f32.gmra.mxu3 %v1764_v14  ;;  %v2310_v49 = vadd.f32 %v2309_v61, %v2197_v51  ;;  %v5207_v14 = vunpack.i.l.bf16 %v7072_v57  ;;  %v1062_v61 = vld [vmem:[#allocation2 + $0x140] sm:$0xff]  ;;  %v1122_v51 = vld [vmem:[#allocation2 + $0x112] sm:$0xff]  ;;  %v2090_v31 = vadd.f32 %v6990_v12, %v1977_v59 }
 0x384   : > { %v2419_v40 = vpop.f32.mrf.mxu2 }
 0x385   : > { %v2140_v18 = vpop.f32.mrf.mxu3  ;;  %v7247_v32 = vadd.f32 %v2419_v40, %v2307_v28  ;;  %v5197_v28 = vunpack.i.l.bf16 %v5196_v4 }
 0x386   : > { %v7249_v35 = vadd.f32 %v2140_v18, %v2028_v63  ;;  %v2087_v63 = vadd.f32 %v6973_v37, %v1974_v21  ;;  %v998_v18 = vld [vmem:[#allocation2 + $0x139] sm:$0xff]  ;;  %v5211_v37 = vpop.permute.xlu0 %5210  ;;  %v5203_v21 = vunpack.i.h.bf16 %v7056_v1 }
 0x387   : > { %v7252_v5 = vpop.f32.mrf.mxu1  ;;  %v1735_v57 = vsel %vm460_vm0, %v998_v18, %v5207_v14  ;;  %v1766_v4 = vsel %vm460_vm0, %v1062_v61, %v5197_v28  ;;  %v1063_v28 = vld [vmem:[#allocation2 + $0x150] sm:$0xff]  ;;  %v5212_v18 = vunpack.i.l.bf16 %v5211_v37  ;;  %vm2513_vm13 = vcmp.gt.f32.partialorder %v7247_v32, 0.0 }
 0x388   : > { %9009 = vst [vmem:[#allocation33_spill] sm:$0xff] %v7249_v35  ;;  %v2200_v30 = vadd.f32 %v7194_v23, %v2087_v63  ;;  %v2034_v23 = vadd.f32 %v7109_v17, %v7096_v33  ;;  %v2315_v55 = vpop.f32.mrf.mxu0  ;;  %v1123_v63 = vld [vmem:[#allocation2 + $0x122] sm:$0xff]  ;;  %v1980_v33 = vadd.f32 %v7109_v17, %v7043_v29 }
 0x389   : > { %4803 = vmatmul.msk.f32.gmra.mxu2 %vm460_vm0, %v1121_v13  ;;  %v2687_v35 = vld [vmem:[%s8924_s4 + $0x40] sm:$0xff] }
 0x38a   : > { %2258 = vmatmul.f32.gmra.mxu1 %v1734_v41  ;;  %2368 = vmatmul.f32.gmra.mxu3 %v1765_v16  ;;  %v2313_v52 = vadd.f32 %v2312_v15, %v2200_v30  ;;  %v5213_v41 = vunpack.i.h.bf16 %v5211_v37  ;;  %v999_v15 = vld [vmem:[#allocation2 + $0x141] sm:$0xff]  ;;  %v2093_v61 = vadd.f32 %v7006_v56, %v1980_v33  ;;  %v1986_v33 = vadd.f32 %v7109_v17, %v7074_v50 }
 0x38c   : > { %v2422_v36 = vpop.f32.mrf.mxu2  ;;  %v1736_v1 = vsel %vm460_vm0, %v999_v15, %v5213_v41 }
 0x38d   : > { %v2143_v8 = vpop.f32.mrf.mxu3  ;;  %v7263_v40 = vadd.f32 %v2422_v36, %v2310_v49  ;;  %v2203_v36 = vadd.f32 %v7208_v25, %v2090_v31  ;;  %v5222_v25 = vunpack.i.l.bf16 %v7102_v27  ;;  %v1768_v27 = vsel %vm460_vm0, %v6922_v60, %v5212_v18  ;;  %v1480_v18 = vpop.permute.xlu2 %1479 }
 0x38e   : > { %v7265_v45 = vadd.f32 %v2143_v8, %v2031_v62  ;;  %v1767_v8 = vsel %vm460_vm0, %v1063_v28, %v5203_v21  ;;  %v5226_v56 = vpop.permute.xlu0 %5225  ;;  %v1001_v28 = vld [vmem:[#allocation2 + $0x159] sm:$0xff] }
 0x38f   : > { %v7268_v34 = vpop.f32.mrf.mxu1  ;;  %v2316_v12 = vadd.f32 %v2315_v55, %v2203_v36  ;;  %v1983_v55 = vadd.f32 %v7109_v17, %v7058_v54  ;;  %v5228_v41 = vunpack.i.h.bf16 %v5226_v56  ;;  %vm2514_vm15 = vcmp.gt.f32.partialorder %v7263_v40, 0.0 }
 0x390   : > { %9010 = vst [vmem:[#allocation34_spill] sm:$0xff] %v7265_v45  ;;  %v2318_v29 = vpop.f32.mrf.mxu0 }
 0x391   : > { %4804 = vmatmul.msk.f32.gmra.mxu2 %vm460_vm0, %v1122_v51  ;;  %v2096_v31 = vadd.f32 %v7023_v6, %v1983_v55 }
 0x392   : > { %2261 = vmatmul.f32.gmra.mxu1 %v1735_v57  ;;  %2371 = vmatmul.f32.gmra.mxu3 %v1766_v4  ;;  %v2206_v57 = vadd.f32 %v7220_v47, %v2093_v61  ;;  %v5218_v47 = vunpack.i.h.bf16 %v7087_v42 }
 0x393   : > { %v2209_v36 = vadd.f32 %v7236_v24, %v2096_v31  ;;  %v5227_v24 = vunpack.i.l.bf16 %v5226_v56 }
 0x394   : > { %v2425_v13 = vpop.f32.mrf.mxu2  ;;  %v2319_v37 = vadd.f32 %v2318_v29, %v2206_v57  ;;  %v1769_v42 = vsel %vm460_vm0, %v6941_v26, %v5218_v47  ;;  %v1002_v29 = vld [vmem:[#allocation2 + $0x169] sm:$0xff]  ;;  %v1067_v47 = vld [vmem:[#allocation2 + $0x180] sm:$0xff] }
 0x395   : > { %v2146_v16 = vpop.f32.mrf.mxu3  ;;  %v7279_v49 = vadd.f32 %v2425_v13, %v2313_v52  ;;  %v1000_v52 = vld [vmem:[#allocation2 + $0x151] sm:$0xff]  ;;  %v1126_v26 = vld [vmem:[#allocation2 + $0x142] sm:$0xff]  ;;  %v1739_v57 = vsel %vm460_vm0, %v1002_v29, %v1480_v18 }
 0x396   : > { %v7281_v62 = vadd.f32 %v2146_v16, %v2034_v23  ;;  %v1124_v23 = vld [vmem:[#allocation2 + $0x12a] sm:$0xff]  ;;  %v1737_v13 = vsel %vm460_vm0, %v1000_v52, %v5222_v25  ;;  %v1770_v52 = vsel %vm460_vm0, %v6962_v43, %v5227_v24  ;;  %v1610_v55 = vpop.permute.xlu0 %1609  ;;  %v1069_v24 = vld [vmem:[#allocation2 + $0x198] sm:$0xff] }
 0x397   : > { %v7284_v14 = vpop.f32.mrf.mxu1  ;;  %vm2515_vm1 = vcmp.gt.f32.partialorder %v7279_v49, 0.0 }
 0x398   : > { %9011 = vst [vmem:[#allocation35_spill] sm:$0xff] %v7281_v62  ;;  %v2321_v60 = vpop.f32.mrf.mxu0 }
 0x399   : > { %4805 = vmatmul.msk.f32.gmra.mxu2 %vm460_vm0, %v1123_v63  ;;  %v1125_v63 = vld [vmem:[#allocation2 + $0x13a] sm:$0xff]  ;;  %v2322_v6 = vadd.f32 %v2321_v60, %v2209_v36  ;;  %v1612_v60 = vpop.permute.xlu2 %1611 }
 0x39a   : > { %2264 = vmatmul.f32.gmra.mxu1 %v1736_v1  ;;  %2374 = vmatmul.f32.gmra.mxu3 %v1767_v8  ;;  %v1738_v1 = vsel %vm460_vm0, %v1001_v28, %v5228_v41  ;;  %v1127_v41 = vld [vmem:[#allocation2 + $0x152] sm:$0xff]  ;;  %v1773_v29 = vsel %vm460_vm0, %v1069_v24, %v1612_v60 }
 0x39c   : > { %v2428_v30 = vpop.f32.mrf.mxu2 }
 0x39d   : > { %v7293_v51 = vpop.f32.mrf.mxu3  ;;  %v7295_v59 = vadd.f32 %v2428_v30, %v2316_v12  ;;  %v2099_v12 = vadd.f32 %v7038_v19, %v1986_v33  ;;  %v1004_v33 = vld [vmem:[#allocation2 + $0x181] sm:$0xff] }
 0x39e   : > { %9012 = vst [vmem:[#allocation36_spill] sm:$0xff] %v7293_v51  ;;  %v2689_v51 = vld [vmem:[%s8924_s4 + $0x50] sm:$0xff] }
 0x39f   : > { %v7298_v4 = vpop.f32.mrf.mxu1  ;;  %v2212_v50 = vadd.f32 %v7252_v5, %v2099_v12  ;;  %vm2516_vm2 = vcmp.gt.f32.partialorder %v7295_v59, 0.0 }
 0x3a1   : > { %4806 = vmatmul.msk.f32.gmra.mxu2 %vm460_vm0, %v1124_v23  ;;  %v2324_v23 = vpop.f32.mrf.mxu0 }
 0x3a2   : > { %2267 = vmatmul.f32.gmra.mxu1 %v1737_v13  ;;  %2377 = vmatmul.f32.gmra.mxu3 %v1768_v27  ;;  %v2325_v19 = vadd.f32 %v2324_v23, %v2212_v50  ;;  %v5233_v27 = vunpack.i.h.bf16 %v7122_v0  ;;  %v1486_v50 = vpop.permute.xlu2 %1485  ;;  %v1070_v23 = vld [vmem:[#allocation2 + $0x1a0] sm:$0xff] }
 0x3a4   : > { %v2431_v21 = vpop.f32.mrf.mxu2  ;;  %v1771_v31 = vsel %vm460_vm0, %v1067_v47, %v5233_v27 }
 0x3a5   : > { %v7308_v16 = vpop.f32.mrf.mxu3  ;;  %v7310_v54 = vadd.f32 %v2431_v21, %v2319_v37  ;;  %v1482_v37 = vpop.permute.xlu1 %1481  ;;  %v1003_v21 = vld [vmem:[#allocation2 + $0x171] sm:$0xff] }
 0x3a6   : > { %9013 = vst [vmem:[#allocation37_spill] sm:$0xff] %v7308_v16  ;;  %v1740_v43 = vsel %vm460_vm0, %v1003_v21, %v1482_v37  ;;  %v1130_v37 = vld [vmem:[#allocation2 + $0x172] sm:$0xff] }
 0x3a7   : > { %v7313_v15 = vpop.f32.mrf.mxu1  ;;  %vm2517_vm3 = vcmp.gt.f32.partialorder %v7310_v54, 0.0 }
 0x3a9   : > { %4807 = vmatmul.msk.f32.gmra.mxu2 %vm460_vm0, %v1125_v63  ;;  %v1484_v63 = vpop.permute.xlu0 %1483 }
 0x3aa   : > { %2270 = vmatmul.f32.gmra.mxu1 %v1738_v1  ;;  %2380 = vmatmul.f32.gmra.mxu3 %v1769_v42  ;;  %v1068_v1 = vld [vmem:[#allocation2 + $0x188] sm:$0xff]  ;;  %v1741_v42 = vsel %vm460_vm0, %v1004_v33, %v1484_v63 }
 0x3ab   : > { %v1132_v63 = vld [vmem:[#allocation2 + $0x18a] sm:$0xff] }
 0x3ac   : > { %v2434_v8 = vpop.f32.mrf.mxu2 }
 0x3ad   : > { %v7322_v30 = vpop.f32.mrf.mxu3  ;;  %v7324_v25 = vadd.f32 %v2434_v8, %v2322_v6  ;;  %v1772_v6 = vsel %vm460_vm0, %v1068_v1, %v1610_v55 }
 0x3ae   : > { %9014 = vst [vmem:[#allocation38_spill] sm:$0xff] %v7322_v30 }
 0x3af   : > { %v7327_v61 = vpop.f32.mrf.mxu1  ;;  %vm2518_vm5 = vcmp.gt.f32.partialorder %v7324_v25, 0.0 }
 0x3b1   : > { %4808 = vmatmul.msk.f32.gmra.mxu2 %vm460_vm0, %v1126_v26  ;;  %v1005_v26 = vld [vmem:[#allocation2 + $0x189] sm:$0xff] }
 0x3b2   : > { %2273 = vmatmul.f32.gmra.mxu1 %v1739_v57  ;;  %2383 = vmatmul.f32.gmra.mxu3 %v1770_v52  ;;  %v1129_v57 = vld [vmem:[#allocation2 + $0x16a] sm:$0xff]  ;;  %v1742_v52 = vsel %vm460_vm0, %v1005_v26, %v1486_v50  ;;  %v1134_v26 = vld [vmem:[#allocation2 + $0x1a2] sm:$0xff] }
 0x3b4   : > { %v2437_v13 = vpop.f32.mrf.mxu2 }
 0x3b5   : > { %v7334_v5 = vpop.f32.mrf.mxu3  ;;  %v7336_v56 = vadd.f32 %v2437_v13, %v2325_v19 }
 0x3b6   : > { %9015 = vst [vmem:[#allocation39_spill] sm:$0xff] %v7334_v5  ;;  %v2690_v5 = vld [vmem:[%s8924_s4 + $0x58] sm:$0xff] }
 0x3b7   : > { %v7341_v36 = vpop.f32.mrf.mxu1  ;;  %vm2519_vm6 = vcmp.gt.f32.partialorder %v7336_v56, 0.0 }
 0x3b9   : > { %4809 = vmatmul.msk.f32.gmra.mxu2 %vm460_vm0, %v1127_v41 }
 0x3ba   : > { %2276 = vmatmul.f32.gmra.mxu1 %v1740_v43  ;;  %2386 = vmatmul.f32.gmra.mxu3 %v1771_v31  ;;  %v1131_v43 = vld [vmem:[#allocation2 + $0x182] sm:$0xff] }
 0x3bc   : > { %v7343_v0 = vpop.f32.mrf.mxu2 }
 0x3bd   : > { %v7345_v28 = vpop.f32.mrf.mxu3 }
 0x3be   : > { %9016 = vst [vmem:[#allocation40_spill] sm:$0xff] %v7345_v28 }
 0x3bf   : > { %v7351_v8 = vpop.f32.mrf.mxu1 }
 0x3c1   : > { %4810 = vmatmul.msk.f32.gmra.mxu2 %vm460_vm0, %v7129_v39  ;;  %v1614_v39 = vpop.permute.xlu1 %1613 }
 0x3c2   : > { %2279 = vmatmul.f32.gmra.mxu1 %v1741_v42  ;;  %2389 = vmatmul.f32.gmra.mxu3 %v1772_v6  ;;  %v1774_v27 = vsel %vm460_vm0, %v1070_v23, %v1614_v39  ;;  %v1133_v6 = vld [vmem:[#allocation2 + $0x19a] sm:$0xff] }
 0x3c4   : > { %v7353_v12 = vpop.f32.mrf.mxu2 }
 0x3c5   : > { %v7355_v18 = vpop.f32.mrf.mxu3 }
 0x3c6   : > { %9017 = vst [vmem:[#allocation41_spill] sm:$0xff] %v7355_v18 }
 0x3c7   : > { %v7364_v13 = vpop.f32.mrf.mxu1 }
 0x3c9   : > { %4811 = vmatmul.msk.f32.gmra.mxu2 %vm460_vm0, %v1129_v57  ;;  %v2694_v57 = vld [vmem:[%s8924_s4 + $0x78] sm:$0xff] }
 0x3ca   : > { %2282 = vmatmul.f32.gmra.mxu1 %v1742_v52  ;;  %2392 = vmatmul.f32.gmra.mxu3 %v1773_v29 }
 0x3cb   : > { %2695 = vmatpush.msra.mxu3 %v2694_v57  ;;  %v2692_v57 = vld [vmem:[%s8924_s4 + $0x68] sm:$0xff] }
 0x3cc   : > { %v7360_v19 = vpop.f32.mrf.mxu2 }
 0x3cd   : > { %v7362_v55 = vpop.f32.mrf.mxu3 }
 0x3ce   : > { %9018 = vst [vmem:[#allocation42_spill] sm:$0xff] %v7362_v55 }
 0x3cf   : > { %v7372_v41 = vpop.f32.mrf.mxu1 }
 0x3d1   : > { %4812 = vmatmul.msk.f32.gmra.mxu2 %vm460_vm0, %v1130_v37  ;;  %v2693_v37 = vld [vmem:[%s8924_s4 + $0x70] sm:$0xff] }
 0x3d2   : > { %2395 = vmatmul.f32.gmra.mxu3 %v1774_v27  ;;  %v2719_v27 = vld [vmem:[%s8925_s5 + $0x8] sm:$0xff] }
 0x3d3   : > { %2737 = vmatpush.msrb.mxu1 %v2719_v27  ;;  %2696 = vmatpush.msra.mxu3 %v2693_v37  ;;  %v2691_v37 = vld [vmem:[%s8924_s4 + $0x60] sm:$0xff] }
 0x3d4   : > { %v7368_v21 = vpop.f32.mrf.mxu2 }
 0x3d5   : > { %v7370_v47 = vpop.f32.mrf.mxu3  ;;  %2697 = vmatpush.msra.mxu3 %v2692_v57 }
 0x3d6   : > { %9019 = vst [vmem:[#allocation43_spill] sm:$0xff] %v7370_v47 }
 0x3d7   : > { %v7380_v33 = vpop.f32.mrf.mxu1  ;;  %2698 = vmatpush.msra.mxu3 %v2691_v37 }
 0x3d9   : > { %4813 = vmatmul.msk.f32.gmra.mxu2 %vm460_vm0, %v1131_v43  ;;  %2699 = vmatpush.msra.mxu3 %v2690_v5  ;;  %v2688_v5 = vld [vmem:[%s8924_s4 + $0x48] sm:$0xff] }
 0x3db   : > { %2700 = vmatpush.msra.mxu3 %v2689_v51 }
 0x3dc   : > { %v7375_v31 = vpop.f32.mrf.mxu2 }
 0x3dd   : > { %v7377_v60 = vpop.f32.mrf.mxu3  ;;  %2701 = vmatpush.msra.mxu3 %v2688_v5 }
 0x3df   : > { %v7387_v24 = vpop.f32.mrf.mxu1  ;;  %2702 = vmatpush.msra.mxu3 %v2687_v35  ;;  %v2686_v35 = vld [vmem:[%s8924_s4 + $0x38] sm:$0xff] }
 0x3e1   : > { %4814 = vmatmul.msk.f32.gmra.mxu2 %vm460_vm0, %v1132_v63  ;;  %2703 = vmatpush.msra.mxu3 %v2686_v35 }
 0x3e4   : > { %v7382_v1 = vpop.f32.mrf.mxu2 }
 0x3e5   : > { %v7384_v42 = vpop.f32.mrf.mxu3 }
 0x3e7   : > { %v7399_v39 = vpop.f32.mrf.mxu1 }
 0x3e9   : > { %4815 = vmatmul.msk.f32.gmra.mxu2 %vm460_vm0, %v1133_v6  ;;  %v7413_v6 = vpop.f32.mrf.mxu0 }
 0x3ec   : > { %v7389_v50 = vpop.f32.mrf.mxu2 }
 0x3ed   : > { %v7391_v29 = vpop.f32.mrf.mxu3 }
 0x3ef   : > { %v7411_v63 = vpop.f32.mrf.mxu1 }
 0x3f1   : > { %4816 = vmatmul.msk.f32.gmra.mxu2 %vm460_vm0, %v1134_v26  ;;  %v7424_v55 = vpop.f32.mrf.mxu0 }
 0x3f4   : > { %v7397_v52 = vpop.f32.mrf.mxu2 }
 0x3f5   : > { %v7401_v23 = vpop.f32.mrf.mxu3 }
 0x3f7   : > { %v7422_v27 = vpop.f32.mrf.mxu1 }
 0x3f8   : > { %9021 = vst [vmem:[#allocation45_spill] sm:$0xff] %v7422_v27 }
 0x3f9   : > { %v7440_v62 = vpop.f32.mrf.mxu0 }
 0x3fc   : > { %v7409_v43 = vpop.f32.mrf.mxu2 }
 0x3fd   : > { %v7415_v26 = vpop.f32.mrf.mxu3 }
 0x3fe   : > { %9020 = vst [vmem:[#allocation44_spill] sm:$0xff] %v7415_v26 }
 0x3ff   : > { %v7436_v30 = vpop.f32.mrf.mxu1 }
 0x400   : > { %9024 = vst [vmem:[#allocation48_spill] sm:$0xff] %v7436_v30 }
 0x401   : > { %v7451_v45 = vpop.f32.mrf.mxu0 }
 0x404   : > { %v7420_v47 = vpop.f32.mrf.mxu2 }
 0x405   : > { %v7429_v18 = vpop.f32.mrf.mxu3 }
 0x406   : > { %9022 = vst [vmem:[#allocation46_spill] sm:$0xff] %v7429_v18 }
 0x407   : > { %v7449_v37 = vpop.f32.mrf.mxu1 }
 0x408   : > { %9028 = vst [vmem:[#allocation52_spill] sm:$0xff] %v7449_v37 }
 0x409   : > { %v7465_v27 = vpop.f32.mrf.mxu0 }
 0x40c   : > { %v7431_v28 = vpop.f32.mrf.mxu2 }
 0x40d   : > { %9023 = vst [vmem:[#allocation47_spill] sm:$0xff] %v7431_v28  ;;  %v7442_v16 = vpop.f32.mrf.mxu3 }
 0x40e   : > { %9026 = vst [vmem:[#allocation50_spill] sm:$0xff] %v7442_v16  ;;  %v1965_v16 = vadd.f32 %v7109_v17, %v6960_v7  ;;  %v9035_v7 = vld [vmem:[#allocation26_spill] sm:$0xff] }
 0x414   : > { %v7438_v57 = vpop.f32.mrf.mxu2 }
 0x415   : > { %9025 = vst [vmem:[#allocation49_spill] sm:$0xff] %v7438_v57  ;;  %v7453_v26 = vpop.f32.mrf.mxu3  ;;  %v7462_v57 = vpop.f32.mrf.mxu1 }
 0x416   : > { %9029 = vst [vmem:[#allocation53_spill] sm:$0xff] %v7453_v26 }
 0x417   : > { %9031 = vst [vmem:[#allocation55_spill] sm:$0xff] %v7462_v57  ;;  %v1989_v57 = vadd.f32 %v7109_v17, %v9035_v7 }
 0x41c   : > { %v7447_v18 = vpop.f32.mrf.mxu2 }
 0x41d   : > { %9027 = vst [vmem:[#allocation51_spill] sm:$0xff] %v7447_v18  ;;  %v9032_v18 = vld [vmem:[#allocation18_spill] sm:$0xff]  ;;  %v7467_v37 = vpop.f32.mrf.mxu3 }
 0x41e   : > { %v2078_v51 = vadd.f32 %v9032_v18, %v1965_v16  ;;  %9033 = vst [vmem:[#allocation18_spill] sm:$0xff] %v7467_v37  ;;  %v7479_v18 = vpop.f32.mrf.mxu1 }
 0x41f   : > { %9036 = vst [vmem:[#allocation26_spill] sm:$0xff] %v7479_v18  ;;  %v9041_v18 = vld [vmem:[#allocation17_spill] sm:$0xff] }
 0x420   : > { %v2191_v26 = vadd.f32 %v7157_v22, %v2078_v51  ;;  %v2545_v22 = vmul.f32 0.1, %v7247_v32  ;;  %v7484_v51 = vpop.f32.mrf.mxu0 }
 0x422   : > { %v2304_v5 = vadd.f32 %v7204_v58, %v2191_v26  ;;  %v1995_v58 = vadd.f32 %v7109_v17, %v7126_v46  ;;  %v7493_v26 = vadd.f32 %v7109_v17, %v7118_v9  ;;  %v2546_v46 = vmul.f32 0.1, %v7263_v40 }
 0x423   : > { %v1998_v9 = vadd.f32 %v7109_v17, %v7144_v11  ;;  %v7514_v35 = vsel %vm2513_vm13, %v7247_v32, %v2545_v22  ;;  %v7525_v11 = vadd.f32 %v7109_v17, %v7177_v3  ;;  %v9045_v22 = vld [vmem:[#allocation19_spill] sm:$0xff] }
 0x424   : > { %v7458_v30 = vpop.f32.mrf.mxu2  ;;  %v2417_v16 = vadd.f32 %v7229_v44, %v2304_v5  ;;  %v7502_v5 = vadd.f32 %v7109_v17, %v7138_v38  ;;  %v2609_v3 = vsel %vm460_vm0, %v7514_v35, 0.0 }
 0x425   : > { %9030 = vst [vmem:[#allocation54_spill] sm:$0xff] %v7458_v30  ;;  %v9037_v30 = vld [vmem:[#allocation20_spill] sm:$0xff]  ;;  %v7496_v44 = vpop.f32.mrf.mxu3 }
 0x426   : > { %v1992_v37 = vadd.f32 %v7109_v17, %v9037_v30  ;;  %9038 = vst [vmem:[#allocation20_spill] sm:$0xff] %v7493_v26  ;;  %v2544_v7 = vmul.f32 0.1, %v2417_v16  ;;  %v7510_v26 = vadd.f32 %v7109_v17, %v7152_v10  ;;  %vm2512_vm14 = vcmp.gt.f32.partialorder %v2417_v16, 0.0  ;;  %v9044_v10 = vld [vmem:[#allocation21_spill] sm:$0xff] }
 0x427   : > { %9039 = vst [vmem:[#allocation57_spill] sm:$0xff] %v7496_v44  ;;  %v9043_v44 = vld [vmem:[#allocation23_spill] sm:$0xff] }
 0x428   : > { %9042 = vst [vmem:[#allocation17_spill] sm:$0xff] %v7510_v26  ;;  %v2108_v26 = vadd.f32 %v9044_v10, %v1995_v58  ;;  %v7529_v32 = vsel %vm2512_vm14, %v2417_v16, %v2544_v7  ;;  %v2111_v58 = vadd.f32 %v9045_v22, %v1998_v9  ;;  %v2550_v9 = vmul.f32 0.1, %v7324_v25  ;;  %v9046_v22 = vld [vmem:[#allocation27_spill] sm:$0xff] }
 0x42c   : > { %v7473_v28 = vpop.f32.mrf.mxu2 }
 0x42d   : > { %9034 = vst [vmem:[#allocation56_spill] sm:$0xff] %v7473_v28  ;;  %v2102_v28 = vadd.f32 %v9041_v18, %v1989_v57  ;;  %v2547_v57 = vmul.f32 0.1, %v7279_v49  ;;  %v7521_v18 = vadd.f32 %v7109_v17, %v7165_v2  ;;  %v7538_v2 = vadd.f32 %v7109_v17, %v7189_v20  ;;  %v2685_v20 = vld [vmem:[%s8924_s4 + $0x30] sm:$0xff] }
 0x42e   : > { %2704 = vmatpush.msra.mxu3 %v2685_v20  ;;  %v7574_v20 = vpop.f32.mrf.mxu3 }
 0x42f   : > { %v2215_v38 = vadd.f32 %v7268_v34, %v2102_v28  ;;  %v7532_v34 = vsel %vm2514_vm15, %v7263_v40, %v2546_v46  ;;  %v7546_v40 = vsel %vm2515_vm1, %v7279_v49, %v2547_v57  ;;  %v2224_v46 = vadd.f32 %v7313_v15, %v2111_v58  ;;  %v7559_v49 = vpop.f32.mrf.mxu1 }
 0x430   : > { %v2611_v7 = vsel %vm460_vm0, %v7532_v34, 0.0  ;;  %v2613_v15 = vsel %vm460_vm0, %v7546_v40, 0.0  ;;  %v2227_v58 = vadd.f32 %v7327_v61, %v9046_v22  ;;  %v7587_v61 = vsel %vm2518_vm5, %v7324_v25, %v2550_v9 }
 0x431   : > { %v2328_v16 = vadd.f32 %v7413_v6, %v2215_v38  ;;  %v2345_v38 = vpop.f32.mrf.mxu0  ;;  %v2233_v25 = vadd.f32 %v7351_v8, %v7155_v53 }
 0x433   : > { %v2441_v57 = vadd.f32 %v7343_v0, %v2328_v16  ;;  %v2337_v16 = vadd.f32 %v7451_v45, %v2224_v46 }
 0x434   : > { %v7498_v30 = vpop.f32.mrf.mxu2 }
 0x435   : > { %9040 = vst [vmem:[#allocation58_spill] sm:$0xff] %v7498_v30  ;;  %v2105_v30 = vadd.f32 %v9043_v44, %v1992_v37  ;;  %v2548_v37 = vmul.f32 0.1, %v7295_v59  ;;  %v2549_v44 = vmul.f32 0.1, %v7310_v54  ;;  %vm2520_vm7 = vcmp.gt.f32.partialorder %v2441_v57, 0.0 }
 0x436   : > { %v2450_v46 = vadd.f32 %v7368_v21, %v2337_v16  ;;  %v7627_v16 = vpop.f32.mrf.mxu3 }
 0x437   : > { %v2218_v28 = vadd.f32 %v7284_v14, %v2105_v30  ;;  %v2221_v14 = vadd.f32 %v7298_v4, %v2108_v26  ;;  %v2608_v30 = vsel %vm460_vm0, %v7529_v32, 0.0  ;;  %v7565_v26 = vsel %vm2516_vm2, %v7295_v59, %v2548_v37 }
 0x438   : > { %v2610_v10 = vadd.f32 %v2609_v3, %v2608_v30  ;;  %v7578_v59 = vsel %vm2517_vm3, %v7310_v54, %v2549_v44  ;;  %v2615_v3 = vsel %vm460_vm0, %v7565_v26, 0.0  ;;  %v2552_v54 = vmul.f32 0.1, %v2441_v57 }
 0x439   : > { %v2331_v4 = vadd.f32 %v7424_v55, %v2218_v28  ;;  %v2334_v55 = vadd.f32 %v7440_v62, %v2221_v14  ;;  %v2551_v28 = vmul.f32 0.1, %v7336_v56  ;;  %v2230_v62 = vadd.f32 %v7341_v36, %v7142_v48  ;;  %v2684_v48 = vld [vmem:[%s8924_s4 + $0x28] sm:$0xff] }
 0x43a   : > { %v2612_v37 = vadd.f32 %v2611_v7, %v2610_v10  ;;  %v2340_v30 = vadd.f32 %v7465_v27, %v2227_v58  ;;  %2705 = vmatpush.msra.mxu3 %v2684_v48  ;;  %v7611_v8 = vsel %vm2520_vm7, %v2441_v57, %v2552_v54  ;;  %v9048_v10 = vld [vmem:[#allocation28_spill] sm:$0xff]  ;;  %vm2523_vm10 = vcmp.gt.f32.partialorder %v2450_v46, 0.0 }
 0x43b   : > { %v2444_v0 = vadd.f32 %v7353_v12, %v2331_v4  ;;  %v2447_v14 = vadd.f32 %v7360_v19, %v2334_v55  ;;  %v2617_v12 = vsel %vm460_vm0, %v7578_v59, 0.0  ;;  %v7596_v45 = vsel %vm2519_vm6, %v7336_v56, %v2551_v28  ;;  %v9047_v4 = vld [vmem:[#allocation24_spill] sm:$0xff]  ;;  %v2348_v28 = vpop.f32.mrf.mxu0 }
 0x43c   : > { %v7561_v6 = vpop.f32.mrf.mxu2  ;;  %v2614_v44 = vadd.f32 %v2613_v15, %v2612_v37  ;;  %v2619_v19 = vsel %vm460_vm0, %v7587_v61, 0.0  ;;  %v2236_v27 = vadd.f32 %v7364_v13, %v9047_v4  ;;  %v2343_v53 = vadd.f32 %v7484_v51, %v2230_v62  ;;  %v7620_v13 = vpop.f32.mrf.mxu1  ;;  %v9049_v62 = vld [vmem:[#allocation22_spill] sm:$0xff]  ;;  %v9051_v4 = vld [vmem:[#allocation29_spill] sm:$0xff] }
 0x43d   : > { %v2553_v7 = vmul.f32 0.1, %v2444_v0  ;;  %vm2521_vm8 = vcmp.gt.f32.partialorder %v2444_v0, 0.0  ;;  %v2554_v21 = vmul.f32 0.1, %v2447_v14  ;;  %v2453_v9 = vadd.f32 %v7375_v31, %v2340_v30  ;;  %v9050_v30 = vld [vmem:[#allocation25_spill] sm:$0xff] }
 0x43e   : > { %v2616_v36 = vadd.f32 %v2615_v3, %v2614_v44  ;;  %v7616_v15 = vadd.f32 %v7109_v17, %v9048_v10  ;;  %v2621_v58 = vsel %vm460_vm0, %v7596_v45, 0.0  ;;  %vm2522_vm9 = vcmp.gt.f32.partialorder %v2447_v14, 0.0 }
 0x43f   : > { %v2346_v55 = vadd.f32 %v2345_v38, %v2233_v25  ;;  %v7622_v37 = vsel %vm2521_vm8, %v2444_v0, %v2553_v7  ;;  %v2555_v51 = vmul.f32 0.1, %v2450_v46  ;;  %v2456_v57 = vadd.f32 %v7382_v1, %v2343_v53 }
 0x440   : > { %v2618_v22 = vadd.f32 %v2617_v12, %v2616_v36  ;;  %v2623_v31 = vsel %vm460_vm0, %v7611_v8, 0.0  ;;  %v2349_v17 = vadd.f32 %v2348_v28, %v2236_v27  ;;  %v2239_v54 = vadd.f32 %v7372_v41, %v9049_v62  ;;  %v9054_v62 = vld [vmem:[#allocation47_spill] sm:$0xff] }
 0x441   : > { %v7631_v44 = vsel %vm2522_vm9, %v2447_v14, %v2554_v21  ;;  %v2556_v38 = vmul.f32 0.1, %v2453_v9  ;;  %v2459_v0 = vadd.f32 %v7389_v50, %v2346_v55  ;;  %v2625_v1 = vsel %vm460_vm0, %v7622_v37, 0.0  ;;  %v2683_v14 = vld [vmem:[%s8924_s4 + $0x20] sm:$0xff] }
 0x442   : > { %v2620_v3 = vadd.f32 %v2619_v19, %v2618_v22  ;;  %v2242_v25 = vadd.f32 %v7380_v33, %v9050_v30  ;;  %vm2524_vm11 = vcmp.gt.f32.partialorder %v2453_v9, 0.0  ;;  %v7638_v7 = vsel %vm2523_vm10, %v2450_v46, %v2555_v51  ;;  %2706 = vmatpush.msra.mxu3 %v2683_v14  ;;  %v9052_v22 = vld [vmem:[#allocation31_spill] sm:$0xff]  ;;  %v7677_v30 = vpop.f32.mrf.mxu3  ;;  %v2682_v14 = vld [vmem:[%s8924_s4 + $0x18] sm:$0xff] }
 0x443   : > { %v2352_v48 = vadd.f32 %v7377_v60, %v2239_v54  ;;  %v2557_v36 = vmul.f32 0.1, %v2456_v57  ;;  %v2462_v41 = vadd.f32 %v7397_v52, %v2349_v17  ;;  %v2627_v19 = vsel %vm460_vm0, %v7631_v44, 0.0 }
 0x444   : > { %v7608_v56 = vpop.f32.mrf.mxu2  ;;  %v2622_v12 = vadd.f32 %v2621_v58, %v2620_v3  ;;  %v2245_v27 = vadd.f32 %v7387_v24, %v9051_v4  ;;  %vm2525_vm12 = vcmp.gt.f32.partialorder %v2456_v57, 0.0  ;;  %v7651_v46 = vsel %vm2524_vm11, %v2453_v9, %v2556_v38  ;;  %v9055_v38 = vld [vmem:[#allocation33_spill] sm:$0xff]  ;;  %v9059_v4 = vld [vmem:[#allocation34_spill] sm:$0xff]  ;;  %2707 = vmatpush.msra.mxu3 %v2682_v14 }
 0x445   : > { %v2355_v60 = vadd.f32 %v7384_v42, %v2242_v25  ;;  %v2558_v52 = vmul.f32 0.1, %v2459_v0  ;;  %v2465_v53 = vadd.f32 %v7409_v43, %v2352_v48  ;;  %v2629_v10 = vsel %vm460_vm0, %v7638_v7, 0.0  ;;  %v9053_v43 = vld [vmem:[#allocation32_spill] sm:$0xff] }
 0x446   : > { %v2624_v50 = vadd.f32 %v2623_v31, %v2622_v12  ;;  %v2248_v58 = vadd.f32 %v7399_v39, %v9052_v22  ;;  %vm2526_vm13 = vcmp.gt.f32.partialorder %v2459_v0, 0.0  ;;  %v7659_v24 = vsel %vm2525_vm12, %v2456_v57, %v2557_v36  ;;  %v7667_v31 = vpop.f32.mrf.mxu1  ;;  %v9056_v12 = vld [vmem:[#allocation45_spill] sm:$0xff]  ;;  %v9057_v25 = vld [vmem:[#allocation44_spill] sm:$0xff] }
 0x447   : > { %v2358_v55 = vadd.f32 %v7391_v29, %v2245_v27  ;;  %v2559_v28 = vmul.f32 0.1, %v2462_v41  ;;  %v2468_v9 = vadd.f32 %v7420_v47, %v2355_v60  ;;  %v2631_v42 = vsel %vm460_vm0, %v7651_v46, 0.0  ;;  %v9058_v36 = vld [vmem:[#allocation49_spill] sm:$0xff]  ;;  %v9060_v27 = vld [vmem:[#allocation48_spill] sm:$0xff] }
 0x448   : > { %v2626_v21 = vadd.f32 %v2625_v1, %v2624_v50  ;;  %v2251_v3 = vadd.f32 %v7411_v63, %v9053_v43  ;;  %vm2527_vm14 = vcmp.gt.f32.partialorder %v2462_v41, 0.0  ;;  %v7669_v17 = vsel %vm2526_vm13, %v2459_v0, %v2558_v52 }
 0x449   : > { %v2361_v39 = vadd.f32 %v7401_v23, %v2248_v58  ;;  %v2560_v57 = vmul.f32 0.1, %v2465_v53  ;;  %v2471_v29 = vadd.f32 %v9054_v62, %v2358_v55  ;;  %v2633_v47 = vsel %vm460_vm0, %v7659_v24, 0.0  ;;  %v9062_v58 = vld [vmem:[#allocation51_spill] sm:$0xff]  ;;  %v9065_v62 = vld [vmem:[#allocation50_spill] sm:$0xff] }
 0x44a   : > { %v2628_v51 = vadd.f32 %v2627_v19, %v2626_v21  ;;  %v2254_v1 = vadd.f32 %v9056_v12, %v9055_v38  ;;  %vm2528_vm15 = vcmp.gt.f32.partialorder %v2465_v53, 0.0  ;;  %v7679_v63 = vsel %vm2527_vm14, %v2462_v41, %v2559_v28  ;;  %v9061_v21 = vld [vmem:[#allocation46_spill] sm:$0xff]  ;;  %v9063_v28 = vld [vmem:[#allocation20_spill] sm:$0xff]  ;;  %v9067_v12 = vld [vmem:[#allocation37_spill] sm:$0xff] }
 0x44b   : > { %v2364_v0 = vadd.f32 %v9057_v25, %v2251_v3  ;;  %v2561_v48 = vmul.f32 0.1, %v2468_v9  ;;  %v2474_v23 = vadd.f32 %v9058_v36, %v2361_v39  ;;  %v2635_v19 = vsel %vm460_vm0, %v7669_v17, 0.0  ;;  %v9069_v36 = vld [vmem:[#allocation52_spill] sm:$0xff] }
 0x44c   : > { %v7649_v33 = vpop.f32.mrf.mxu2  ;;  %v2630_v54 = vadd.f32 %v2629_v10, %v2628_v51  ;;  %v2257_v60 = vadd.f32 %v9060_v27, %v9059_v4  ;;  %vm2529_vm1 = vcmp.gt.f32.partialorder %v2468_v9, 0.0  ;;  %v7692_v41 = vsel %vm2528_vm15, %v2465_v53, %v2560_v57  ;;  %v9064_v51 = vld [vmem:[#allocation36_spill] sm:$0xff]  ;;  %v9066_v53 = vld [vmem:[#allocation54_spill] sm:$0xff]  ;;  %v9071_v27 = vld [vmem:[#allocation17_spill] sm:$0xff] }
 0x44d   : > { %v2367_v10 = vadd.f32 %v9061_v21, %v2254_v1  ;;  %v2562_v22 = vmul.f32 0.1, %v2471_v29  ;;  %v2477_v55 = vadd.f32 %v9062_v58, %v2364_v0  ;;  %v2637_v3 = vsel %vm460_vm0, %v7679_v63, 0.0  ;;  %v9073_v58 = vld [vmem:[#allocation55_spill] sm:$0xff] }
 0x44e   : > { %v2632_v50 = vadd.f32 %v2631_v42, %v2630_v54  ;;  %v2150_v42 = vadd.f32 %v9064_v51, %v9063_v28  ;;  %vm2530_vm2 = vcmp.gt.f32.partialorder %v2471_v29, 0.0  ;;  %v7700_v39 = vsel %vm2529_vm1, %v2468_v9, %v2561_v48  ;;  %v9070_v48 = vld [vmem:[#allocation56_spill] sm:$0xff]  ;;  %v9074_v51 = vld [vmem:[#allocation53_spill] sm:$0xff] }
 0x44f   : > { %v2370_v54 = vadd.f32 %v9065_v62, %v2257_v60  ;;  %v2563_v38 = vmul.f32 0.1, %v2474_v23  ;;  %v2480_v57 = vadd.f32 %v9066_v53, %v2367_v10  ;;  %v2153_v1 = vadd.f32 %v9067_v12, %v7502_v5  ;;  %v9072_v60 = vld [vmem:[#allocation38_spill] sm:$0xff] }
 0x450   : > { %v2634_v43 = vadd.f32 %v2633_v47, %v2632_v50  ;;  %v2639_v0 = vsel %vm460_vm0, %v7692_v41, 0.0  ;;  %vm2531_vm3 = vcmp.gt.f32.partialorder %v2474_v23, 0.0  ;;  %v9068_v47 = vld [vmem:[#allocation35_spill] sm:$0xff]  ;;  %v7710_v50 = vsel %vm2530_vm2, %v2471_v29, %v2562_v22  ;;  %v9075_v53 = vld [vmem:[#allocation26_spill] sm:$0xff] }
 0x451   : > { %v2260_v14 = vadd.f32 %v9069_v36, %v9068_v47  ;;  %v2564_v9 = vmul.f32 0.1, %v2477_v55  ;;  %v2483_v4 = vadd.f32 %v9070_v48, %v2370_v54  ;;  %v2156_v21 = vadd.f32 %v9072_v60, %v9071_v27  ;;  %v9076_v47 = vld [vmem:[#allocation18_spill] sm:$0xff] }
 0x452   : > { %v2636_v25 = vadd.f32 %v2635_v19, %v2634_v43  ;;  %v2641_v5 = vsel %vm460_vm0, %v7700_v39, 0.0  ;;  %vm2532_vm5 = vcmp.gt.f32.partialorder %v2477_v55, 0.0  ;;  %v2277_v19 = vpop.f32.mrf.mxu1  ;;  %v2263_v28 = vadd.f32 %v9073_v58, %v2150_v42  ;;  %v9077_v42 = vld [vmem:[#allocation58_spill] sm:$0xff] }
 0x453   : > { %v2373_v43 = vadd.f32 %v9074_v51, %v2260_v14  ;;  %v7719_v62 = vsel %vm2531_vm3, %v2474_v23, %v2563_v38  ;;  %v2565_v29 = vmul.f32 0.1, %v2480_v57  ;;  %v2643_v54 = vsel %vm460_vm0, %v7710_v50, 0.0  ;;  %v9078_v23 = vld [vmem:[#allocation39_spill] sm:$0xff] }
 0x454   : > { %v7690_v52 = vpop.f32.mrf.mxu2  ;;  %v2638_v10 = vadd.f32 %v2637_v3, %v2636_v25  ;;  %v2266_v12 = vadd.f32 %v9075_v53, %v2153_v1  ;;  %vm2533_vm6 = vcmp.gt.f32.partialorder %v2480_v57, 0.0  ;;  %v2390_v3 = vpop.f32.mrf.mxu3  ;;  %v2376_v36 = vadd.f32 %v9076_v47, %v2263_v28 }
 0x455   : > { %v7725_v48 = vsel %vm2532_vm5, %v2477_v55, %v2564_v9  ;;  %v2566_v27 = vmul.f32 0.1, %v2483_v4  ;;  %v2486_v60 = vadd.f32 %v9077_v42, %v2373_v43  ;;  %v2159_v38 = vadd.f32 %v9078_v23, %v7521_v18  ;;  %v9080_v9 = vld [vmem:[#allocation40_spill] sm:$0xff] }
 0x456   : > { %v2640_v22 = vadd.f32 %v2639_v0, %v2638_v10  ;;  %v2645_v0 = vsel %vm460_vm0, %v7719_v62, 0.0  ;;  %vm2534_vm7 = vcmp.gt.f32.partialorder %v2483_v4, 0.0  ;;  %v2269_v1 = vadd.f32 %v7559_v49, %v2156_v21  ;;  %v9079_v10 = vld [vmem:[#allocation57_spill] sm:$0xff] }
 0x457   : > { %v2379_v58 = vadd.f32 %v9079_v10, %v2266_v12  ;;  %v7734_v51 = vsel %vm2533_vm6, %v2480_v57, %v2565_v29  ;;  %v2489_v55 = vadd.f32 %v7561_v6, %v2376_v36  ;;  %v2162_v28 = vadd.f32 %v9080_v9, %v7525_v11  ;;  %v9081_v57 = vld [vmem:[#allocation41_spill] sm:$0xff] }
 0x458   : > { %v2642_v14 = vadd.f32 %v2641_v5, %v2640_v22  ;;  %v2647_v18 = vsel %vm460_vm0, %v7725_v48, 0.0  ;;  %v2272_v5 = vadd.f32 %v7620_v13, %v2159_v38  ;;  %v2382_v22 = vadd.f32 %v7574_v20, %v2269_v1  ;;  %v2679_v38 = vld [vmem:[%s8924_s4] sm:$0xff] }
 0x459   : > { %v7743_v53 = vsel %vm2534_vm7, %v2483_v4, %v2566_v27  ;;  %v2567_v49 = vmul.f32 0.1, %v2486_v60  ;;  %v2492_v21 = vadd.f32 %v7608_v56, %v2379_v58  ;;  %v2165_v29 = vadd.f32 %v9081_v57, %v7538_v2  ;;  %v2681_v4 = vld [vmem:[%s8924_s4 + $0x10] sm:$0xff]  ;;  %v2680_v2 = vld [vmem:[%s8924_s4 + $0x8] sm:$0xff] }
 0x45a   : > { %v2644_v43 = vadd.f32 %v2643_v54, %v2642_v14  ;;  %v2649_v11 = vsel %vm460_vm0, %v7734_v51, 0.0  ;;  %vm2535_vm8 = vcmp.gt.f32.partialorder %v2486_v60, 0.0  ;;  %v2275_v54 = vadd.f32 %v7667_v31, %v2162_v28  ;;  %v2280_v27 = vpop.f32.mrf.mxu1  ;;  %2708 = vmatpush.msra.mxu3 %v2681_v4  ;;  %v9082_v14 = vld [vmem:[#allocation42_spill] sm:$0xff] }
 0x45b   : > { %v2385_v12 = vadd.f32 %v7627_v16, %v2272_v5  ;;  %v2568_v13 = vmul.f32 0.1, %v2489_v55  ;;  %v2495_v20 = vadd.f32 %v7649_v33, %v2382_v22  ;;  %v2651_v47 = vsel %vm460_vm0, %v7743_v53, 0.0  ;;  %v9083_v57 = vld [vmem:[#allocation30_spill] sm:$0xff] }
 0x45c   : > { %v2500_v25 = vpop.f32.mrf.mxu2  ;;  %v2646_v6 = vadd.f32 %v2645_v0, %v2644_v43  ;;  %v2278_v36 = vadd.f32 %v2277_v19, %v2165_v29  ;;  %vm2536_vm9 = vcmp.gt.f32.partialorder %v2489_v55, 0.0  ;;  %v7761_v16 = vsel %vm2535_vm8, %v2486_v60, %v2567_v49  ;;  %v2393_v19 = vpop.f32.mrf.mxu3  ;;  %2709 = vmatpush.msra.mxu3 %v2680_v2  ;;  %v5503_v49 = vld [vmem:[%s8927_s7] ss:$0 sm:$0xff] }
 0x45d   : > { %v2388_v33 = vadd.f32 %v7677_v30, %v2275_v54  ;;  %v2569_v42 = vmul.f32 0.1, %v2492_v21  ;;  %v2498_v23 = vadd.f32 %v7690_v52, %v2385_v12  ;;  %v2168_v0 = vadd.f32 %v9082_v14, %v7616_v15 }
 0x45e   : > { %v2648_v56 = vadd.f32 %v2647_v18, %v2646_v6  ;;  %vm2537_vm10 = vcmp.gt.f32.partialorder %v2492_v21, 0.0  ;;  %v7770_v10 = vsel %vm2536_vm9, %v2489_v55, %v2568_v13  ;;  %v2391_v60 = vadd.f32 %v2390_v3, %v2278_v36  ;;  %2710 = vmatpush.msra.mxu3 %v2679_v38 }
 0x45f   : > { %v2570_v58 = vmul.f32 0.1, %v2495_v20  ;;  %v2501_v9 = vadd.f32 %v2500_v25, %v2388_v33  ;;  %v2653_v52 = vsel %vm460_vm0, %v7761_v16, 0.0  ;;  %vm2538_vm11 = vcmp.gt.f32.partialorder %v2495_v20, 0.0 }
 0x460   : > { %v2650_v1 = vadd.f32 %v2649_v11, %v2648_v56  ;;  %v2281_v28 = vadd.f32 %v2280_v27, %v2168_v0  ;;  %v7774_v43 = vsel %vm2537_vm10, %v2492_v21, %v2569_v42  ;;  %v2571_v18 = vmul.f32 0.1, %v2498_v23  ;;  %v2718_v11 = vld [vmem:[%s8925_s5] sm:$0xff]  ;;  %v9084_v56 = vld [vmem:[#allocation43_spill] sm:$0xff] }
 0x461   : > { %v2655_v5 = vsel %vm460_vm0, %v7770_v10, 0.0  ;;  %vm2539_vm12 = vcmp.gt.f32.partialorder %v2498_v23, 0.0  ;;  %v7778_v3 = vsel %vm2538_vm11, %v2495_v20, %v2570_v58  ;;  %v2572_v25 = vmul.f32 0.1, %v2501_v9  ;;  %2738 = vmatpush.msrb.mxu1 %v2718_v11 }
 0x462   : > { %v2652_v30 = vadd.f32 %v2651_v47, %v2650_v1  ;;  %v2394_v22 = vadd.f32 %v2393_v19, %v2281_v28  ;;  %v2058_v29 = vadd.f32 %v5503_v49, %v9083_v57  ;;  %v2657_v21 = vsel %vm460_vm0, %v7774_v43, 0.0  ;;  %v2283_v4 = vpop.f32.mrf.mxu1 }
 0x463   : > { %vm2540_vm13 = vcmp.gt.f32.partialorder %v2501_v9, 0.0  ;;  %v7789_v12 = vsel %vm2539_vm12, %v2498_v23, %v2571_v18  ;;  %v2659_v2 = vsel %vm460_vm0, %v7778_v3, 0.0 }
 0x464   : > { %v2503_v31 = vpop.f32.mrf.mxu2  ;;  %v2654_v55 = vadd.f32 %v2653_v52, %v2652_v30  ;;  %v2171_v47 = vadd.f32 %v9084_v56, %v2058_v29  ;;  %v7794_v27 = vsel %vm2540_vm13, %v2501_v9, %v2572_v25  ;;  %v2396_v33 = vpop.f32.mrf.mxu3  ;;  %v2661_v42 = vsel %vm460_vm0, %v7789_v12, 0.0 }
 0x465   : > { %v2504_v15 = vadd.f32 %v2503_v31, %v2391_v60  ;;  %v2663_v0 = vsel %vm460_vm0, %v7794_v27, 0.0 }
 0x466   : > { %v2656_v54 = vadd.f32 %v2655_v5, %v2654_v55  ;;  %v2284_v23 = vadd.f32 %v2283_v4, %v2171_v47 }
 0x467   : > { %v2573_v13 = vmul.f32 0.1, %v2504_v15  ;;  %vm2541_vm14 = vcmp.gt.f32.partialorder %v2504_v15, 0.0 }
 0x468   : > { %v2658_v36 = vadd.f32 %v2657_v21, %v2656_v54  ;;  %v2397_v1 = vadd.f32 %v2396_v33, %v2284_v23  ;;  %v9085_v54 = vld [vmem:[#allocation15_spill] sm:$0xff]  ;;  %v2956_v33 = vld [vmem:[#allocation2 + $0x1] sm:$0xff] }
 0x469   : > { %v7798_v14 = vsel %vm2541_vm14, %v2504_v15, %v2573_v13  ;;  %3244 = vrot.lane.b32.xlu0 %v2956_v33, %s5704_s12 }
 0x46a   : > { %v2660_v38 = vadd.f32 %v2659_v2, %v2658_v36  ;;  %v2665_v58 = vsel %vm460_vm0, %v7798_v14, 0.0 }
 0x46c   : > { %v2506_v6 = vpop.f32.mrf.mxu2  ;;  %v2662_v19 = vadd.f32 %v2661_v42, %v2660_v38 }
 0x46d   : > { %v2507_v20 = vadd.f32 %v2506_v6, %v2394_v22 }
 0x46e   : > { %v2664_v30 = vadd.f32 %v2663_v0, %v2662_v19 }
 0x46f   : > { %v2574_v31 = vmul.f32 0.1, %v2507_v20  ;;  %vm2542_vm15 = vcmp.gt.f32.partialorder %v2507_v20, 0.0 }
 0x470   : > { %v2666_v18 = vadd.f32 %v2665_v58, %v2664_v30 }
 0x471   : > { %v7802_v60 = vsel %vm2542_vm15, %v2507_v20, %v2574_v31  ;;  %v9086_v20 = vld [vmem:[#allocation16_spill] sm:$0xff] }
 0x472   : > { %v2667_v28 = vsel %vm460_vm0, %v7802_v60, 0.0 }
 0x473   : > { %v2668_v5 = vadd.f32 %v2667_v28, %v2666_v18 }
 0x474   : > { %v2509_v9 = vpop.f32.mrf.mxu2 }
 0x475   : > { %v2510_v52 = vadd.f32 %v2509_v9, %v2397_v1 }
 0x477   : > { %vm2543_vm1 = vcmp.gt.f32.partialorder %v2510_v52, 0.0  ;;  %v2575_v15 = vmul.f32 0.1, %v2510_v52 }
 0x479   : > { %v7808_v55 = vsel %vm2543_vm1, %v2510_v52, %v2575_v15  ;;  %v3867_v52 = vld [vmem:[#allocation8 + $0x78] sm:$0xff] }
 0x47a   : > { %v2669_v22 = vsel %vm460_vm0, %v7808_v55, 0.0  ;;  %4024 = vmatpush.msra.mxu0 %v3867_v52  ;;  %v3865_v52 = vld [vmem:[#allocation8 + $0x68] sm:$0xff] }
 0x47b   : > { %v2670_v25 = vadd.f32 %v2669_v22, %v2668_v5 }
 0x47d   : > { %v2671_v49 = vrot.slane %v2670_v25, 4 }
 0x47f   : > { %v2672_v57 = vadd.f32 %v2671_v49, %v2670_v25 }
 0x481   : > { %v2673_v29 = vrot.slane %v2672_v57, 2 }
 0x483   : > { %v2674_v21 = vadd.f32 %v2673_v29, %v2672_v57 }
 0x485   : > { %v2675_v6 = vrot.slane %v2674_v21, 1 }
 0x487   : > { %v2676_v11 = vadd.f32 %v2675_v6, %v2674_v21 }
 0x489   : > { %v2677_v13 = vmul.f32 %v2676_v11, %v9085_v54 }
 0x48b   : > { %v2678_v4 = vsel %vm460_vm0, %v2677_v13, %v9086_v20 }
 0x48c   : > { %2711 = vmatmul.f32.vlgmr.msra.gmra.mxu3 %v2678_v4 }
 0x50f   : > { %v2712_v2 = vpop.f32.mrf.mxu3 }
 0x510   : > { %vm2715_vm2 = vcmp.gt.f32.partialorder %v2712_v2, 0.0  ;;  %v2716_v56 = vmul.f32 0.1, %v2712_v2 }
 0x512   : > { %v2717_v47 = vsel %vm2715_vm2, %v2712_v2, %v2716_v56 }
 0x513   : > { %4817 = vmatmul.msk.f32.vlgmr.msrb.gmra.mxu1 %vm640_vm4, %v2717_v47 }
 0x590   : > { %v2740_v36 = vpop.f32.mrf.mxu1 }
 0x591   : > { %v4818_v31 = vmul.f32 -1.442695, %v2740_v36 }
 0x593   : > { %5498 = vpow2.f32 %v4818_v31 }
 0x599   : > { %v5499_v42 = vpop.eup %5498 }
 0x59a   : > { %v2746_v23 = vadd.f32 1.0, %v5499_v42 }
 0x59c   : > { %5500 = vrcp.f32 %v2746_v23  ;;  %v2758_v9 = vand.u32 2147483648, %v2746_v23  ;;  %vm2752_vm5 = vweird.f32 %v2746_v23  ;;  %v2756_v30 = vand.u32 2147483647, %v2746_v23 }
 0x59e   : > { %v2759_v18 = vor.u32 1.1754944e-38, %v2758_v9  ;;  %vm2757_vm4 = vcmp.eq.f32.partialorder %v2756_v30, 8.507059e+37 }
 0x5a2   : > { %v5501_v38 = vpop.eup %5500 }
 0x5a3   : > { %v2748_v0 = vmul.f32 %v5501_v38, %v2746_v23  ;;  %vm2753_vm3 = vweird.f32 %v5501_v38 }
 0x5a4   : > { %vm2754_vm6 = vmor %vm2752_vm5, %vm2753_vm3 }
 0x5a5   : > { %v2749_v1 = vsub.f32 1.0, %v2748_v0  ;;  %v2957_v0 = vld [vmem:[#allocation2 + $0x9] sm:$0xff] }
 0x5a6   : > { %3246 = vrot.lane.b32.xlu1 %v2957_v0, %s5704_s12 }
 0x5a7   : > { %v2750_v19 = vmul.f32 %v5501_v38, %v2749_v1  ;;  %v3866_v1 = vld [vmem:[#allocation8 + $0x70] sm:$0xff] }
 0x5a8   : > { %4025 = vmatpush.msra.mxu0 %v3866_v1 }
 0x5a9   : > { %v2751_v58 = vadd.f32 %v5501_v38, %v2750_v19 }
 0x5aa   : > { %4026 = vmatpush.msra.mxu0 %v3865_v52 }
 0x5ab   : > { %v2755_v28 = vsel %vm2754_vm6, %v5501_v38, %v2751_v58 }
 0x5ac   : > { %v2760_v15 = vsel %vm2757_vm4, %v2759_v18, %v2755_v28 }
 0x5ad   : > { %v2762_v5 = vadd.f32 1.0, %v2760_v15 }
 0x5af   : > { %v7817_v22 = vperm.slane %v2762_v5, 0 }
 0x5b1   : > { %v2764_v25 = vmul.f32 %v7817_v22, %v7529_v32  ;;  %v2765_v49 = vmul.f32 %v7817_v22, %v7514_v35  ;;  %v2766_v57 = vmul.f32 %v7817_v22, %v7532_v34  ;;  %v2767_v29 = vmul.f32 %v7817_v22, %v7546_v40 }
 0x5b2   : > { %v2768_v21 = vmul.f32 %v7817_v22, %v7565_v26  ;;  %v2769_v11 = vmul.f32 %v7817_v22, %v7578_v59  ;;  %v2770_v32 = vmul.f32 %v7817_v22, %v7587_v61  ;;  %v2771_v34 = vmul.f32 %v7817_v22, %v7596_v45 }
 0x5b3   : > { %v2828_v6 = vmul.f32 0.1, %v2764_v25  ;;  %vm2796_vm7 = vcmp.gt.f32.partialorder %v2764_v25, 0.0  ;;  %v2829_v54 = vmul.f32 0.1, %v2765_v49  ;;  %vm2797_vm8 = vcmp.gt.f32.partialorder %v2765_v49, 0.0 }
 0x5b4   : > { %v2830_v35 = vmul.f32 0.1, %v2766_v57  ;;  %vm2798_vm9 = vcmp.gt.f32.partialorder %v2766_v57, 0.0  ;;  %v2831_v13 = vmul.f32 0.1, %v2767_v29  ;;  %v2772_v40 = vmul.f32 %v7817_v22, %v7611_v8 }
 0x5b5   : > { %vm2799_vm10 = vcmp.gt.f32.partialorder %v2767_v29, 0.0  ;;  %v2832_v26 = vmul.f32 0.1, %v2768_v21  ;;  %v2860_v20 = vsel %vm2796_vm7, %v2764_v25, %v2828_v6  ;;  %v2773_v59 = vmul.f32 %v7817_v22, %v7622_v37  ;;  %v3864_v25 = vld [vmem:[#allocation8 + $0x60] sm:$0xff] }
 0x5b6   : > { %vm2800_vm11 = vcmp.gt.f32.partialorder %v2768_v21, 0.0  ;;  %v2833_v4 = vmul.f32 0.1, %v2769_v11  ;;  %v2861_v2 = vsel %vm2797_vm8, %v2765_v49, %v2829_v54  ;;  %v2774_v61 = vmul.f32 %v7817_v22, %v7631_v44  ;;  %2892 = vst.msk [vmem:[#allocation2 + $0x19] sm:$0xff] %vm460_vm0, %v2860_v20  ;;  %4027 = vmatpush.msra.mxu0 %v3864_v25 }
 0x5b7   : > { %vm2801_vm12 = vcmp.gt.f32.partialorder %v2769_v11, 0.0  ;;  %v2834_v56 = vmul.f32 0.1, %v2770_v32  ;;  %v2862_v45 = vsel %vm2798_vm9, %v2766_v57, %v2830_v35  ;;  %v2775_v47 = vmul.f32 %v7817_v22, %v7638_v7  ;;  %2893 = vst.msk [vmem:[#allocation2 + $0x21] sm:$0xff] %vm460_vm0, %v2861_v2 }
 0x5b8   : > { %vm2802_vm13 = vcmp.gt.f32.partialorder %v2770_v32, 0.0  ;;  %v2835_v8 = vmul.f32 0.1, %v2771_v34  ;;  %v2863_v36 = vsel %vm2799_vm10, %v2767_v29, %v2831_v13  ;;  %v2776_v37 = vmul.f32 %v7817_v22, %v7651_v46  ;;  %2894 = vst.msk [vmem:[#allocation2 + $0x31] sm:$0xff] %vm460_vm0, %v2862_v45 }
 0x5b9   : > { %vm2803_vm14 = vcmp.gt.f32.partialorder %v2771_v34, 0.0  ;;  %v2836_v31 = vmul.f32 0.1, %v2772_v40  ;;  %v2864_v33 = vsel %vm2800_vm11, %v2768_v21, %v2832_v26  ;;  %v2777_v44 = vmul.f32 %v7817_v22, %v7659_v24  ;;  %2895 = vst.msk [vmem:[#allocation2 + $0x39] sm:$0xff] %vm460_vm0, %v2863_v36  ;;  %v3862_v26 = vld [vmem:[#allocation8 + $0x50] sm:$0xff]  ;;  %v3860_v36 = vld [vmem:[#allocation8 + $0x40] sm:$0xff] }
 0x5ba   : > { %vm2804_vm15 = vcmp.gt.f32.partialorder %v2772_v40, 0.0  ;;  %v2837_v42 = vmul.f32 0.1, %v2773_v59  ;;  %v2865_v7 = vsel %vm2801_vm12, %v2769_v11, %v2833_v4  ;;  %v2778_v23 = vmul.f32 %v7817_v22, %v7669_v17  ;;  %2896 = vst.msk [vmem:[#allocation2 + $0x49] sm:$0xff] %vm460_vm0, %v2864_v33 }
 0x5bb   : > { %vm2805_vm1 = vcmp.gt.f32.partialorder %v2773_v59, 0.0  ;;  %v2838_v38 = vmul.f32 0.1, %v2774_v61  ;;  %v2866_v46 = vsel %vm2802_vm13, %v2770_v32, %v2834_v56  ;;  %v2779_v24 = vmul.f32 %v7817_v22, %v7679_v63  ;;  %2897 = vst.msk [vmem:[#allocation2 + $0x51] sm:$0xff] %vm460_vm0, %v2865_v7 }
 0x5bc   : > { %vm2806_vm2 = vcmp.gt.f32.partialorder %v2774_v61, 0.0  ;;  %v2839_v19 = vmul.f32 0.1, %v2775_v47  ;;  %v2867_v58 = vsel %vm2803_vm14, %v2771_v34, %v2835_v8  ;;  %v2780_v17 = vmul.f32 %v7817_v22, %v7692_v41  ;;  %2898 = vst.msk [vmem:[#allocation2 + $0x61] sm:$0xff] %vm460_vm0, %v2866_v46 }
 0x5bd   : > { %vm2807_vm3 = vcmp.gt.f32.partialorder %v2775_v47, 0.0  ;;  %v2840_v9 = vmul.f32 0.1, %v2776_v37  ;;  %v2868_v30 = vsel %vm2804_vm15, %v2772_v40, %v2836_v31  ;;  %v2781_v28 = vmul.f32 %v7817_v22, %v7700_v39  ;;  %2899 = vst.msk [vmem:[#allocation2 + $0x69] sm:$0xff] %vm460_vm0, %v2867_v58  ;;  %v7872_v39 = vld [vmem:[#allocation2 + $0x19] sm:$0xff] }
 0x5be   : > { %vm2808_vm5 = vcmp.gt.f32.partialorder %v2776_v37, 0.0  ;;  %v2841_v63 = vmul.f32 0.1, %v2777_v44  ;;  %v2869_v18 = vsel %vm2805_vm1, %v2773_v59, %v2837_v42  ;;  %v2782_v41 = vmul.f32 %v7817_v22, %v7710_v50  ;;  %2900 = vst.msk [vmem:[#allocation2 + $0x79] sm:$0xff] %vm460_vm0, %v2868_v30  ;;  %v2959_v50 = vld [vmem:[#allocation2 + $0x21] sm:$0xff]  ;;  %3248 = vrot.lane.b32.xlu2 %v7872_v39, %s5704_s12 }
 0x5bf   : > { %vm2809_vm6 = vcmp.gt.f32.partialorder %v2777_v44, 0.0  ;;  %v2842_v15 = vmul.f32 0.1, %v2778_v23  ;;  %v2870_v5 = vsel %vm2806_vm2, %v2774_v61, %v2838_v38  ;;  %v2783_v49 = vmul.f32 %v7817_v22, %v7719_v62  ;;  %2901 = vst.msk [vmem:[#allocation2 + $0x81] sm:$0xff] %vm460_vm0, %v2869_v18  ;;  %v3863_v62 = vld [vmem:[#allocation8 + $0x58] sm:$0xff]  ;;  %3250 = vrot.lane.b32.xlu0 %v2959_v50, %s5704_s12  ;;  %v7893_v40 = vld [vmem:[#allocation2 + $0x31] sm:$0xff] }
 0x5c0   : > { %vm2810_vm4 = vcmp.gt.f32.partialorder %v2778_v23, 0.0  ;;  %v2843_v57 = vmul.f32 0.1, %v2779_v24  ;;  %v2871_v29 = vsel %vm2807_vm3, %v2775_v47, %v2839_v19  ;;  %v2784_v21 = vmul.f32 %v7817_v22, %v7725_v48  ;;  %2902 = vst.msk [vmem:[#allocation2 + $0x91] sm:$0xff] %vm460_vm0, %v2870_v5  ;;  %4028 = vmatpush.msra.mxu0 %v3863_v62  ;;  %v3861_v61 = vld [vmem:[#allocation8 + $0x48] sm:$0xff]  ;;  %3252 = vrot.lane.b32.xlu1 %v7893_v40, %s5704_s12  ;;  %v3856_v50 = vld [vmem:[#allocation8 + $0x20] sm:$0xff] }
 0x5c1   : > { %vm2811_vm7 = vcmp.gt.f32.partialorder %v2779_v24, 0.0  ;;  %v2844_v6 = vmul.f32 0.1, %v2780_v17  ;;  %v2872_v11 = vsel %vm2808_vm5, %v2776_v37, %v2840_v9  ;;  %v2785_v54 = vmul.f32 %v7817_v22, %v7734_v51  ;;  %2903 = vst.msk [vmem:[#allocation2 + $0x99] sm:$0xff] %vm460_vm0, %v2871_v29  ;;  %v3855_v62 = vld [vmem:[#allocation8 + $0x18] sm:$0xff] }
 0x5c2   : > { %vm2812_vm8 = vcmp.gt.f32.partialorder %v2780_v17, 0.0  ;;  %v2845_v32 = vmul.f32 0.1, %v2781_v28  ;;  %v2873_v35 = vsel %vm2809_vm6, %v2777_v44, %v2841_v63  ;;  %v2786_v48 = vmul.f32 %v7817_v22, %v7743_v53  ;;  %2904 = vst.msk [vmem:[#allocation2 + $0xa9] sm:$0xff] %vm460_vm0, %v2872_v11  ;;  %4029 = vmatpush.msra.mxu0 %v3862_v26  ;;  %v7919_v44 = vld [vmem:[#allocation2 + $0x49] sm:$0xff]  ;;  %v7943_v9 = vld [vmem:[#allocation2 + $0x51] sm:$0xff] }
 0x5c3   : > { %vm2813_vm9 = vcmp.gt.f32.partialorder %v2781_v28, 0.0  ;;  %v2846_v34 = vmul.f32 0.1, %v2782_v41  ;;  %v2874_v13 = vsel %vm2810_vm4, %v2778_v23, %v2842_v15  ;;  %v2787_v51 = vmul.f32 %v7817_v22, %v7761_v16  ;;  %2905 = vst.msk [vmem:[#allocation2 + $0xb1] sm:$0xff] %vm460_vm0, %v2873_v35  ;;  %v7951_v63 = vld [vmem:[#allocation2 + $0x61] sm:$0xff] }
 0x5c4   : > { %vm2814_vm10 = vcmp.gt.f32.partialorder %v2782_v41, 0.0  ;;  %v2847_v20 = vmul.f32 0.1, %v2783_v49  ;;  %v2875_v59 = vsel %vm2811_vm7, %v2779_v24, %v2843_v57  ;;  %v2788_v53 = vmul.f32 %v7817_v22, %v7770_v10  ;;  %2906 = vst.msk [vmem:[#allocation2 + $0xc1] sm:$0xff] %vm460_vm0, %v2874_v13  ;;  %4030 = vmatpush.msra.mxu0 %v3861_v61  ;;  %v3858_v24 = vld [vmem:[#allocation8 + $0x30] sm:$0xff]  ;;  %v7955_v15 = vld [vmem:[#allocation2 + $0x69] sm:$0xff] }
 0x5c5   : > { %vm2815_vm11 = vcmp.gt.f32.partialorder %v2783_v49, 0.0  ;;  %v2848_v4 = vmul.f32 0.1, %v2784_v21  ;;  %v2876_v2 = vsel %vm2812_vm8, %v2780_v17, %v2844_v6  ;;  %v2789_v16 = vmul.f32 %v7817_v22, %v7774_v43  ;;  %2907 = vst.msk [vmem:[#allocation2 + $0xc9] sm:$0xff] %vm460_vm0, %v2875_v59  ;;  %v7913_v43 = vld [vmem:[#allocation2 + $0x39] sm:$0xff] }
 0x5c6   : > { %vm2816_vm12 = vcmp.gt.f32.partialorder %v2784_v21, 0.0  ;;  %v2849_v56 = vmul.f32 0.1, %v2785_v54  ;;  %v2877_v45 = vsel %vm2813_vm9, %v2781_v28, %v2845_v32  ;;  %v2790_v10 = vmul.f32 %v7817_v22, %v7778_v3  ;;  %2908 = vst.msk [vmem:[#allocation2 + $0xd9] sm:$0xff] %vm460_vm0, %v2876_v2  ;;  %3254 = vrot.lane.b32.xlu2 %v7913_v43, %s5704_s12  ;;  %4031 = vmatpush.msra.mxu0 %v3860_v36  ;;  %v7968_v29 = vld [vmem:[#allocation2 + $0x79] sm:$0xff] }
 0x5c7   : > { %vm2817_vm13 = vcmp.gt.f32.partialorder %v2785_v54, 0.0  ;;  %v2850_v47 = vmul.f32 0.1, %v2786_v48  ;;  %v2878_v8 = vsel %vm2814_vm10, %v2782_v41, %v2846_v34  ;;  %v2791_v37 = vmul.f32 %v7817_v22, %v7789_v12  ;;  %2909 = vst.msk [vmem:[#allocation2 + $0xe1] sm:$0xff] %vm460_vm0, %v2877_v45  ;;  %3256 = vrot.lane.b32.xlu0 %v7919_v44, %s5704_s12  ;;  %v3859_v12 = vld [vmem:[#allocation8 + $0x38] sm:$0xff]  ;;  %v7976_v6 = vld [vmem:[#allocation2 + $0x91] sm:$0xff] }
 0x5c8   : > { %vm2818_vm14 = vcmp.gt.f32.partialorder %v2786_v48, 0.0  ;;  %v2851_v31 = vmul.f32 0.1, %v2787_v51  ;;  %v2879_v33 = vsel %vm2815_vm11, %v2783_v49, %v2847_v20  ;;  %v2792_v3 = vmul.f32 %v7817_v22, %v7794_v27  ;;  %2910 = vst.msk [vmem:[#allocation2 + $0xf1] sm:$0xff] %vm460_vm0, %v2878_v8  ;;  %4032 = vmatpush.msra.mxu0 %v3859_v12  ;;  %3258 = vrot.lane.b32.xlu1 %v7943_v9, %s5704_s12  ;;  %v7982_v11 = vld [vmem:[#allocation2 + $0x99] sm:$0xff]  ;;  %v3852_v20 = vld [vmem:[#allocation8] sm:$0xff] }
 0x5c9   : > { %vm2819_vm15 = vcmp.gt.f32.partialorder %v2787_v51, 0.0  ;;  %v2852_v42 = vmul.f32 0.1, %v2788_v53  ;;  %v2880_v7 = vsel %vm2816_vm12, %v2784_v21, %v2848_v4  ;;  %v2793_v23 = vmul.f32 %v7817_v22, %v7798_v14  ;;  %2911 = vst.msk [vmem:[#allocation2 + $0xf9] sm:$0xff] %vm460_vm0, %v2879_v33  ;;  %v7974_v21 = vld [vmem:[#allocation2 + $0x81] sm:$0xff] }
 0x5ca   : > { %vm2820_vm1 = vcmp.gt.f32.partialorder %v2788_v53, 0.0  ;;  %v2853_v38 = vmul.f32 0.1, %v2789_v16  ;;  %v2881_v46 = vsel %vm2817_vm13, %v2785_v54, %v2849_v56  ;;  %v2794_v27 = vmul.f32 %v7817_v22, %v7802_v60  ;;  %2912 = vst.msk [vmem:[#allocation2 + $0x109] sm:$0xff] %vm460_vm0, %v2880_v7  ;;  %4033 = vmatpush.msra.mxu0 %v3858_v24  ;;  %v7986_v54 = vld [vmem:[#allocation2 + $0xa9] sm:$0xff]  ;;  %v7988_v32 = vld [vmem:[#allocation2 + $0xb1] sm:$0xff] }
 0x5cb   : > { %vm2821_vm2 = vcmp.gt.f32.partialorder %v2789_v16, 0.0  ;;  %v2854_v0 = vmul.f32 0.1, %v2790_v10  ;;  %v2882_v1 = vsel %vm2818_vm14, %v2786_v48, %v2850_v47  ;;  %v2795_v14 = vmul.f32 %v7817_v22, %v7808_v55  ;;  %2913 = vst.msk [vmem:[#allocation2 + $0x111] sm:$0xff] %vm460_vm0, %v2881_v46  ;;  %v3857_v55 = vld [vmem:[#allocation8 + $0x28] sm:$0xff]  ;;  %v7994_v35 = vld [vmem:[#allocation2 + $0xc1] sm:$0xff] }
 0x5cc   : > { %vm2822_vm3 = vcmp.gt.f32.partialorder %v2790_v10, 0.0  ;;  %v2855_v19 = vmul.f32 0.1, %v2791_v37  ;;  %v2883_v58 = vsel %vm2819_vm15, %v2787_v51, %v2851_v31  ;;  %vm2823_vm5 = vcmp.gt.f32.partialorder %v2791_v37, 0.0  ;;  %2914 = vst.msk [vmem:[#allocation2 + $0x121] sm:$0xff] %vm460_vm0, %v2882_v1  ;;  %4034 = vmatpush.msra.mxu0 %v3857_v55  ;;  %v3854_v48 = vld [vmem:[#allocation8 + $0x10] sm:$0xff] }
 0x5cd   : > { %v2856_v17 = vmul.f32 0.1, %v2792_v3  ;;  %v2884_v60 = vsel %vm2820_vm1, %v2788_v53, %v2852_v42  ;;  %vm2824_vm6 = vcmp.gt.f32.partialorder %v2792_v3, 0.0  ;;  %v2857_v30 = vmul.f32 0.1, %v2793_v23  ;;  %2915 = vst.msk [vmem:[#allocation2 + $0x129] sm:$0xff] %vm460_vm0, %v2883_v58 }
 0x5ce   : > { %v2885_v52 = vsel %vm2821_vm2, %v2789_v16, %v2853_v38  ;;  %vm2825_vm4 = vcmp.gt.f32.partialorder %v2793_v23, 0.0  ;;  %v2858_v22 = vmul.f32 0.1, %v2794_v27  ;;  %v2886_v28 = vsel %vm2822_vm3, %v2790_v10, %v2854_v0  ;;  %2916 = vst.msk [vmem:[#allocation2 + $0x139] sm:$0xff] %vm460_vm0, %v2884_v60  ;;  %3260 = vrot.lane.b32.xlu2 %v7951_v63, %s5704_s12  ;;  %4035 = vmatpush.msra.mxu0 %v3856_v50  ;;  %v7998_v34 = vld [vmem:[#allocation2 + $0xc9] sm:$0xff]  ;;  %v8000_v13 = vld [vmem:[#allocation2 + $0xd9] sm:$0xff]  ;;  %v3245_v10 = vpop.permute.xlu0 %3244 }
 0x5cf   : > { %vm2826_vm7 = vcmp.gt.f32.partialorder %v2794_v27, 0.0  ;;  %v2859_v18 = vmul.f32 0.1, %v2795_v14  ;;  %v2887_v41 = vsel %vm2823_vm5, %v2791_v37, %v2855_v19  ;;  %vm2827_vm8 = vcmp.gt.f32.partialorder %v2795_v14, 0.0  ;;  %2917 = vst.msk [vmem:[#allocation2 + $0x141] sm:$0xff] %vm460_vm0, %v2885_v52  ;;  %3262 = vrot.lane.b32.xlu0 %v7955_v15, %s5704_s12  ;;  %v8006_v26 = vld [vmem:[#allocation2 + $0xe1] sm:$0xff] }
 0x5d0   : > { %v2888_v5 = vsel %vm2824_vm6, %v2792_v3, %v2856_v17  ;;  %v2889_v25 = vsel %vm2825_vm4, %v2793_v23, %v2857_v30  ;;  %2918 = vst.msk [vmem:[#allocation2 + $0x151] sm:$0xff] %vm460_vm0, %v2886_v28  ;;  %v2890_v49 = vsel %vm2826_vm7, %v2794_v27, %v2858_v22  ;;  %3264 = vrot.lane.b32.xlu1 %v7968_v29, %s5704_s12  ;;  %v3853_v51 = vld [vmem:[#allocation8 + $0x8] sm:$0xff]  ;;  %v2924_v16 = vld [vmem:[#allocation2] sm:$0xff]  ;;  %v8063_v0 = vld [vmem:[#allocation2 + $0x30] sm:$0xff] }
 0x5d1   : > { %2919 = vst.msk [vmem:[#allocation2 + $0x159] sm:$0xff] %vm460_vm0, %v2887_v41  ;;  %v2891_v57 = vsel %vm2827_vm8, %v2795_v14, %v2859_v18  ;;  %4036 = vmatpush.msra.mxu0 %v3855_v62  ;;  %v8010_v59 = vld [vmem:[#allocation2 + $0xf1] sm:$0xff]  ;;  %v8012_v53 = vld [vmem:[#allocation2 + $0xf9] sm:$0xff]  ;;  %v8022_v61 = vld [vmem:[#allocation2 + $0x109] sm:$0xff]  ;;  %v3724_v36 = vsel %vm460_vm0, %v2924_v16, %v3245_v10  ;;  %v5264_v24 = vpack.i.bf16 %v8063_v0, %v7913_v43 }
 0x5d2   : > { %2920 = vst.msk [vmem:[#allocation2 + $0x169] sm:$0xff] %vm460_vm0, %v2888_v5  ;;  %v8028_v45 = vld [vmem:[#allocation2 + $0x111] sm:$0xff]  ;;  %v8057_v38 = vld [vmem:[#allocation2 + $0x20] sm:$0xff]  ;;  %v8080_v60 = vld [vmem:[#allocation2 + $0x48] sm:$0xff] }
 0x5d3   : > { %2921 = vst.msk [vmem:[#allocation2 + $0x171] sm:$0xff] %vm460_vm0, %v2889_v25  ;;  %4037 = vmatpush.msra.mxu0 %v3854_v48  ;;  %v8018_v4 = vld [vmem:[#allocation2 + $0x121] sm:$0xff]  ;;  %v8046_v42 = vld [vmem:[#allocation2 + $0x18] sm:$0xff]  ;;  %v5279_v30 = vpack.i.bf16 %v8080_v60, %v7943_v9  ;;  %v8091_v22 = vld [vmem:[#allocation2 + $0x50] sm:$0xff] }
 0x5d4   : > { %2922 = vst.msk [vmem:[#allocation2 + $0x181] sm:$0xff] %vm460_vm0, %v2890_v49  ;;  %v8020_v2 = vld [vmem:[#allocation2 + $0x129] sm:$0xff]  ;;  %v8059_v46 = vld [vmem:[#allocation2 + $0x1a] sm:$0xff]  ;;  %v8076_v58 = vld [vmem:[#allocation2 + $0x32] sm:$0xff] }
 0x5d5   : > { %2923 = vst.msk [vmem:[#allocation2 + $0x189] sm:$0xff] %vm460_vm0, %v2891_v57  ;;  %4038 = vmatpush.msra.mxu0 %v3853_v51  ;;  %v5234_v56 = vpack.i.bf16 %v8020_v2, %v8018_v4  ;;  %v8032_v47 = vld [vmem:[#allocation2 + $0x139] sm:$0xff]  ;;  %v5259_v1 = vpack.i.bf16 %v8059_v46, %v8057_v38  ;;  %v8071_v14 = vld [vmem:[#allocation2 + $0x22] sm:$0xff] }
 0x5d6   : > { %3266 = vrot.lane.b32.xlu2 %v7974_v21, %s5704_s12  ;;  %v8034_v8 = vld [vmem:[#allocation2 + $0x141] sm:$0xff]  ;;  %v8074_v19 = vld [vmem:[#allocation2 + $0x38] sm:$0xff]  ;;  %v5269_v17 = vpack.i.bf16 %v7919_v44, %v8071_v14  ;;  %v8093_v44 = vld [vmem:[#allocation2 + $0x4a] sm:$0xff] }
 0x5d7   : > { %3268 = vrot.lane.b32.xlu0 %v7976_v6, %s5704_s12  ;;  %4039 = vmatpush.msra.mxu0 %v3852_v20  ;;  %v8038_v37 = vld [vmem:[#allocation2 + $0x151] sm:$0xff]  ;;  %v5239_v33 = vpack.i.bf16 %v8034_v8, %v8032_v47  ;;  %v5274_v43 = vpack.i.bf16 %v8076_v58, %v8074_v19  ;;  %v8088_v52 = vld [vmem:[#allocation2 + $0x3a] sm:$0xff]  ;;  %v3915_v55 = vld [vmem:[#allocation8 + $0x1f8] sm:$0xff]  ;;  %v5289_v9 = vpack.i.bf16 %v8093_v44, %v8091_v22 }
 0x5d8   : > { %3270 = vrot.lane.b32.xlu1 %v7982_v11, %s5704_s12  ;;  %4040 = vmatmul.f32.vlgmr.msra.gmra.mxu0 %v3724_v36  ;;  %v8040_v31 = vld [vmem:[#allocation2 + $0x159] sm:$0xff]  ;;  %v5284_v28 = vpack.i.bf16 %v7951_v63, %v8088_v52  ;;  %v3923_v49 = vld [vmem:[#allocation8 + $0x238] sm:$0xff] }
 0x5d9   : > { %v8044_v3 = vld [vmem:[#allocation2 + $0x169] sm:$0xff]  ;;  %v5244_v7 = vpack.i.bf16 %v8040_v31, %v8038_v37  ;;  %4363 = vmatpush.msra.mxu2 %v3915_v55  ;;  %v8097_v18 = vld [vmem:[#allocation2 + $0x60] sm:$0xff]  ;;  %v8105_v5 = vld [vmem:[#allocation2 + $0x52] sm:$0xff]  ;;  %4484 = vmatpush.msrb.mxu0 %v3923_v49 }
 0x5da   : > { %v5249_v12 = vpack.i.bf16 %v8046_v42, %v8044_v3  ;;  %v8054_v23 = vld [vmem:[#allocation2 + $0x171] sm:$0xff]  ;;  %v5294_v41 = vpack.i.bf16 %v8097_v18, %v7955_v15  ;;  %v3914_v57 = vld [vmem:[#allocation8 + $0x1f0] sm:$0xff]  ;;  %v8108_v63 = vld [vmem:[#allocation2 + $0x68] sm:$0xff]  ;;  %v5299_v62 = vpack.i.bf16 %v7968_v29, %v8105_v5 }
 0x5db   : > { %v5254_v27 = vpack.i.bf16 %v7893_v40, %v8054_v23  ;;  %v8110_v50 = vld [vmem:[#allocation2 + $0x62] sm:$0xff]  ;;  %4364 = vmatpush.msra.mxu2 %v3914_v57  ;;  %v8114_v48 = vld [vmem:[#allocation2 + $0x78] sm:$0xff]  ;;  %v3091_v20 = vld [vmem:[#allocation2 + $0x6a] sm:$0xff] }
 0x5dc   : > { %v5304_v15 = vpack.i.bf16 %v8110_v50, %v8108_v63  ;;  %v5309_v51 = vpack.i.bf16 %v8114_v48, %v7974_v21  ;;  %v8125_v10 = vld [vmem:[#allocation2 + $0x80] sm:$0xff]  ;;  %v5314_v36 = vpack.i.bf16 %v7976_v6, %v3091_v20  ;;  %v3094_v6 = vld [vmem:[#allocation2 + $0x92] sm:$0xff]  ;;  %v3899_v57 = vld [vmem:[#allocation8 + $0x178] sm:$0xff] }
 0x5dd   : > { %v3092_v29 = vld [vmem:[#allocation2 + $0x7a] sm:$0xff]  ;;  %v3912_v49 = vld [vmem:[#allocation8 + $0x1e0] sm:$0xff]  ;;  %4250 = vmatpush.msra.mxu1 %v3899_v57 }
 0x5de   : > { %3272 = vrot.lane.b32.xlu2 %v7986_v54, %s5704_s12  ;;  %v5319_v21 = vpack.i.bf16 %v3092_v29, %v8125_v10  ;;  %v3096_v20 = vld [vmem:[#allocation2 + $0xaa] sm:$0xff]  ;;  %v3897_v29 = vld [vmem:[#allocation8 + $0x168] sm:$0xff] }
 0x5df   : > { %3274 = vrot.lane.b32.xlu0 %v7988_v32, %s5704_s12 }
 0x5e0   : > { %3276 = vrot.lane.b32.xlu1 %v7994_v35, %s5704_s12 }
 0x5e6   : > { %3278 = vrot.lane.b32.xlu2 %v7998_v34, %s5704_s12 }
 0x5e7   : > { %3280 = vrot.lane.b32.xlu0 %v8000_v13, %s5704_s12 }
 0x5e8   : > { %3282 = vrot.lane.b32.xlu1 %v8006_v26, %s5704_s12 }
 0x5ee   : > { %3284 = vrot.lane.b32.xlu2 %v8010_v59, %s5704_s12 }
 0x5ef   : > { %3286 = vrot.lane.b32.xlu0 %v8012_v53, %s5704_s12 }
 0x5f0   : > { %3288 = vrot.lane.b32.xlu1 %v8022_v61, %s5704_s12 }
 0x5f6   : > { %3290 = vrot.lane.b32.xlu2 %v8028_v45, %s5704_s12 }
 0x5f7   : > { %5235 = vrot.lane.b32.xlu0 %v5234_v56, %s5704_s12  ;;  %v3913_v56 = vld [vmem:[#allocation8 + $0x1e8] sm:$0xff] }
 0x5f8   : > { %5240 = vrot.lane.b32.xlu1 %v5239_v33, %s5704_s12  ;;  %4365 = vmatpush.msra.mxu2 %v3913_v56  ;;  %v8128_v33 = vld [vmem:[#allocation2 + $0x90] sm:$0xff]  ;;  %v8155_v56 = vld [vmem:[#allocation2 + $0xc0] sm:$0xff] }
 0x5fa   : > { %4366 = vmatpush.msra.mxu2 %v3912_v49 }
 0x5fe   : > { %5245 = vrot.lane.b32.xlu2 %v5244_v7, %s5704_s12  ;;  %v5324_v7 = vpack.i.bf16 %v8128_v33, %v7982_v11 }
 0x5ff   : > { %5250 = vrot.lane.b32.xlu0 %v5249_v12, %s5704_s12  ;;  %v3093_v12 = vld [vmem:[#allocation2 + $0x82] sm:$0xff] }
 0x600   : > { %5255 = vrot.lane.b32.xlu1 %v5254_v27, %s5704_s12 }
 0x606   : > { %5260 = vrot.lane.b32.xlu2 %v5259_v1, %s5704_s12  ;;  %v3922_v1 = vld [vmem:[#allocation8 + $0x230] sm:$0xff] }
 0x607   : > { %5265 = vrot.lane.b32.xlu0 %v5264_v24, %s5704_s12  ;;  %v8138_v24 = vld [vmem:[#allocation2 + $0x98] sm:$0xff]  ;;  %4485 = vmatpush.msrb.mxu0 %v3922_v1 }
 0x608   : > { %5270 = vrot.lane.b32.xlu1 %v5269_v17, %s5704_s12  ;;  %v5329_v17 = vpack.i.bf16 %v7986_v54, %v3093_v12  ;;  %v5334_v11 = vpack.i.bf16 %v3094_v6, %v8138_v24  ;;  %v3097_v1 = vld [vmem:[#allocation2 + $0xb2] sm:$0xff] }
 0x609   : > { %v3896_v6 = vld [vmem:[#allocation8 + $0x160] sm:$0xff] }
 0x60e   : > { %5275 = vrot.lane.b32.xlu2 %v5274_v43, %s5704_s12  ;;  %v8141_v43 = vld [vmem:[#allocation2 + $0xa8] sm:$0xff] }
 0x60f   : > { %5280 = vrot.lane.b32.xlu0 %v5279_v30, %s5704_s12  ;;  %v2925_v30 = vld [vmem:[#allocation2 + $0x8] sm:$0xff]  ;;  %v5339_v55 = vpack.i.bf16 %v8141_v43, %v7988_v32 }
 0x610   : > { %5285 = vrot.lane.b32.xlu1 %v5284_v28, %s5704_s12 }
 0x616   : > { %5290 = vrot.lane.b32.xlu2 %v5289_v9, %s5704_s12 }
 0x617   : > { %5295 = vrot.lane.b32.xlu0 %v5294_v41, %s5704_s12  ;;  %v3095_v41 = vld [vmem:[#allocation2 + $0x9a] sm:$0xff] }
 0x618   : > { %v3249_v25 = vpop.permute.xlu2 %3248  ;;  %5300 = vrot.lane.b32.xlu1 %v5299_v62, %s5704_s12  ;;  %v3247_v28 = vpop.permute.xlu1 %3246  ;;  %v3898_v62 = vld [vmem:[#allocation8 + $0x170] sm:$0xff]  ;;  %v5344_v32 = vpack.i.bf16 %v7994_v35, %v3095_v41 }
 0x619   : > { %v3725_v9 = vsel %vm460_vm0, %v2925_v30, %v3247_v28  ;;  %4251 = vmatpush.msra.mxu1 %v3898_v62  ;;  %v8184_v62 = vld [vmem:[#allocation2 + $0xe0] sm:$0xff] }
 0x61a   : > { %4043 = vmatmul.f32.gmra.mxu0 %v3725_v9  ;;  %v3893_v9 = vld [vmem:[#allocation8 + $0x148] sm:$0xff] }
 0x61b   : > { %4252 = vmatpush.msra.mxu1 %v3897_v29  ;;  %v3892_v29 = vld [vmem:[#allocation8 + $0x140] sm:$0xff] }
 0x61d   : > { %4253 = vmatpush.msra.mxu1 %v3896_v6  ;;  %v3890_v6 = vld [vmem:[#allocation8 + $0x130] sm:$0xff] }
 0x61e   : > { %5305 = vrot.lane.b32.xlu2 %v5304_v15, %s5704_s12 }
 0x61f   : > { %5310 = vrot.lane.b32.xlu0 %v5309_v51, %s5704_s12  ;;  %v8152_v51 = vld [vmem:[#allocation2 + $0xb0] sm:$0xff] }
 0x620   : > { %v8123_v16 = vpop.permute.xlu2 %3254  ;;  %5315 = vrot.lane.b32.xlu1 %v5314_v36, %s5704_s12  ;;  %v5349_v36 = vpack.i.bf16 %v3096_v20, %v8152_v51 }
 0x626   : > { %5320 = vrot.lane.b32.xlu2 %v5319_v21, %s5704_s12  ;;  %v3726_v21 = vsel %vm460_vm0, %v8046_v42, %v3249_v25  ;;  %v3098_v42 = vld [vmem:[#allocation2 + $0xc2] sm:$0xff]  ;;  %v8172_v25 = vld [vmem:[#allocation2 + $0xd8] sm:$0xff] }
 0x627   : > { %5325 = vrot.lane.b32.xlu0 %v5324_v7, %s5704_s12  ;;  %v5354_v7 = vpack.i.bf16 %v8155_v56, %v7998_v34  ;;  %4046 = vmatmul.f32.gmra.mxu0 %v3726_v21  ;;  %v5359_v34 = vpack.i.bf16 %v8000_v13, %v3097_v1  ;;  %v5369_v49 = vpack.i.bf16 %v8172_v25, %v8006_v26  ;;  %v3099_v13 = vld [vmem:[#allocation2 + $0xca] sm:$0xff]  ;;  %v3100_v26 = vld [vmem:[#allocation2 + $0xda] sm:$0xff] }
 0x628   : > { %v8136_v27 = vpop.permute.xlu2 %3260  ;;  %5330 = vrot.lane.b32.xlu1 %v5329_v17, %s5704_s12  ;;  %v3895_v17 = vld [vmem:[#allocation8 + $0x158] sm:$0xff]  ;;  %v3882_v21 = vld [vmem:[#allocation8 + $0xf0] sm:$0xff]  ;;  %v8191_v1 = vld [vmem:[#allocation2 + $0xf0] sm:$0xff] }
 0x629   : > { %4254 = vmatpush.msra.mxu1 %v3895_v17  ;;  %v3881_v17 = vld [vmem:[#allocation8 + $0xe8] sm:$0xff] }
 0x62e   : > { %5335 = vrot.lane.b32.xlu2 %v5334_v11, %s5704_s12  ;;  %v8169_v11 = vld [vmem:[#allocation2 + $0xc8] sm:$0xff] }
 0x62f   : > { %5340 = vrot.lane.b32.xlu0 %v5339_v55, %s5704_s12  ;;  %v3894_v55 = vld [vmem:[#allocation8 + $0x150] sm:$0xff]  ;;  %v5364_v28 = vpack.i.bf16 %v3098_v42, %v8169_v11  ;;  %v5379_v42 = vpack.i.bf16 %v3100_v26, %v8184_v62  ;;  %v3879_v26 = vld [vmem:[#allocation8 + $0xd8] sm:$0xff] }
 0x630   : > { %v8150_v54 = vpop.permute.xlu2 %3266  ;;  %5345 = vrot.lane.b32.xlu1 %v5344_v32, %s5704_s12  ;;  %4255 = vmatpush.msra.mxu1 %v3894_v55  ;;  %v3911_v32 = vld [vmem:[#allocation8 + $0x1d8] sm:$0xff]  ;;  %v5384_v55 = vpack.i.bf16 %v8191_v1, %v8012_v53  ;;  %v3880_v53 = vld [vmem:[#allocation8 + $0xe0] sm:$0xff] }
 0x631   : > { %v3251_v15 = vpop.permute.xlu0 %3250  ;;  %4367 = vmatpush.msra.mxu2 %v3911_v32  ;;  %v3888_v32 = vld [vmem:[#allocation8 + $0x120] sm:$0xff] }
 0x632   : > { %v3253_v12 = vpop.permute.xlu1 %3252  ;;  %v3727_v41 = vsel %vm460_vm0, %v8057_v38, %v3251_v15  ;;  %4256 = vmatpush.msra.mxu1 %v3893_v9  ;;  %v3883_v38 = vld [vmem:[#allocation8 + $0xf8] sm:$0xff] }
 0x633   : > { %4049 = vmatmul.f32.gmra.mxu0 %v3727_v41  ;;  %4137 = vmatpush.msrb.mxu3 %v3883_v38  ;;  %v3101_v9 = vld [vmem:[#allocation2 + $0xe2] sm:$0xff]  ;;  %v8203_v41 = vld [vmem:[#allocation2 + $0xf8] sm:$0xff] }
 0x634   : > { %4257 = vmatpush.msra.mxu1 %v3892_v29  ;;  %v3102_v38 = vld [vmem:[#allocation2 + $0xf2] sm:$0xff] }
 0x635   : > { %4138 = vmatpush.msrb.mxu3 %v3882_v21  ;;  %v8210_v21 = vld [vmem:[#allocation2 + $0x108] sm:$0xff] }
 0x636   : > { %5350 = vrot.lane.b32.xlu2 %v5349_v36, %s5704_s12  ;;  %v3891_v36 = vld [vmem:[#allocation8 + $0x138] sm:$0xff] }
 0x637   : > { %5355 = vrot.lane.b32.xlu0 %v5354_v7, %s5704_s12  ;;  %v5374_v7 = vpack.i.bf16 %v8010_v59, %v3099_v13  ;;  %4258 = vmatpush.msra.mxu1 %v3891_v36  ;;  %v3728_v59 = vsel %vm460_vm0, %v8063_v0, %v3253_v12  ;;  %v3921_v13 = vld [vmem:[#allocation8 + $0x228] sm:$0xff]  ;;  %v3887_v36 = vld [vmem:[#allocation8 + $0x118] sm:$0xff]  ;;  %v5389_v12 = vpack.i.bf16 %v8022_v61, %v3101_v9 }
 0x638   : > { %v8165_v35 = vpop.permute.xlu2 %3272  ;;  %5360 = vrot.lane.b32.xlu1 %v5359_v34, %s5704_s12  ;;  %v3889_v34 = vld [vmem:[#allocation8 + $0x128] sm:$0xff]  ;;  %4139 = vmatpush.msrb.mxu3 %v3881_v17  ;;  %v3886_v17 = vld [vmem:[#allocation8 + $0x110] sm:$0xff] }
 0x639   : > { %v8167_v30 = vpop.permute.xlu0 %3256  ;;  %4259 = vmatpush.msra.mxu1 %v3890_v6  ;;  %4486 = vmatpush.msrb.mxu0 %v3921_v13  ;;  %v3910_v6 = vld [vmem:[#allocation8 + $0x1d0] sm:$0xff]  ;;  %v3885_v61 = vld [vmem:[#allocation8 + $0x108] sm:$0xff]  ;;  %v3729_v13 = vsel %vm460_vm0, %v8074_v19, %v8123_v16  ;;  %v3907_v16 = vld [vmem:[#allocation8 + $0x1b8] sm:$0xff] }
 0x63a   : > { %v8180_v57 = vpop.permute.xlu1 %3258  ;;  %4140 = vmatpush.msrb.mxu3 %v3880_v53  ;;  %4368 = vmatpush.msra.mxu2 %v3910_v6  ;;  %v3103_v53 = vld [vmem:[#allocation2 + $0xfa] sm:$0xff]  ;;  %v3875_v6 = vld [vmem:[#allocation8 + $0xb8] sm:$0xff] }
 0x63b   : > { %4260 = vmatpush.msra.mxu1 %v3889_v34  ;;  %4052 = vmatmul.f32.gmra.mxu0 %v3728_v59  ;;  %v5394_v34 = vpack.i.bf16 %v3102_v38, %v8203_v41  ;;  %v5399_v59 = vpack.i.bf16 %v8210_v21, %v8028_v45  ;;  %v3876_v38 = vld [vmem:[#allocation8 + $0xc0] sm:$0xff] }
 0x63c   : > { %4141 = vmatpush.msrb.mxu3 %v3879_v26  ;;  %v3884_v26 = vld [vmem:[#allocation8 + $0x100] sm:$0xff] }
 0x63d   : > { %4261 = vmatpush.msra.mxu1 %v3888_v32  ;;  %v8223_v32 = vld [vmem:[#allocation2 + $0x110] sm:$0xff] }
 0x63e   : > { %5365 = vrot.lane.b32.xlu2 %v5364_v28, %s5704_s12 }
 0x63f   : > { %5370 = vrot.lane.b32.xlu0 %v5369_v49, %s5704_s12  ;;  %4262 = vmatpush.msra.mxu1 %v3887_v36  ;;  %v3908_v36 = vld [vmem:[#allocation8 + $0x1c0] sm:$0xff] }
 0x640   : > { %v8186_v20 = vpop.permute.xlu2 %3278  ;;  %5375 = vrot.lane.b32.xlu1 %v5374_v7, %s5704_s12  ;;  %v3878_v7 = vld [vmem:[#allocation8 + $0xd0] sm:$0xff] }
 0x641   : > { %v8188_v15 = vpop.permute.xlu0 %3262  ;;  %4142 = vmatpush.msrb.mxu3 %v3878_v7  ;;  %4263 = vmatpush.msra.mxu1 %v3886_v17  ;;  %v3104_v7 = vld [vmem:[#allocation2 + $0x10a] sm:$0xff]  ;;  %v5404_v17 = vpack.i.bf16 %v8018_v4, %v3103_v53  ;;  %v3730_v4 = vsel %vm460_vm0, %v8080_v60, %v8167_v30  ;;  %v3105_v53 = vld [vmem:[#allocation2 + $0x112] sm:$0xff] }
 0x642   : > { %v8197_v28 = vpop.permute.xlu1 %3264  ;;  %v5419_v30 = vpack.i.bf16 %v8032_v47, %v3105_v53  ;;  %v3731_v47 = vsel %vm460_vm0, %v8091_v22, %v8180_v57  ;;  %v3107_v53 = vld [vmem:[#allocation2 + $0x12a] sm:$0xff] }
 0x643   : > { %4055 = vmatmul.f32.gmra.mxu0 %v3729_v13  ;;  %4264 = vmatpush.msra.mxu1 %v3885_v61  ;;  %v3873_v61 = vld [vmem:[#allocation8 + $0xa8] sm:$0xff]  ;;  %v5434_v57 = vpack.i.bf16 %v8038_v37, %v3107_v53  ;;  %v3732_v37 = vsel %vm460_vm0, %v8097_v18, %v8136_v27 }
 0x645   : > { %4265 = vmatpush.msra.mxu1 %v3884_v26 }
 0x646   : > { %5380 = vrot.lane.b32.xlu2 %v5379_v42, %s5704_s12  ;;  %v3909_v42 = vld [vmem:[#allocation8 + $0x1c8] sm:$0xff] }
 0x647   : > { %5385 = vrot.lane.b32.xlu0 %v5384_v55, %s5704_s12  ;;  %v3877_v55 = vld [vmem:[#allocation8 + $0xc8] sm:$0xff]  ;;  %4369 = vmatpush.msra.mxu2 %v3909_v42  ;;  %v8230_v42 = vld [vmem:[#allocation2 + $0x120] sm:$0xff] }
 0x648   : > { %v8205_v49 = vpop.permute.xlu2 %3284  ;;  %5390 = vrot.lane.b32.xlu1 %v5389_v12, %s5704_s12  ;;  %4143 = vmatpush.msrb.mxu3 %v3877_v55  ;;  %9087 = vst [vmem:[#allocation23_spill] sm:$0xff] %v8230_v42  ;;  %v3906_v55 = vld [vmem:[#allocation8 + $0x1b0] sm:$0xff]  ;;  %v5414_v13 = vpack.i.bf16 %v8230_v42, %v8020_v2  ;;  %v3872_v2 = vld [vmem:[#allocation8 + $0xa0] sm:$0xff] }
 0x649   : > { %v8207_v29 = vpop.permute.xlu0 %3268  ;;  %4370 = vmatpush.msra.mxu2 %v3908_v36 }
 0x64a   : > { %v8216_v9 = vpop.permute.xlu1 %3270  ;;  %4144 = vmatpush.msrb.mxu3 %v3876_v38  ;;  %v3905_v38 = vld [vmem:[#allocation8 + $0x1a8] sm:$0xff] }
 0x64b   : > { %4371 = vmatpush.msra.mxu2 %v3907_v16  ;;  %4058 = vmatmul.f32.gmra.mxu0 %v3730_v4  ;;  %v3869_v4 = vld [vmem:[#allocation8 + $0x88] sm:$0xff] }
 0x64c   : > { %4145 = vmatpush.msrb.mxu3 %v3875_v6  ;;  %v3871_v6 = vld [vmem:[#allocation8 + $0x98] sm:$0xff] }
 0x64d   : > { %4372 = vmatpush.msra.mxu2 %v3906_v55  ;;  %v3903_v55 = vld [vmem:[#allocation8 + $0x198] sm:$0xff] }
 0x64e   : > { %5395 = vrot.lane.b32.xlu2 %v5394_v34, %s5704_s12  ;;  %v3874_v34 = vld [vmem:[#allocation8 + $0xb0] sm:$0xff] }
 0x64f   : > { %5400 = vrot.lane.b32.xlu0 %v5399_v59, %s5704_s12  ;;  %v5409_v59 = vpack.i.bf16 %v3104_v7, %v8223_v32  ;;  %4146 = vmatpush.msrb.mxu3 %v3874_v34  ;;  %v3904_v7 = vld [vmem:[#allocation8 + $0x1a0] sm:$0xff]  ;;  %v3106_v34 = vld [vmem:[#allocation2 + $0x122] sm:$0xff] }
 0x650   : > { %v8225_v45 = vpop.permute.xlu2 %3290  ;;  %5405 = vrot.lane.b32.xlu1 %v5404_v17, %s5704_s12  ;;  %4373 = vmatpush.msra.mxu2 %v3905_v38  ;;  %v8247_v17 = vld [vmem:[#allocation2 + $0x128] sm:$0xff] }
 0x651   : > { %v8227_v12 = vpop.permute.xlu0 %3274  ;;  %4147 = vmatpush.msrb.mxu3 %v3873_v61  ;;  %v3870_v61 = vld [vmem:[#allocation8 + $0x90] sm:$0xff]  ;;  %v5424_v38 = vpack.i.bf16 %v3106_v34, %v8247_v17 }
 0x652   : > { %v8236_v36 = vpop.permute.xlu1 %3276  ;;  %4374 = vmatpush.msra.mxu2 %v3904_v7 }
 0x653   : > { %4148 = vmatpush.msrb.mxu3 %v3872_v2  ;;  %v3901_v2 = vld [vmem:[#allocation8 + $0x188] sm:$0xff]  ;;  %4061 = vmatmul.f32.gmra.mxu0 %v3731_v47  ;;  %v3109_v47 = vld [vmem:[#allocation2 + $0x142] sm:$0xff] }
 0x654   : > { %4375 = vmatpush.msra.mxu2 %v3903_v55 }
 0x655   : > { %4149 = vmatpush.msrb.mxu3 %v3871_v6  ;;  %v3900_v6 = vld [vmem:[#allocation8 + $0x180] sm:$0xff] }
 0x656   : > { %5410 = vrot.lane.b32.xlu2 %v5409_v59, %s5704_s12  ;;  %v8250_v59 = vld [vmem:[#allocation2 + $0x138] sm:$0xff] }
 0x657   : > { %5415 = vrot.lane.b32.xlu0 %v5414_v13, %s5704_s12  ;;  %v3902_v13 = vld [vmem:[#allocation8 + $0x190] sm:$0xff]  ;;  %4150 = vmatpush.msrb.mxu3 %v3870_v61 }
 0x658   : > { %v8243_v26 = vpop.permute.xlu2 %5245  ;;  %5420 = vrot.lane.b32.xlu1 %v5419_v30, %s5704_s12  ;;  %4376 = vmatpush.msra.mxu2 %v3902_v13  ;;  %v8268_v30 = vld [vmem:[#allocation2 + $0x140] sm:$0xff]  ;;  %v8271_v13 = vld [vmem:[#allocation2 + $0x150] sm:$0xff] }
 0x659   : > { %9088 = vst [vmem:[#allocation21_spill] sm:$0xff] %v8243_v26  ;;  %v8245_v16 = vpop.permute.xlu0 %3280  ;;  %v5429_v26 = vpack.i.bf16 %v8250_v59, %v8034_v8  ;;  %4151 = vmatpush.msrb.mxu3 %v3869_v4  ;;  %v3868_v8 = vld [vmem:[#allocation8 + $0x80] sm:$0xff]  ;;  %v3108_v61 = vld [vmem:[#allocation2 + $0x13a] sm:$0xff]  ;;  %v5444_v4 = vpack.i.bf16 %v8271_v13, %v8040_v31  ;;  %v5449_v31 = vpack.i.bf16 %v8044_v3, %v3109_v47 }
 0x65a   : > { %v8256_v42 = vpop.permute.xlu1 %3282  ;;  %4377 = vmatpush.msra.mxu2 %v3901_v2  ;;  %v8306_v47 = vld [vmem:[#allocation2 + $0x170] sm:$0xff] }
 0x65b   : > { %4152 = vmatpush.msrb.mxu3 %v3868_v8  ;;  %4064 = vmatmul.f32.gmra.mxu0 %v3732_v37  ;;  %v8288_v8 = vld [vmem:[#allocation2 + $0x158] sm:$0xff]  ;;  %v2988_v37 = vld [vmem:[#allocation2 + $0x2] sm:$0xff]  ;;  %9092 = vst [vmem:[#allocation28_spill] sm:$0xff] %v8306_v47 }
 0x65c   : > { %4378 = vmatpush.msra.mxu2 %v3900_v6  ;;  %9089 = vst [vmem:[#allocation19_spill] sm:$0xff] %v8288_v8  ;;  %v3110_v6 = vld [vmem:[#allocation2 + $0x152] sm:$0xff] }
 0x65e   : > { %5425 = vrot.lane.b32.xlu2 %v5424_v38, %s5704_s12  ;;  %v5439_v38 = vpack.i.bf16 %v3108_v61, %v8268_v30  ;;  %v5454_v61 = vpack.i.bf16 %v3110_v6, %v8288_v8  ;;  %v3178_v8 = vld [vmem:[#allocation2 + $0x199] sm:$0xff] }
 0x65f   : > { %5430 = vrot.lane.b32.xlu0 %v5429_v26, %s5704_s12 }
 0x660   : > { %v8263_v7 = vpop.permute.xlu2 %5260  ;;  %5435 = vrot.lane.b32.xlu1 %v5434_v57, %s5704_s12 }
 0x661   : > { %v8265_v34 = vpop.permute.xlu0 %3286  ;;  %v5263_v55 = vunpack.i.h.bf16 %v8263_v7 }
 0x662   : > { %v8279_v2 = vpop.permute.xlu1 %3288 }
 0x663   : > { %v3788_v26 = vsel %vm460_vm0, %v7872_v39, %v5263_v55  ;;  %v3920_v39 = vld [vmem:[#allocation8 + $0x220] sm:$0xff]  ;;  %v8291_v55 = vld [vmem:[#allocation2 + $0x168] sm:$0xff] }
 0x664   : > { %4266 = vmatmul.f32.vlgmr.msra.gmra.mxu1 %v3788_v26  ;;  %4487 = vmatpush.msrb.mxu0 %v3920_v39  ;;  %9090 = vst [vmem:[#allocation27_spill] sm:$0xff] %v8291_v55  ;;  %v5459_v27 = vpack.i.bf16 %v8291_v55, %v8054_v23  ;;  %v3733_v26 = vsel %vm460_vm0, %v8108_v63, %v8188_v15  ;;  %v3112_v39 = vld [vmem:[#allocation2 + $0x16a] sm:$0xff] }
 0x665   : > { %4067 = vmatmul.f32.gmra.mxu0 %v3733_v26  ;;  %v5469_v55 = vpack.i.bf16 %v3112_v39, %v8306_v47 }
 0x666   : > { %5440 = vrot.lane.b32.xlu2 %v5439_v38, %s5704_s12  ;;  %v3111_v38 = vld [vmem:[#allocation2 + $0x15a] sm:$0xff] }
 0x667   : > { %5445 = vrot.lane.b32.xlu0 %v5444_v4, %s5704_s12  ;;  %v3176_v4 = vld [vmem:[#allocation2 + $0x181] sm:$0xff] }
 0x668   : > { %5450 = vrot.lane.b32.xlu1 %v5449_v31, %s5704_s12  ;;  %v5464_v23 = vpack.i.bf16 %v3176_v4, %v3111_v38  ;;  %v3050_v31 = vld [vmem:[#allocation2 + $0x180] sm:$0xff]  ;;  %v3734_v38 = vsel %vm460_vm0, %v8114_v48, %v8197_v28 }
 0x669   : > { %v8286_v53 = vpop.permute.xlu0 %5235 }
 0x66a   : > { %v8297_v57 = vpop.permute.xlu1 %5240 }
 0x66d   : > { %4070 = vmatmul.f32.gmra.mxu0 %v3734_v38 }
 0x66e   : > { %5455 = vrot.lane.b32.xlu2 %v5454_v61, %s5704_s12  ;;  %v3177_v61 = vld [vmem:[#allocation2 + $0x189] sm:$0xff] }
 0x66f   : > { %5460 = vrot.lane.b32.xlu0 %v5459_v27, %s5704_s12  ;;  %v5474_v27 = vpack.i.bf16 %v3050_v31, %v3177_v61  ;;  %v3051_v31 = vld [vmem:[#allocation2 + $0x188] sm:$0xff] }
 0x670   : > { %5465 = vrot.lane.b32.xlu1 %v5464_v23, %s5704_s12 }
 0x671   : > { %v8304_v3 = vpop.permute.xlu0 %5250 }
 0x672   : > { %9091 = vst [vmem:[#allocation24_spill] sm:$0xff] %v8304_v3  ;;  %v5253_v6 = vunpack.i.h.bf16 %v8304_v3  ;;  %v8312_v26 = vpop.permute.xlu1 %5255  ;;  %v3113_v3 = vld [vmem:[#allocation2 + $0x172] sm:$0xff] }
 0x673   : > { %v5258_v4 = vunpack.i.h.bf16 %v8312_v26  ;;  %v5479_v61 = vpack.i.bf16 %v3178_v8, %v3113_v3  ;;  %v5504_v3 = vld [vmem:[#allocation2 + $0x21] sm:$0xff] }
 0x674   : > { %v3756_v15 = vsel %vm460_vm0, %v2988_v37, %v5253_v6  ;;  %v5262_v37 = vunpack.i.l.bf16 %v8263_v7  ;;  %v2989_v6 = vld [vmem:[#allocation2 + $0xa] sm:$0xff] }
 0x675   : > { %4153 = vmatmul.f32.vlgmr.msrb.gmra.mxu3 %v3756_v15  ;;  %v3820_v39 = vsel %vm460_vm0, %v8063_v0, %v5258_v4  ;;  %v3735_v0 = vsel %vm460_vm0, %v8125_v10, %v8150_v54 }
 0x676   : > { %5470 = vrot.lane.b32.xlu2 %v5469_v55, %s5704_s12  ;;  %v3114_v55 = vld [vmem:[#allocation2 + $0x182] sm:$0xff]  ;;  %4379 = vmatmul.f32.vlgmr.msra.gmra.mxu2 %v3820_v39  ;;  %v3757_v28 = vsel %vm460_vm0, %v2989_v6, %v5262_v37  ;;  %v5276_v39 = vpop.permute.xlu2 %5275  ;;  %v3115_v37 = vld [vmem:[#allocation2 + $0x18a] sm:$0xff] }
 0x677   : > { %5475 = vrot.lane.b32.xlu0 %v5474_v27, %s5704_s12  ;;  %v5484_v47 = vpack.i.bf16 %v3114_v55, %v3051_v31  ;;  %4073 = vmatmul.f32.gmra.mxu0 %v3735_v0  ;;  %v5278_v6 = vunpack.i.h.bf16 %v5276_v39 }
 0x678   : > { %5480 = vrot.lane.b32.xlu1 %v5479_v61, %s5704_s12 }
 0x679   : > { %v5266_v23 = vpop.permute.xlu0 %5265  ;;  %v3790_v31 = vsel %vm460_vm0, %v7893_v40, %v5278_v6  ;;  %v3055_v40 = vld [vmem:[#allocation2 + $0x39] sm:$0xff] }
 0x67a   : > { %v5267_v15 = vunpack.i.l.bf16 %v5266_v23  ;;  %v5271_v27 = vpop.permute.xlu1 %5270  ;;  %v5268_v8 = vunpack.i.h.bf16 %v5266_v23  ;;  %v5277_v23 = vunpack.i.l.bf16 %v5276_v39 }
 0x67b   : > { %v5272_v7 = vunpack.i.l.bf16 %v5271_v27  ;;  %v5273_v54 = vunpack.i.h.bf16 %v5271_v27 }
 0x67c   : > { %v3821_v38 = vsel %vm460_vm0, %v8074_v19, %v5267_v15  ;;  %v3736_v19 = vsel %vm460_vm0, %v8128_v33, %v8207_v29  ;;  %v3737_v29 = vsel %vm460_vm0, %v8138_v24, %v8216_v9  ;;  %v3738_v9 = vsel %vm460_vm0, %v8141_v43, %v8165_v35 }
 0x67d   : > { %4156 = vmatmul.f32.gmra.mxu3 %v3757_v28  ;;  %v3789_v4 = vsel %vm460_vm0, %v5504_v3, %v5272_v7  ;;  %v3822_v55 = vsel %vm460_vm0, %v8080_v60, %v5273_v54  ;;  %v3739_v43 = vsel %vm460_vm0, %v8152_v51, %v8227_v12  ;;  %v3740_v51 = vsel %vm460_vm0, %v8155_v56, %v8236_v36 }
 0x67e   : > { %5485 = vrot.lane.b32.xlu2 %v5484_v47, %s5704_s12  ;;  %4269 = vmatmul.f32.gmra.mxu1 %v3789_v4  ;;  %v3758_v47 = vsel %vm460_vm0, %v8059_v46, %v5268_v8  ;;  %v3759_v46 = vsel %vm460_vm0, %v8071_v14, %v5277_v23  ;;  %v3919_v4 = vld [vmem:[#allocation8 + $0x218] sm:$0xff] }
 0x67f   : > { %4382 = vmatmul.f32.gmra.mxu2 %v3821_v38  ;;  %4076 = vmatmul.f32.gmra.mxu0 %v3736_v19  ;;  %v5291_v38 = vpop.permute.xlu2 %5290 }
 0x680   : > { %3562 = vrot.lane.b32.xlu1 %v3115_v37, %s5704_s12  ;;  %v5293_v8 = vunpack.i.h.bf16 %v5291_v38  ;;  %4488 = vmatpush.msrb.mxu0 %v3919_v4  ;;  %v5292_v39 = vunpack.i.l.bf16 %v5291_v38  ;;  %v3056_v37 = vld [vmem:[#allocation2 + $0x49] sm:$0xff]  ;;  %v3741_v38 = vsel %vm460_vm0, %v8169_v11, %v8186_v20  ;;  %v3742_v11 = vsel %vm460_vm0, %v8172_v25, %v8245_v16 }
 0x681   : > { %v5281_v15 = vpop.permute.xlu0 %5280  ;;  %v3743_v16 = vsel %vm460_vm0, %v8184_v62, %v8256_v42  ;;  %v3744_v62 = vsel %vm460_vm0, %v8191_v1, %v8205_v49 }
 0x682   : > { %v5286_v61 = vpop.permute.xlu1 %5285  ;;  %v5282_v27 = vunpack.i.l.bf16 %v5281_v15  ;;  %v5283_v0 = vunpack.i.h.bf16 %v5281_v15  ;;  %v8366_v15 = vpop.f32.mrf.mxu0 }
 0x683   : > { %v5287_v28 = vunpack.i.l.bf16 %v5286_v61  ;;  %v5288_v3 = vunpack.i.h.bf16 %v5286_v61 }
 0x684   : > { %v3823_v60 = vsel %vm460_vm0, %v8091_v22, %v5282_v27  ;;  %v3760_v14 = vsel %vm460_vm0, %v8076_v58, %v5283_v0  ;;  %v3792_v22 = vsel %vm460_vm0, %v3056_v37, %v5293_v8  ;;  %v3761_v58 = vsel %vm460_vm0, %v8088_v52, %v5292_v39  ;;  %v3058_v27 = vld [vmem:[#allocation2 + $0x61] sm:$0xff] }
 0x685   : > { %4159 = vmatmul.f32.gmra.mxu3 %v3758_v47  ;;  %v3791_v7 = vsel %vm460_vm0, %v3055_v40, %v5287_v28  ;;  %v3824_v47 = vsel %vm460_vm0, %v8097_v18, %v5288_v3 }
 0x686   : > { %4272 = vmatmul.f32.gmra.mxu1 %v3790_v31  ;;  %v3057_v31 = vld [vmem:[#allocation2 + $0x51] sm:$0xff] }
 0x687   : > { %4385 = vmatmul.f32.gmra.mxu2 %v3822_v55  ;;  %4079 = vmatmul.f32.gmra.mxu0 %v3737_v29  ;;  %v5306_v61 = vpop.permute.xlu2 %5305  ;;  %v3918_v29 = vld [vmem:[#allocation8 + $0x210] sm:$0xff] }
 0x688   : > { %v5307_v12 = vunpack.i.l.bf16 %v5306_v61  ;;  %4489 = vmatpush.msrb.mxu0 %v3918_v29 }
 0x689   : > { %v5296_v54 = vpop.permute.xlu0 %5295 }
 0x68a   : > { %v5301_v6 = vpop.permute.xlu1 %5300  ;;  %v5297_v23 = vunpack.i.l.bf16 %v5296_v54  ;;  %v5298_v35 = vunpack.i.h.bf16 %v5296_v54 }
 0x68b   : > { %v5302_v19 = vunpack.i.l.bf16 %v5301_v6  ;;  %v5303_v28 = vunpack.i.h.bf16 %v5301_v6 }
 0x68c   : > { %v3825_v18 = vsel %vm460_vm0, %v8108_v63, %v5297_v23  ;;  %v3762_v52 = vsel %vm460_vm0, %v8093_v44, %v5298_v35  ;;  %v3763_v44 = vsel %vm460_vm0, %v8105_v5, %v5307_v12  ;;  %v3917_v12 = vld [vmem:[#allocation8 + $0x208] sm:$0xff] }
 0x68d   : > { %4162 = vmatmul.f32.gmra.mxu3 %v3759_v46  ;;  %v3793_v55 = vsel %vm460_vm0, %v3057_v31, %v5302_v19  ;;  %v5308_v46 = vunpack.i.h.bf16 %v5306_v61  ;;  %v3826_v0 = vsel %vm460_vm0, %v8114_v48, %v5303_v28  ;;  %v3059_v48 = vld [vmem:[#allocation2 + $0x69] sm:$0xff]  ;;  %4490 = vmatpush.msrb.mxu0 %v3917_v12  ;;  %v3066_v12 = vld [vmem:[#allocation2 + $0xc1] sm:$0xff] }
 0x68e   : > { %4275 = vmatmul.f32.gmra.mxu1 %v3791_v7 }
 0x68f   : > { %4388 = vmatmul.f32.gmra.mxu2 %v3823_v60  ;;  %4082 = vmatmul.f32.gmra.mxu0 %v3738_v9  ;;  %v3794_v63 = vsel %vm460_vm0, %v3058_v27, %v5308_v46  ;;  %v5321_v4 = vpop.permute.xlu2 %5320 }
 0x690   : > { %v5323_v9 = vunpack.i.h.bf16 %v5321_v4  ;;  %v5322_v20 = vunpack.i.l.bf16 %v5321_v4  ;;  %v8430_v4 = vld [vmem:[#allocation2 + $0x92] sm:$0xff] }
 0x691   : > { %v5311_v7 = vpop.permute.xlu0 %5310 }
 0x692   : > { %v5316_v40 = vpop.permute.xlu1 %5315  ;;  %v5312_v36 = vunpack.i.l.bf16 %v5311_v7 }
 0x693   : > { %v5317_v56 = vunpack.i.l.bf16 %v5316_v40  ;;  %v5318_v39 = vunpack.i.h.bf16 %v5316_v40  ;;  %v8419_v40 = vld [vmem:[#allocation2 + $0x82] sm:$0xff] }
 0x694   : > { %v3827_v3 = vsel %vm460_vm0, %v8125_v10, %v5312_v36 }
 0x695   : > { %4165 = vmatmul.f32.gmra.mxu3 %v3760_v14  ;;  %v5313_v14 = vunpack.i.h.bf16 %v5311_v7  ;;  %v3795_v8 = vsel %vm460_vm0, %v3059_v48, %v5317_v56  ;;  %v3745_v56 = vsel %vm460_vm0, %v8203_v41, %v8265_v34  ;;  %v3746_v41 = vsel %vm460_vm0, %v8210_v21, %v8279_v2 }
 0x696   : > { %4278 = vmatmul.f32.gmra.mxu1 %v3792_v22  ;;  %v3060_v22 = vld [vmem:[#allocation2 + $0x79] sm:$0xff]  ;;  %v3747_v2 = vsel %vm460_vm0, %v8223_v32, %v8225_v45 }
 0x697   : > { %4391 = vmatmul.f32.gmra.mxu2 %v3824_v47  ;;  %4085 = vmatmul.f32.gmra.mxu0 %v3739_v43  ;;  %v8378_v60 = vpop.f32.mrf.mxu0  ;;  %v3764_v5 = vsel %vm460_vm0, %v8110_v50, %v5313_v14  ;;  %v3796_v10 = vsel %vm460_vm0, %v3060_v22, %v5323_v9  ;;  %v3828_v47 = vsel %vm460_vm0, %v8128_v33, %v5318_v39  ;;  %v8396_v50 = vld [vmem:[#allocation2 + $0x6a] sm:$0xff]  ;;  %v3061_v33 = vld [vmem:[#allocation2 + $0x81] sm:$0xff] }
 0x698   : > { %v3127_v14 = vld [vmem:[#allocation2 + $0xb0] sm:$0xff]  ;;  %v3128_v22 = vld [vmem:[#allocation2 + $0xc0] sm:$0xff] }
 0x699   : > { %v5326_v54 = vpop.permute.xlu0 %5325 }
 0x69a   : > { %v5331_v6 = vpop.permute.xlu1 %5330  ;;  %v5327_v23 = vunpack.i.l.bf16 %v5326_v54  ;;  %v5328_v43 = vunpack.i.h.bf16 %v5326_v54 }
 0x69b   : > { %v5332_v19 = vunpack.i.l.bf16 %v5331_v6  ;;  %v5333_v46 = vunpack.i.h.bf16 %v5331_v6 }
 0x69c   : > { %v3829_v31 = vsel %vm460_vm0, %v8138_v24, %v5327_v23  ;;  %v3062_v24 = vld [vmem:[#allocation2 + $0x91] sm:$0xff] }
 0x69d   : > { %4168 = vmatmul.f32.gmra.mxu3 %v3761_v58  ;;  %v3765_v58 = vsel %vm460_vm0, %v8396_v50, %v5322_v20  ;;  %v3797_v35 = vsel %vm460_vm0, %v3061_v33, %v5332_v19  ;;  %v3064_v20 = vld [vmem:[#allocation2 + $0xa9] sm:$0xff]  ;;  %v3065_v33 = vld [vmem:[#allocation2 + $0xb1] sm:$0xff] }
 0x69e   : > { %4281 = vmatmul.f32.gmra.mxu1 %v3793_v55  ;;  %v5336_v55 = vpop.permute.xlu2 %5335 }
 0x69f   : > { %4394 = vmatmul.f32.gmra.mxu2 %v3825_v18  ;;  %4088 = vmatmul.f32.gmra.mxu0 %v3740_v51  ;;  %v8408_v18 = vld [vmem:[#allocation2 + $0x7a] sm:$0xff]  ;;  %v5337_v42 = vunpack.i.l.bf16 %v5336_v55  ;;  %v3126_v51 = vld [vmem:[#allocation2 + $0xa8] sm:$0xff] }
 0x6a0   : > { %v3766_v61 = vsel %vm460_vm0, %v8408_v18, %v5328_v43  ;;  %v3830_v29 = vsel %vm460_vm0, %v3126_v51, %v5333_v46  ;;  %v8453_v46 = vld [vmem:[#allocation2 + $0xaa] sm:$0xff] }
 0x6a1   : > { %v3767_v7 = vsel %vm460_vm0, %v8419_v40, %v5337_v42 }
 0x6a4   : > { %v8388_v37 = vpop.f32.mrf.mxu0 }
 0x6a5   : > { %4171 = vmatmul.f32.gmra.mxu3 %v3762_v52  ;;  %v5338_v52 = vunpack.i.h.bf16 %v5336_v55 }
 0x6a6   : > { %4284 = vmatmul.f32.gmra.mxu1 %v3794_v63  ;;  %v5346_v63 = vpop.permute.xlu1 %5345 }
 0x6a7   : > { %4397 = vmatmul.f32.gmra.mxu2 %v3826_v0  ;;  %4091 = vmatmul.f32.gmra.mxu0 %v3741_v38  ;;  %v3798_v27 = vsel %vm460_vm0, %v3062_v24, %v5338_v52  ;;  %v5341_v0 = vpop.permute.xlu0 %5340  ;;  %v5347_v1 = vunpack.i.l.bf16 %v5346_v63  ;;  %v3063_v38 = vld [vmem:[#allocation2 + $0x99] sm:$0xff]  ;;  %v5348_v39 = vunpack.i.h.bf16 %v5346_v63  ;;  %v5237_v52 = vunpack.i.l.bf16 %v8286_v53  ;;  %v9093_v24 = vld [vmem:[#allocation23_spill] sm:$0xff] }
 0x6a8   : > { %v5342_v49 = vunpack.i.l.bf16 %v5341_v0  ;;  %v5343_v36 = vunpack.i.h.bf16 %v5341_v0  ;;  %v3916_v63 = vld [vmem:[#allocation8 + $0x200] sm:$0xff]  ;;  %v3179_v0 = vld [vmem:[#allocation2 + $0x1a1] sm:$0xff] }
 0x6a9   : > { %v3799_v48 = vsel %vm460_vm0, %v3063_v38, %v5347_v1  ;;  %v3748_v51 = vsel %vm460_vm0, %v9093_v24, %v5237_v52  ;;  %4491 = vmatpush.msrb.mxu0 %v3916_v63  ;;  %3690 = vrot.lane.b32.xlu0 %v3179_v0, %s5704_s12  ;;  %v8465_v38 = vld [vmem:[#allocation2 + $0xb2] sm:$0xff]  ;;  %v8494_v24 = vld [vmem:[#allocation2 + $0xca] sm:$0xff] }
 0x6ad   : > { %4174 = vmatmul.f32.gmra.mxu3 %v3763_v44 }
 0x6ae   : > { %4287 = vmatmul.f32.gmra.mxu1 %v3795_v8  ;;  %v3831_v8 = vsel %vm460_vm0, %v3127_v14, %v5342_v49  ;;  %v5361_v6 = vpop.permute.xlu1 %5360 }
 0x6af   : > { %4400 = vmatmul.f32.gmra.mxu2 %v3827_v3  ;;  %4094 = vmatmul.f32.gmra.mxu0 %v3742_v11  ;;  %v5351_v3 = vpop.permute.xlu2 %5350  ;;  %v5356_v54 = vpop.permute.xlu0 %5355  ;;  %v5362_v23 = vunpack.i.l.bf16 %v5361_v6  ;;  %v5363_v32 = vunpack.i.h.bf16 %v5361_v6 }
 0x6b0   : > { %v8400_v25 = vpop.f32.mrf.mxu0  ;;  %v5353_v9 = vunpack.i.h.bf16 %v5351_v3  ;;  %v5352_v34 = vunpack.i.l.bf16 %v5351_v3  ;;  %v5358_v43 = vunpack.i.h.bf16 %v5356_v54 }
 0x6b5   : > { %4177 = vmatmul.f32.gmra.mxu3 %v3764_v5  ;;  %v3768_v5 = vsel %vm460_vm0, %v8430_v4, %v5343_v36  ;;  %v5238_v36 = vunpack.i.h.bf16 %v8286_v53 }
 0x6b6   : > { %4290 = vmatmul.f32.gmra.mxu1 %v3796_v10  ;;  %v3800_v10 = vsel %vm460_vm0, %v3064_v20, %v5353_v9  ;;  %v5376_v49 = vpop.permute.xlu1 %5375 }
 0x6b7   : > { %4403 = vmatmul.f32.gmra.mxu2 %v3828_v47  ;;  %4097 = vmatmul.f32.gmra.mxu0 %v3743_v16  ;;  %v3832_v47 = vsel %vm460_vm0, %v3128_v22, %v5348_v39  ;;  %v5357_v16 = vunpack.i.l.bf16 %v5356_v54  ;;  %v3067_v39 = vld [vmem:[#allocation2 + $0xc9] sm:$0xff]  ;;  %v5242_v22 = vunpack.i.l.bf16 %v8297_v57  ;;  %v5378_v54 = vunpack.i.h.bf16 %v5376_v49 }
 0x6b8   : > { %v8412_v28 = vpop.f32.mrf.mxu0 }
 0x6bd   : > { %4180 = vmatmul.f32.gmra.mxu3 %v3765_v58  ;;  %v8441_v58 = vld [vmem:[#allocation2 + $0x9a] sm:$0xff] }
 0x6be   : > { %4293 = vmatmul.f32.gmra.mxu1 %v3797_v35  ;;  %v3769_v19 = vsel %vm460_vm0, %v8441_v58, %v5352_v34  ;;  %v3129_v35 = vld [vmem:[#allocation2 + $0xc8] sm:$0xff] }
 0x6bf   : > { %4406 = vmatmul.f32.gmra.mxu2 %v3829_v31  ;;  %4100 = vmatmul.f32.gmra.mxu0 %v3744_v62  ;;  %v3801_v31 = vsel %vm460_vm0, %v3065_v33, %v5362_v23  ;;  %v3833_v55 = vsel %vm460_vm0, %v3129_v35, %v5357_v16  ;;  %v3770_v62 = vsel %vm460_vm0, %v8453_v46, %v5358_v43  ;;  %v3068_v33 = vld [vmem:[#allocation2 + $0xd9] sm:$0xff]  ;;  %v3132_v35 = vld [vmem:[#allocation2 + $0xf0] sm:$0xff] }
 0x6c0   : > { %v8423_v44 = vpop.f32.mrf.mxu0 }
 0x6c5   : > { %4183 = vmatmul.f32.gmra.mxu3 %v3766_v61  ;;  %v5366_v61 = vpop.permute.xlu2 %5365 }
 0x6c6   : > { %4296 = vmatmul.f32.gmra.mxu1 %v3798_v27  ;;  %v5368_v42 = vunpack.i.h.bf16 %v5366_v61  ;;  %v5367_v27 = vunpack.i.l.bf16 %v5366_v61  ;;  %v3836_v61 = vsel %vm460_vm0, %v3132_v35, %v5378_v54 }
 0x6c7   : > { %4409 = vmatmul.f32.gmra.mxu2 %v3830_v29  ;;  %4103 = vmatmul.f32.gmra.mxu0 %v3745_v56  ;;  %v3130_v29 = vld [vmem:[#allocation2 + $0xd8] sm:$0xff]  ;;  %v5371_v56 = vpop.permute.xlu0 %5370 }
 0x6c8   : > { %v8434_v11 = vpop.f32.mrf.mxu0  ;;  %v3834_v1 = vsel %vm460_vm0, %v3130_v29, %v5363_v32  ;;  %v3771_v14 = vsel %vm460_vm0, %v8465_v38, %v5367_v27  ;;  %v5373_v9 = vunpack.i.h.bf16 %v5371_v56 }
 0x6cd   : > { %4186 = vmatmul.f32.gmra.mxu3 %v3767_v7  ;;  %v3802_v7 = vsel %vm460_vm0, %v3066_v12, %v5368_v42  ;;  %v5381_v20 = vpop.permute.xlu2 %5380 }
 0x6ce   : > { %4299 = vmatmul.f32.gmra.mxu1 %v3799_v48  ;;  %v5377_v48 = vunpack.i.l.bf16 %v5376_v49  ;;  %v5383_v6 = vunpack.i.h.bf16 %v5381_v20  ;;  %v5382_v43 = vunpack.i.l.bf16 %v5381_v20  ;;  %v3069_v49 = vld [vmem:[#allocation2 + $0xe1] sm:$0xff] }
 0x6cf   : > { %4412 = vmatmul.f32.gmra.mxu2 %v3831_v8  ;;  %4106 = vmatmul.f32.gmra.mxu0 %v3746_v41  ;;  %v5372_v8 = vunpack.i.l.bf16 %v5371_v56  ;;  %v3131_v41 = vld [vmem:[#allocation2 + $0xe0] sm:$0xff]  ;;  %v5386_v42 = vpop.permute.xlu0 %5385  ;;  %v3133_v56 = vld [vmem:[#allocation2 + $0xf8] sm:$0xff] }
 0x6d0   : > { %v8445_v21 = vpop.f32.mrf.mxu0  ;;  %v3803_v34 = vsel %vm460_vm0, %v3067_v39, %v5377_v48  ;;  %v5387_v12 = vunpack.i.l.bf16 %v5386_v42 }
 0x6d1   : > { %v3835_v53 = vsel %vm460_vm0, %v3131_v41, %v5372_v8  ;;  %v8509_v41 = vld [vmem:[#allocation2 + $0xda] sm:$0xff] }
 0x6d2   : > { %v3837_v48 = vsel %vm460_vm0, %v3133_v56, %v5387_v12  ;;  %v3135_v56 = vld [vmem:[#allocation2 + $0x110] sm:$0xff] }
 0x6d5   : > { %4189 = vmatmul.f32.gmra.mxu3 %v3768_v5  ;;  %v3749_v5 = vsel %vm460_vm0, %v8247_v17, %v5238_v36 }
 0x6d6   : > { %4302 = vmatmul.f32.gmra.mxu1 %v3800_v10  ;;  %v8479_v10 = vld [vmem:[%s8929_s9] ss:$0 sm:$0xff] }
 0x6d7   : > { %4415 = vmatmul.f32.gmra.mxu2 %v3832_v47  ;;  %4109 = vmatmul.f32.gmra.mxu0 %v3747_v2  ;;  %v8481_v47 = vld [vmem:[#allocation2 + $0xc2] sm:$0xff]  ;;  %v4042_v23 = vadd.f32 %v8479_v10, %v8366_v15  ;;  %v3750_v2 = vsel %vm460_vm0, %v8250_v59, %v5242_v22  ;;  %v5243_v15 = vunpack.i.h.bf16 %v8297_v57  ;;  %v3773_v59 = vsel %vm460_vm0, %v8494_v24, %v5382_v43 }
 0x6d8   : > { %v8457_v45 = vpop.f32.mrf.mxu0  ;;  %v3772_v17 = vsel %vm460_vm0, %v8481_v47, %v5373_v9  ;;  %v4045_v0 = vadd.f32 %v8479_v10, %v8378_v60  ;;  %v9094_v9 = vld [vmem:[#allocation21_spill] sm:$0xff]  ;;  %v3134_v43 = vld [vmem:[#allocation2 + $0x108] sm:$0xff] }
 0x6d9   : > { %v3751_v57 = vsel %vm460_vm0, %v8268_v30, %v5243_v15  ;;  %v5247_v39 = vunpack.i.l.bf16 %v9094_v9 }
 0x6db   : > { %v3752_v54 = vsel %vm460_vm0, %v8271_v13, %v5247_v39 }
 0x6dd   : > { %4192 = vmatmul.f32.gmra.mxu3 %v3769_v19 }
 0x6de   : > { %4305 = vmatmul.f32.gmra.mxu1 %v3801_v31 }
 0x6df   : > { %4418 = vmatmul.f32.gmra.mxu2 %v3833_v55  ;;  %4112 = vmatmul.f32.gmra.mxu0 %v3748_v51  ;;  %v3804_v55 = vsel %vm460_vm0, %v3068_v33, %v5383_v6  ;;  %v4048_v6 = vadd.f32 %v8479_v10, %v8388_v37  ;;  %v5248_v37 = vunpack.i.h.bf16 %v9094_v9  ;;  %v9096_v9 = vld [vmem:[#allocation24_spill] sm:$0xff] }
 0x6e0   : > { %v5252_v39 = vunpack.i.l.bf16 %v9096_v9 }
 0x6e1   : > { %v4267_v16 = vpop.f32.mrf.mxu1 }
 0x6e2   : > { %v8469_v3 = vpop.f32.mrf.mxu0 }
 0x6e5   : > { %4195 = vmatmul.f32.gmra.mxu3 %v3770_v62  ;;  %v5391_v62 = vpop.permute.xlu1 %5390 }
 0x6e6   : > { %4308 = vmatmul.f32.gmra.mxu1 %v3802_v7  ;;  %v5392_v51 = vunpack.i.l.bf16 %v5391_v62 }
 0x6e7   : > { %4421 = vmatmul.f32.gmra.mxu2 %v3834_v1  ;;  %4115 = vmatmul.f32.gmra.mxu0 %v3749_v5  ;;  %v5388_v1 = vunpack.i.h.bf16 %v5386_v42  ;;  %v5396_v5 = vpop.permute.xlu2 %5395  ;;  %v8524_v42 = vld [vmem:[#allocation2 + $0xe2] sm:$0xff] }
 0x6e9   : > { %v3774_v30 = vsel %vm460_vm0, %v8509_v41, %v5388_v1 }
 0x6ea   : > { %v8485_v19 = vpop.f32.mrf.mxu0 }
 0x6ed   : > { %4198 = vmatmul.f32.gmra.mxu3 %v3771_v14  ;;  %v3805_v14 = vsel %vm460_vm0, %v3069_v49, %v5392_v51  ;;  %v3071_v49 = vld [vmem:[#allocation2 + $0xf9] sm:$0xff] }
 0x6ee   : > { %4311 = vmatmul.f32.gmra.mxu1 %v3803_v34  ;;  %v5398_v34 = vunpack.i.h.bf16 %v5396_v5 }
 0x6ef   : > { %4424 = vmatmul.f32.gmra.mxu2 %v3835_v53  ;;  %4118 = vmatmul.f32.gmra.mxu0 %v3750_v2  ;;  %v5393_v53 = vunpack.i.h.bf16 %v5391_v62  ;;  %v3070_v2 = vld [vmem:[#allocation2 + $0xf1] sm:$0xff] }
 0x6f0   : > { %v3806_v35 = vsel %vm460_vm0, %v3070_v2, %v5398_v34 }
 0x6f4   : > { %v8498_v27 = vpop.f32.mrf.mxu0 }
 0x6f5   : > { %4201 = vmatmul.f32.gmra.mxu3 %v3772_v17 }
 0x6f6   : > { %4314 = vmatmul.f32.gmra.mxu1 %v3804_v55 }
 0x6f7   : > { %4427 = vmatmul.f32.gmra.mxu2 %v3836_v61  ;;  %4121 = vmatmul.f32.gmra.mxu0 %v3751_v57  ;;  %v5406_v61 = vpop.permute.xlu1 %5405 }
 0x6f8   : > { %v4154_v31 = vpop.f32.mrf.mxu3  ;;  %v5407_v15 = vunpack.i.l.bf16 %v5406_v61 }
 0x6f9   : > { %v4155_v52 = vadd.f32 %v4154_v31, %v4042_v23  ;;  %v4380_v29 = vpop.f32.mrf.mxu2  ;;  %v3838_v31 = vsel %vm460_vm0, %v3134_v43, %v5393_v53  ;;  %v5408_v53 = vunpack.i.h.bf16 %v5406_v61 }
 0x6fb   : > { %v4268_v32 = vadd.f32 %v4267_v16, %v4155_v52  ;;  %v4270_v7 = vpop.f32.mrf.mxu1  ;;  %v5397_v16 = vunpack.i.l.bf16 %v5396_v5  ;;  %v5401_v52 = vpop.permute.xlu0 %5400 }
 0x6fc   : > { %v8513_v20 = vpop.f32.mrf.mxu0  ;;  %v5403_v1 = vunpack.i.h.bf16 %v5401_v52  ;;  %v5411_v5 = vpop.permute.xlu2 %5410 }
 0x6fd   : > { %4204 = vmatmul.f32.gmra.mxu3 %v3773_v59  ;;  %v8500_v63 = vadd.f32 %v4380_v29, %v4268_v32  ;;  %v3775_v13 = vsel %vm460_vm0, %v8524_v42, %v5397_v16  ;;  %v5402_v32 = vunpack.i.l.bf16 %v5401_v52  ;;  %v4051_v29 = vadd.f32 %v8479_v10, %v8400_v25  ;;  %v9097_v16 = vld [vmem:[#allocation27_spill] sm:$0xff] }
 0x6fe   : > { %4317 = vmatmul.f32.gmra.mxu1 %v3805_v14  ;;  %v3807_v14 = vsel %vm460_vm0, %v3071_v49, %v5407_v15  ;;  %v5413_v34 = vunpack.i.h.bf16 %v5411_v5  ;;  %v3754_v2 = vsel %vm460_vm0, %v9097_v16, %v5252_v39  ;;  %v4057_v49 = vadd.f32 %v8479_v10, %v8423_v44 }
 0x6ff   : > { %4430 = vmatmul.f32.gmra.mxu2 %v3837_v48  ;;  %4124 = vmatmul.f32.gmra.mxu0 %v3752_v54  ;;  %v3839_v48 = vsel %vm460_vm0, %v3135_v56, %v5402_v32  ;;  %v8554_v32 = vld [vmem:[#allocation2 + $0xfa] sm:$0xff] }
 0x700   : > { %v4157_v36 = vpop.f32.mrf.mxu3  ;;  %v9098_v56 = vld [vmem:[#allocation28_spill] sm:$0xff] }
 0x701   : > { %v4158_v8 = vadd.f32 %v4157_v36, %v4045_v0  ;;  %v9095_v0 = vld [vmem:[#allocation19_spill] sm:$0xff] }
 0x702   : > { %v4383_v22 = vpop.f32.mrf.mxu2  ;;  %v3753_v57 = vsel %vm460_vm0, %v9095_v0, %v5248_v37 }
 0x703   : > { %v4271_v60 = vadd.f32 %v4270_v7, %v4158_v8  ;;  %v4273_v23 = vpop.f32.mrf.mxu1 }
 0x704   : > { %v8528_v59 = vpop.f32.mrf.mxu0 }
 0x705   : > { %4207 = vmatmul.f32.gmra.mxu3 %v3774_v30  ;;  %v8515_v17 = vadd.f32 %v4383_v22, %v4271_v60  ;;  %v8539_v60 = vld [vmem:[#allocation2 + $0xf2] sm:$0xff] }
 0x706   : > { %4320 = vmatmul.f32.gmra.mxu1 %v3806_v35  ;;  %v3776_v30 = vsel %vm460_vm0, %v8539_v60, %v5403_v1  ;;  %v3072_v35 = vld [vmem:[#allocation2 + $0x109] sm:$0xff] }
 0x707   : > { %4433 = vmatmul.f32.gmra.mxu2 %v3838_v31  ;;  %4127 = vmatmul.f32.gmra.mxu0 %v3753_v57  ;;  %v3136_v31 = vld [vmem:[#allocation2 + $0x120] sm:$0xff]  ;;  %v3808_v61 = vsel %vm460_vm0, %v3072_v35, %v5413_v34  ;;  %v3180_v35 = vld [vmem:[#allocation2 + $0x32] sm:$0xff] }
 0x708   : > { %v4160_v33 = vpop.f32.mrf.mxu3  ;;  %v3840_v52 = vsel %vm460_vm0, %v3136_v31, %v5408_v53  ;;  %v8568_v53 = vld [vmem:[#allocation2 + $0x10a] sm:$0xff] }
 0x709   : > { %v4161_v55 = vadd.f32 %v4160_v33, %v4048_v6  ;;  %v5412_v33 = vunpack.i.l.bf16 %v5411_v5 }
 0x70a   : > { %v4386_v51 = vpop.f32.mrf.mxu2 }
 0x70b   : > { %v4274_v62 = vadd.f32 %v4273_v23, %v4161_v55  ;;  %v4276_v7 = vpop.f32.mrf.mxu1  ;;  %v4054_v23 = vadd.f32 %v8479_v10, %v8412_v28  ;;  %v5257_v28 = vunpack.i.l.bf16 %v8312_v26 }
 0x70c   : > { %v8543_v22 = vpop.f32.mrf.mxu0 }
 0x70d   : > { %4210 = vmatmul.f32.gmra.mxu3 %v3775_v13  ;;  %v8530_v12 = vadd.f32 %v4386_v51, %v4274_v62  ;;  %v5421_v62 = vpop.permute.xlu1 %5420  ;;  %v5416_v13 = vpop.permute.xlu0 %5415  ;;  %v3777_v51 = vsel %vm460_vm0, %v8554_v32, %v5412_v33  ;;  %v3755_v26 = vsel %vm460_vm0, %v9098_v56, %v5257_v28  ;;  %v4060_v33 = vadd.f32 %v8479_v10, %v8434_v11 }
 0x70e   : > { %4323 = vmatmul.f32.gmra.mxu1 %v3807_v14  ;;  %v5417_v0 = vunpack.i.l.bf16 %v5416_v13  ;;  %v5418_v14 = vunpack.i.h.bf16 %v5416_v13 }
 0x70f   : > { %4436 = vmatmul.f32.gmra.mxu2 %v3839_v48  ;;  %4130 = vmatmul.f32.gmra.mxu0 %v3754_v2  ;;  %v3073_v48 = vld [vmem:[#allocation2 + $0x111] sm:$0xff] }
 0x710   : > { %v4163_v36 = vpop.f32.mrf.mxu3  ;;  %v3778_v44 = vsel %vm460_vm0, %v8568_v53, %v5418_v14  ;;  %v4063_v14 = vadd.f32 %v8479_v10, %v8445_v21 }
 0x711   : > { %v4164_v8 = vadd.f32 %v4163_v36, %v4051_v29  ;;  %v5422_v29 = vunpack.i.l.bf16 %v5421_v62 }
 0x712   : > { %v4389_v6 = vpop.f32.mrf.mxu2 }
 0x713   : > { %v4277_v25 = vadd.f32 %v4276_v7, %v4164_v8  ;;  %v4279_v43 = vpop.f32.mrf.mxu1  ;;  %v3137_v8 = vld [vmem:[#allocation2 + $0x128] sm:$0xff]  ;;  %v3809_v9 = vsel %vm460_vm0, %v3073_v48, %v5422_v29  ;;  %v3181_v48 = vld [vmem:[#allocation2 + $0x3a] sm:$0xff] }
 0x714   : > { %v8558_v57 = vpop.f32.mrf.mxu0  ;;  %v3841_v39 = vsel %vm460_vm0, %v3137_v8, %v5417_v0  ;;  %v8581_v0 = vld [vmem:[#allocation2 + $0x112] sm:$0xff] }
 0x715   : > { %4213 = vmatmul.f32.gmra.mxu3 %v3776_v30  ;;  %v8545_v54 = vadd.f32 %v4389_v6, %v4277_v25  ;;  %v5426_v30 = vpop.permute.xlu2 %5425 }
 0x716   : > { %4326 = vmatmul.f32.gmra.mxu1 %v3808_v61  ;;  %v5428_v6 = vunpack.i.h.bf16 %v5426_v30  ;;  %v5427_v31 = vunpack.i.l.bf16 %v5426_v30  ;;  %v3074_v61 = vld [vmem:[#allocation2 + $0x121] sm:$0xff] }
 0x717   : > { %4439 = vmatmul.f32.gmra.mxu2 %v3840_v52  ;;  %4133 = vmatmul.f32.gmra.mxu0 %v3755_v26  ;;  %v3138_v52 = vld [vmem:[#allocation2 + $0x138] sm:$0xff] }
 0x718   : > { %v4166_v55 = vpop.f32.mrf.mxu3  ;;  %v3810_v13 = vsel %vm460_vm0, %v3074_v61, %v5428_v6  ;;  %v3779_v11 = vsel %vm460_vm0, %v8581_v0, %v5427_v31 }
 0x719   : > { %v4167_v37 = vadd.f32 %v4166_v55, %v4054_v23  ;;  %v5423_v23 = vunpack.i.h.bf16 %v5421_v62 }
 0x71a   : > { %v4392_v7 = vpop.f32.mrf.mxu2 }
 0x71b   : > { %v4280_v15 = vadd.f32 %v4279_v43, %v4167_v37  ;;  %v4282_v36 = vpop.f32.mrf.mxu1  ;;  %v3842_v62 = vsel %vm460_vm0, %v3138_v52, %v5423_v23  ;;  %v3182_v52 = vld [vmem:[#allocation2 + $0x4a] sm:$0xff] }
 0x71c   : > { %v8572_v16 = vpop.f32.mrf.mxu0 }
 0x71d   : > { %4216 = vmatmul.f32.gmra.mxu3 %v3777_v51  ;;  %v8560_v1 = vadd.f32 %v4392_v7, %v4280_v15  ;;  %v5436_v15 = vpop.permute.xlu1 %5435  ;;  %v5431_v51 = vpop.permute.xlu0 %5430 }
 0x71e   : > { %4329 = vmatmul.f32.gmra.mxu1 %v3809_v9  ;;  %v5437_v7 = vunpack.i.l.bf16 %v5436_v15  ;;  %v5433_v8 = vunpack.i.h.bf16 %v5431_v51  ;;  %v3139_v9 = vld [vmem:[#allocation2 + $0x140] sm:$0xff] }
 0x71f   : > { %4442 = vmatmul.f32.gmra.mxu2 %v3841_v39  ;;  %4819 = vmatmul.msk.f32.vlgmr.msrb.gmra.mxu0 %vm460_vm0, %v3180_v35  ;;  %v5438_v35 = vunpack.i.h.bf16 %v5436_v15  ;;  %v8605_v15 = vld [vmem:[#allocation2 + $0x12a] sm:$0xff] }
 0x720   : > { %v4169_v5 = vpop.f32.mrf.mxu3 }
 0x721   : > { %v4170_v25 = vadd.f32 %v4169_v5, %v4057_v49  ;;  %v5432_v49 = vunpack.i.l.bf16 %v5431_v51  ;;  %v3075_v5 = vld [vmem:[#allocation2 + $0x129] sm:$0xff] }
 0x722   : > { %v4395_v2 = vpop.f32.mrf.mxu2 }
 0x723   : > { %v4283_v34 = vadd.f32 %v4282_v36, %v4170_v25  ;;  %v4285_v55 = vpop.f32.mrf.mxu1  ;;  %v3811_v25 = vsel %vm460_vm0, %v3075_v5, %v5437_v7  ;;  %v3843_v30 = vsel %vm460_vm0, %v3139_v9, %v5432_v49  ;;  %v3077_v5 = vld [vmem:[#allocation2 + $0x141] sm:$0xff]  ;;  %v3141_v9 = vld [vmem:[#allocation2 + $0x158] sm:$0xff] }
 0x724   : > { %v8585_v56 = vpop.f32.mrf.mxu0 }
 0x725   : > { %4219 = vmatmul.f32.gmra.mxu3 %v3778_v44  ;;  %v8574_v43 = vadd.f32 %v4395_v2, %v4283_v34  ;;  %v5441_v44 = vpop.permute.xlu2 %5440  ;;  %v8594_v2 = vld [vmem:[#allocation2 + $0x122] sm:$0xff] }
 0x726   : > { %4332 = vmatmul.f32.gmra.mxu1 %v3810_v13  ;;  %v3780_v21 = vsel %vm460_vm0, %v8594_v2, %v5433_v8  ;;  %v3076_v13 = vld [vmem:[#allocation2 + $0x139] sm:$0xff] }
 0x727   : > { %4445 = vmatmul.f32.gmra.mxu2 %v3842_v62  ;;  %4820 = vmatmul.msk.f32.gmra.mxu0 %vm460_vm0, %v3181_v48  ;;  %v3140_v62 = vld [vmem:[#allocation2 + $0x150] sm:$0xff] }
 0x728   : > { %v4172_v37 = vpop.f32.mrf.mxu3  ;;  %v3844_v51 = vsel %vm460_vm0, %v3140_v62, %v5438_v35  ;;  %v3183_v48 = vld [vmem:[#allocation2 + $0x52] sm:$0xff] }
 0x729   : > { %v4173_v28 = vadd.f32 %v4172_v37, %v4060_v33  ;;  %v5443_v33 = vunpack.i.h.bf16 %v5441_v44  ;;  %v5442_v37 = vunpack.i.l.bf16 %v5441_v44 }
 0x72a   : > { %v4398_v26 = vpop.f32.mrf.mxu2 }
 0x72b   : > { %v4286_v29 = vadd.f32 %v4285_v55, %v4173_v28  ;;  %v4288_v6 = vpop.f32.mrf.mxu1  ;;  %v3812_v28 = vsel %vm460_vm0, %v3076_v13, %v5443_v33  ;;  %v3781_v7 = vsel %vm460_vm0, %v8605_v15, %v5442_v37  ;;  %v3184_v33 = vld [vmem:[#allocation2 + $0x62] sm:$0xff] }
 0x72c   : > { %v8598_v31 = vpop.f32.mrf.mxu0 }
 0x72d   : > { %4222 = vmatmul.f32.gmra.mxu3 %v3779_v11  ;;  %v8587_v36 = vadd.f32 %v4398_v26, %v4286_v29  ;;  %v5451_v29 = vpop.permute.xlu1 %5450  ;;  %v5446_v11 = vpop.permute.xlu0 %5445 }
 0x72e   : > { %4335 = vmatmul.f32.gmra.mxu1 %v3811_v25  ;;  %v5452_v49 = vunpack.i.l.bf16 %v5451_v29  ;;  %v5447_v26 = vunpack.i.l.bf16 %v5446_v11  ;;  %v5448_v8 = vunpack.i.h.bf16 %v5446_v11 }
 0x72f   : > { %4448 = vmatmul.f32.gmra.mxu2 %v3843_v30  ;;  %4821 = vmatmul.msk.f32.gmra.mxu0 %vm460_vm0, %v3182_v52  ;;  %v5456_v30 = vpop.permute.xlu2 %5455  ;;  %v3142_v52 = vld [vmem:[#allocation2 + $0x168] sm:$0xff] }
 0x730   : > { %v4175_v39 = vpop.f32.mrf.mxu3  ;;  %v3845_v25 = vsel %vm460_vm0, %v3141_v9, %v5447_v26  ;;  %v5457_v35 = vunpack.i.l.bf16 %v5456_v30 }
 0x731   : > { %v4176_v34 = vadd.f32 %v4175_v39, %v4063_v14  ;;  %v3813_v39 = vsel %vm460_vm0, %v3077_v5, %v5452_v49 }
 0x732   : > { %v4401_v55 = vpop.f32.mrf.mxu2 }
 0x733   : > { %v4289_v23 = vadd.f32 %v4288_v6, %v4176_v34  ;;  %v8614_v34 = vld [vmem:[#allocation2 + $0x13a] sm:$0xff]  ;;  %v5458_v6 = vunpack.i.h.bf16 %v5456_v30 }
 0x734   : > { %v8609_v14 = vpop.f32.mrf.mxu0  ;;  %v3782_v44 = vsel %vm460_vm0, %v8614_v34, %v5448_v8  ;;  %v3143_v8 = vld [vmem:[#allocation2 + $0x170] sm:$0xff] }
 0x735   : > { %4225 = vmatmul.f32.gmra.mxu3 %v3780_v21  ;;  %v8600_v61 = vadd.f32 %v4401_v55, %v4289_v23  ;;  %v5453_v23 = vunpack.i.h.bf16 %v5451_v29  ;;  %v3078_v55 = vld [vmem:[#allocation2 + $0x151] sm:$0xff]  ;;  %v5466_v62 = vpop.permute.xlu1 %5465 }
 0x736   : > { %4338 = vmatmul.f32.gmra.mxu1 %v3812_v28  ;;  %v3814_v37 = vsel %vm460_vm0, %v3078_v55, %v5458_v6  ;;  %v5461_v28 = vpop.permute.xlu0 %5460  ;;  %v5467_v11 = vunpack.i.l.bf16 %v5466_v62  ;;  %v5468_v6 = vunpack.i.h.bf16 %v5466_v62 }
 0x737   : > { %4451 = vmatmul.f32.gmra.mxu2 %v3844_v51  ;;  %4822 = vmatmul.msk.f32.gmra.mxu0 %vm460_vm0, %v3183_v48  ;;  %v3846_v13 = vsel %vm460_vm0, %v3142_v52, %v5453_v23  ;;  %v8623_v51 = vld [vmem:[#allocation2 + $0x142] sm:$0xff]  ;;  %v5463_v26 = vunpack.i.h.bf16 %v5461_v28  ;;  %v3079_v48 = vld [vmem:[#allocation2 + $0x159] sm:$0xff] }
 0x738   : > { %v3783_v29 = vsel %vm460_vm0, %v8623_v51, %v5457_v35  ;;  %v3815_v5 = vsel %vm460_vm0, %v3079_v48, %v5467_v11  ;;  %v3144_v35 = vld [vmem:[#allocation2 + $0x180] sm:$0xff]  ;;  %v3145_v48 = vld [vmem:[#allocation2 + $0x188] sm:$0xff] }
 0x739   : > { %v3848_v52 = vsel %vm460_vm0, %v3144_v35, %v5468_v6  ;;  %v3082_v35 = vld [vmem:[#allocation2 + $0x181] sm:$0xff] }
 0x73c   : > { %v8618_v21 = vpop.f32.mrf.mxu0 }
 0x73d   : > { %4228 = vmatmul.f32.gmra.mxu3 %v3781_v7  ;;  %v5462_v7 = vunpack.i.l.bf16 %v5461_v28  ;;  %v8643_v28 = vld [vmem:[#allocation2 + $0x15a] sm:$0xff] }
 0x73e   : > { %4341 = vmatmul.f32.gmra.mxu1 %v3813_v39  ;;  %v5471_v39 = vpop.permute.xlu2 %5470 }
 0x73f   : > { %4454 = vmatmul.f32.gmra.mxu2 %v3845_v25  ;;  %4823 = vmatmul.msk.f32.gmra.mxu0 %vm460_vm0, %v3184_v33  ;;  %v3847_v9 = vsel %vm460_vm0, %v3143_v8, %v5462_v7  ;;  %v8633_v25 = vld [vmem:[#allocation2 + $0x152] sm:$0xff]  ;;  %v3080_v33 = vld [vmem:[#allocation2 + $0x169] sm:$0xff] }
 0x740   : > { %v3784_v30 = vsel %vm460_vm0, %v8633_v25, %v5463_v26  ;;  %v3081_v26 = vld [vmem:[#allocation2 + $0x171] sm:$0xff] }
 0x744   : > { %v8627_v49 = vpop.f32.mrf.mxu0 }
 0x745   : > { %4231 = vmatmul.f32.gmra.mxu3 %v3782_v44  ;;  %v5473_v44 = vunpack.i.h.bf16 %v5471_v39 }
 0x746   : > { %4344 = vmatmul.f32.gmra.mxu1 %v3814_v37  ;;  %v5481_v37 = vpop.permute.xlu1 %5480 }
 0x747   : > { %4457 = vmatmul.f32.gmra.mxu2 %v3846_v13  ;;  %4824 = vmatmul.msk.f32.gmra.mxu0 %vm460_vm0, %v8396_v50  ;;  %v5472_v50 = vunpack.i.l.bf16 %v5471_v39  ;;  %v3816_v55 = vsel %vm460_vm0, %v3080_v33, %v5473_v44  ;;  %v5476_v13 = vpop.permute.xlu0 %5475  ;;  %v8653_v39 = vld [vmem:[#allocation2 + $0x16a] sm:$0xff]  ;;  %v5483_v6 = vunpack.i.h.bf16 %v5481_v37 }
 0x748   : > { %v5477_v11 = vunpack.i.l.bf16 %v5476_v13 }
 0x749   : > { %v3785_v62 = vsel %vm460_vm0, %v8643_v28, %v5472_v50 }
 0x74c   : > { %v8637_v23 = vpop.f32.mrf.mxu0 }
 0x74d   : > { %4234 = vmatmul.f32.gmra.mxu3 %v3783_v29  ;;  %v5482_v29 = vunpack.i.l.bf16 %v5481_v37 }
 0x74e   : > { %4347 = vmatmul.f32.gmra.mxu1 %v3815_v5  ;;  %v3849_v5 = vsel %vm460_vm0, %v3145_v48, %v5477_v11 }
 0x74f   : > { %4460 = vmatmul.f32.gmra.mxu2 %v3847_v9  ;;  %4825 = vmatmul.msk.f32.gmra.mxu0 %vm460_vm0, %v8408_v18  ;;  %v5478_v18 = vunpack.i.h.bf16 %v5476_v13  ;;  %v3817_v8 = vsel %vm460_vm0, %v3081_v26, %v5482_v29  ;;  %v5486_v9 = vpop.permute.xlu2 %5485  ;;  %v8663_v13 = vld [vmem:[#allocation2 + $0x172] sm:$0xff]  ;;  %v3147_v29 = vld [vmem:[#allocation2 + $0x1a0] sm:$0xff]  ;;  %v3083_v26 = vld [vmem:[#allocation2 + $0x189] sm:$0xff] }
 0x750   : > { %v5488_v44 = vunpack.i.h.bf16 %v5486_v9  ;;  %v5487_v33 = vunpack.i.l.bf16 %v5486_v9 }
 0x752   : > { %v3787_v37 = vsel %vm460_vm0, %v8663_v13, %v5487_v33  ;;  %v4291_v33 = vpop.f32.mrf.mxu1 }
 0x754   : > { %v8647_v7 = vpop.f32.mrf.mxu0 }
 0x755   : > { %4237 = vmatmul.f32.gmra.mxu3 %v3784_v30  ;;  %v3786_v30 = vsel %vm460_vm0, %v8653_v39, %v5478_v18  ;;  %v3563_v18 = vpop.permute.xlu1 %3562 }
 0x756   : > { %4350 = vmatmul.f32.gmra.mxu1 %v3816_v55  ;;  %v3818_v55 = vsel %vm460_vm0, %v3082_v35, %v5488_v44  ;;  %v3819_v48 = vsel %vm460_vm0, %v3083_v26, %v3563_v18  ;;  %v5508_v26 = vld [vmem:[%s5875_s28 + $0x18] sm:$0xff] }
 0x757   : > { %4463 = vmatmul.f32.gmra.mxu2 %v3848_v52  ;;  %4826 = vmatmul.msk.f32.gmra.mxu0 %vm460_vm0, %v8419_v40  ;;  %v3146_v40 = vld [vmem:[#allocation2 + $0x198] sm:$0xff] }
 0x758   : > { %v3850_v52 = vsel %vm460_vm0, %v3146_v40, %v5483_v6  ;;  %v5506_v40 = vld [vmem:[%s5875_s28 + $0x8] sm:$0xff] }
 0x75c   : > { %v8657_v50 = vpop.f32.mrf.mxu0 }
 0x75d   : > { %4240 = vmatmul.f32.gmra.mxu3 %v3785_v62  ;;  %v3691_v62 = vpop.permute.xlu0 %3690 }
 0x75e   : > { %4353 = vmatmul.f32.gmra.mxu1 %v3817_v8 }
 0x75f   : > { %4466 = vmatmul.f32.gmra.mxu2 %v3849_v5  ;;  %4827 = vmatmul.msk.f32.gmra.mxu0 %vm460_vm0, %v8430_v4  ;;  %v3851_v4 = vsel %vm460_vm0, %v3147_v29, %v3691_v62 }
 0x764   : > { %v8667_v11 = vpop.f32.mrf.mxu0 }
 0x765   : > { %4243 = vmatmul.f32.gmra.mxu3 %v3786_v30 }
 0x766   : > { %4356 = vmatmul.f32.gmra.mxu1 %v3818_v55 }
 0x767   : > { %4469 = vmatmul.f32.gmra.mxu2 %v3850_v52  ;;  %4828 = vmatmul.msk.f32.gmra.mxu0 %vm460_vm0, %v8441_v58 }
 0x76c   : > { %v8673_v8 = vpop.f32.mrf.mxu0 }
 0x76d   : > { %4246 = vmatmul.f32.gmra.mxu3 %v3787_v37  ;;  %v5507_v37 = vld [vmem:[%s5875_s28 + $0x10] sm:$0xff] }
 0x76e   : > { %4359 = vmatmul.f32.gmra.mxu1 %v3819_v48 }
 0x76f   : > { %4472 = vmatmul.f32.gmra.mxu2 %v3851_v4  ;;  %4829 = vmatmul.msk.f32.gmra.mxu0 %vm460_vm0, %v8453_v46 }
 0x774   : > { %v8677_v5 = vpop.f32.mrf.mxu0 }
 0x777   : > { %4830 = vmatmul.msk.f32.gmra.mxu0 %vm460_vm0, %v8465_v38 }
 0x77c   : > { %v8681_v9 = vpop.f32.mrf.mxu0 }
 0x77f   : > { %4831 = vmatmul.msk.f32.gmra.mxu0 %vm460_vm0, %v8481_v47  ;;  %v5505_v47 = vld [vmem:[%s5875_s28] sm:$0xff] }
 0x784   : > { %v8685_v58 = vpop.f32.mrf.mxu0 }
 0x787   : > { %4832 = vmatmul.msk.f32.gmra.mxu0 %vm460_vm0, %v8494_v24  ;;  %v4178_v24 = vpop.f32.mrf.mxu3 }
 0x78c   : > { %v8689_v30 = vpop.f32.mrf.mxu0 }
 0x78f   : > { %4833 = vmatmul.msk.f32.gmra.mxu0 %vm460_vm0, %v8509_v41  ;;  %v4181_v35 = vpop.f32.mrf.mxu3 }
 0x794   : > { %v8693_v46 = vpop.f32.mrf.mxu0 }
 0x797   : > { %4834 = vmatmul.msk.f32.gmra.mxu0 %vm460_vm0, %v8524_v42  ;;  %v4184_v4 = vpop.f32.mrf.mxu3 }
 0x79c   : > { %v4493_v38 = vpop.f32.mrf.mxu0 }
 0x79d   : > { %v4494_v44 = vadd.f32 %v4493_v38, %v8500_v63 }
 0x79f   : > { %v4589_v6 = vadd.f32 %v5505_v47, %v4494_v44  ;;  %4835 = vmatmul.msk.f32.gmra.mxu0 %vm460_vm0, %v8539_v60  ;;  %v4404_v60 = vpop.f32.mrf.mxu2  ;;  %v5509_v47 = vld [vmem:[%s5875_s28 + $0x20] sm:$0xff] }
 0x7a1   : > { %4621 = vst.msk [vmem:[%s8703_s22] sm:$0xff] %vm460_vm0, %v4589_v6 }
 0x7a4   : > { %v4496_v41 = vpop.f32.mrf.mxu0 }
 0x7a5   : > { %v4497_v42 = vadd.f32 %v4496_v41, %v8515_v17  ;;  %v4294_v17 = vpop.f32.mrf.mxu1 }
 0x7a7   : > { %v4590_v63 = vadd.f32 %v5506_v40, %v4497_v42  ;;  %4836 = vmatmul.msk.f32.gmra.mxu0 %vm460_vm0, %v8554_v32  ;;  %v4407_v29 = vpop.f32.mrf.mxu2  ;;  %v5510_v40 = vld [vmem:[%s5875_s28 + $0x28] sm:$0xff] }
 0x7a9   : > { %4622 = vst.msk [vmem:[%s8703_s22 + $0x8] sm:$0xff] %vm460_vm0, %v4590_v63 }
 0x7ac   : > { %v4499_v55 = vpop.f32.mrf.mxu0 }
 0x7ad   : > { %v4500_v52 = vadd.f32 %v4499_v55, %v8530_v12  ;;  %v4297_v12 = vpop.f32.mrf.mxu1 }
 0x7af   : > { %v4591_v62 = vadd.f32 %v5507_v37, %v4500_v52  ;;  %4837 = vmatmul.msk.f32.gmra.mxu0 %vm460_vm0, %v8568_v53  ;;  %v4410_v44 = vpop.f32.mrf.mxu2  ;;  %v5511_v37 = vld [vmem:[%s5875_s28 + $0x30] sm:$0xff] }
 0x7b1   : > { %4623 = vst.msk [vmem:[%s8703_s22 + $0x10] sm:$0xff] %vm460_vm0, %v4591_v62 }
 0x7b4   : > { %v4502_v32 = vpop.f32.mrf.mxu0 }
 0x7b5   : > { %v4503_v18 = vadd.f32 %v4502_v32, %v8545_v54  ;;  %v4187_v54 = vpop.f32.mrf.mxu3  ;;  %v4300_v42 = vpop.f32.mrf.mxu1  ;;  %v4066_v32 = vadd.f32 %v8479_v10, %v8457_v45 }
 0x7b7   : > { %v4592_v48 = vadd.f32 %v5508_v26, %v4503_v18  ;;  %4838 = vmatmul.msk.f32.gmra.mxu0 %vm460_vm0, %v8581_v0 }
 0x7b9   : > { %4624 = vst.msk [vmem:[%s8703_s22 + $0x18] sm:$0xff] %vm460_vm0, %v4592_v48 }
 0x7bc   : > { %v4505_v53 = vpop.f32.mrf.mxu0 }
 0x7bd   : > { %v4506_v38 = vadd.f32 %v4505_v53, %v8560_v1  ;;  %v4413_v1 = vpop.f32.mrf.mxu2  ;;  %v4190_v55 = vpop.f32.mrf.mxu3 }
 0x7bf   : > { %v4593_v6 = vadd.f32 %v5509_v47, %v4506_v38  ;;  %4839 = vmatmul.msk.f32.gmra.mxu0 %vm460_vm0, %v8594_v2  ;;  %v5512_v38 = vld [vmem:[%s5875_s28 + $0x38] sm:$0xff] }
 0x7c1   : > { %4625 = vst.msk [vmem:[%s8703_s22 + $0x20] sm:$0xff] %vm460_vm0, %v4593_v6 }
 0x7c4   : > { %v4508_v41 = vpop.f32.mrf.mxu0 }
 0x7c5   : > { %v4509_v0 = vadd.f32 %v4508_v41, %v8574_v43  ;;  %v4303_v43 = vpop.f32.mrf.mxu1  ;;  %v4416_v18 = vpop.f32.mrf.mxu2 }
 0x7c6   : > { %v4193_v26 = vpop.f32.mrf.mxu3 }
 0x7c7   : > { %v4594_v63 = vadd.f32 %v5510_v40, %v4509_v0  ;;  %4840 = vmatmul.msk.f32.gmra.mxu0 %vm460_vm0, %v8605_v15  ;;  %v4179_v15 = vadd.f32 %v4178_v24, %v4066_v32 }
 0x7c9   : > { %4626 = vst.msk [vmem:[%s8703_s22 + $0x28] sm:$0xff] %vm460_vm0, %v4594_v63  ;;  %v5513_v63 = vld [vmem:[%s5875_s28 + $0x40] sm:$0xff] }
 0x7cc   : > { %v4511_v52 = vpop.f32.mrf.mxu0 }
 0x7cd   : > { %v4512_v2 = vadd.f32 %v4511_v52, %v8587_v36  ;;  %v4292_v36 = vadd.f32 %v4291_v33, %v4179_v15  ;;  %v4306_v45 = vpop.f32.mrf.mxu1  ;;  %v4419_v0 = vpop.f32.mrf.mxu2 }
 0x7cf   : > { %v4595_v62 = vadd.f32 %v5511_v37, %v4512_v2  ;;  %4841 = vmatmul.msk.f32.gmra.mxu0 %vm460_vm0, %v8614_v34  ;;  %v4069_v34 = vadd.f32 %v8479_v10, %v8469_v3  ;;  %v4405_v24 = vadd.f32 %v4404_v60, %v4292_v36  ;;  %v4072_v3 = vadd.f32 %v8479_v10, %v8485_v19 }
 0x7d0   : > { %v4075_v19 = vadd.f32 %v8479_v10, %v8498_v27 }
 0x7d1   : > { %4627 = vst.msk [vmem:[%s8703_s22 + $0x30] sm:$0xff] %vm460_vm0, %v4595_v62  ;;  %v4182_v6 = vadd.f32 %v4181_v35, %v4069_v34  ;;  %v4185_v60 = vadd.f32 %v4184_v4, %v4072_v3 }
 0x7d2   : > { %v4188_v4 = vadd.f32 %v4187_v54, %v4075_v19  ;;  %v3209_v19 = vld [vmem:[#allocation2 + $0x18a] sm:$0xff] }
 0x7d3   : > { %v4295_v33 = vadd.f32 %v4294_v17, %v4182_v6  ;;  %v4298_v62 = vadd.f32 %v4297_v12, %v4185_v60  ;;  %v5514_v17 = vld [vmem:[%s5875_s28 + $0x48] sm:$0xff]  ;;  %v5517_v60 = vld [vmem:[%s5875_s28 + $0x60] sm:$0xff] }
 0x7d4   : > { %v4514_v48 = vpop.f32.mrf.mxu0  ;;  %v4301_v12 = vadd.f32 %v4300_v42, %v4188_v4  ;;  %v5516_v42 = vld [vmem:[%s5875_s28 + $0x58] sm:$0xff] }
 0x7d5   : > { %v4515_v53 = vadd.f32 %v4514_v48, %v8600_v61  ;;  %v4196_v61 = vpop.f32.mrf.mxu3  ;;  %v4309_v35 = vpop.f32.mrf.mxu1 }
 0x7d6   : > { %v4422_v32 = vpop.f32.mrf.mxu2 }
 0x7d7   : > { %v4596_v47 = vadd.f32 %v5512_v38, %v4515_v53  ;;  %4842 = vmatmul.msk.f32.gmra.mxu0 %vm460_vm0, %v8623_v51  ;;  %v4408_v51 = vadd.f32 %v4407_v29, %v4295_v33  ;;  %v4411_v29 = vadd.f32 %v4410_v44, %v4298_v62  ;;  %v5515_v38 = vld [vmem:[%s5875_s28 + $0x50] sm:$0xff]  ;;  %v4414_v44 = vadd.f32 %v4413_v1, %v4301_v12 }
 0x7d8   : > { %v3210_v12 = vld [vmem:[#allocation2 + $0x19a] sm:$0xff] }
 0x7d9   : > { %4628 = vst.msk [vmem:[%s8703_s22 + $0x38] sm:$0xff] %vm460_vm0, %v4596_v47 }
 0x7dc   : > { %v4517_v41 = vpop.f32.mrf.mxu0 }
 0x7dd   : > { %v4518_v40 = vadd.f32 %v4517_v41, %v4405_v24  ;;  %v4312_v36 = vpop.f32.mrf.mxu1 }
 0x7de   : > { %v4425_v34 = vpop.f32.mrf.mxu2 }
 0x7df   : > { %v4597_v52 = vadd.f32 %v5513_v63, %v4518_v40  ;;  %4843 = vmatmul.msk.f32.gmra.mxu0 %vm460_vm0, %v8633_v25  ;;  %v4199_v25 = vpop.f32.mrf.mxu3 }
 0x7e1   : > { %4629 = vst.msk [vmem:[%s8703_s22 + $0x40] sm:$0xff] %vm460_vm0, %v4597_v52 }
 0x7e4   : > { %v4520_v2 = vpop.f32.mrf.mxu0 }
 0x7e5   : > { %v4521_v37 = vadd.f32 %v4520_v2, %v4408_v51  ;;  %v3208_v51 = vld [vmem:[#allocation2 + $0x182] sm:$0xff] }
 0x7e6   : > { %v4428_v1 = vpop.f32.mrf.mxu2 }
 0x7e7   : > { %v4598_v15 = vadd.f32 %v5514_v17, %v4521_v37  ;;  %4844 = vmatmul.msk.f32.gmra.mxu0 %vm460_vm0, %v8643_v28  ;;  %v4078_v28 = vadd.f32 %v8479_v10, %v8513_v20  ;;  %v4202_v27 = vpop.f32.mrf.mxu3  ;;  %v4081_v20 = vadd.f32 %v8479_v10, %v8528_v59 }
 0x7e9   : > { %4630 = vst.msk [vmem:[%s8703_s22 + $0x48] sm:$0xff] %vm460_vm0, %v4598_v15  ;;  %v4191_v54 = vadd.f32 %v4190_v55, %v4078_v28  ;;  %v4194_v63 = vadd.f32 %v4193_v26, %v4081_v20 }
 0x7eb   : > { %v4304_v41 = vadd.f32 %v4303_v43, %v4191_v54  ;;  %v4307_v43 = vadd.f32 %v4306_v45, %v4194_v63 }
 0x7ec   : > { %v4523_v48 = vpop.f32.mrf.mxu0 }
 0x7ed   : > { %v4524_v53 = vadd.f32 %v4523_v48, %v4411_v29  ;;  %v4417_v33 = vadd.f32 %v4416_v18, %v4304_v41  ;;  %v4420_v18 = vadd.f32 %v4419_v0, %v4307_v43  ;;  %v5518_v29 = vld [vmem:[%s5875_s28 + $0x68] sm:$0xff] }
 0x7ee   : > { %v4431_v62 = vpop.f32.mrf.mxu2 }
 0x7ef   : > { %v4599_v47 = vadd.f32 %v5515_v38, %v4524_v53  ;;  %4845 = vmatmul.msk.f32.gmra.mxu0 %vm460_vm0, %v8653_v39  ;;  %v4315_v39 = vpop.f32.mrf.mxu1  ;;  %v4205_v55 = vpop.f32.mrf.mxu3 }
 0x7f1   : > { %4631 = vst.msk [vmem:[%s8703_s22 + $0x50] sm:$0xff] %vm460_vm0, %v4599_v47 }
 0x7f4   : > { %v4526_v24 = vpop.f32.mrf.mxu0 }
 0x7f5   : > { %v4527_v6 = vadd.f32 %v4526_v24, %v4414_v44 }
 0x7f6   : > { %v4434_v28 = vpop.f32.mrf.mxu2 }
 0x7f7   : > { %v4600_v40 = vadd.f32 %v5516_v42, %v4527_v6  ;;  %4846 = vmatmul.msk.f32.gmra.mxu0 %vm460_vm0, %v8663_v13  ;;  %v4084_v13 = vadd.f32 %v8479_v10, %v8543_v22  ;;  %v4318_v59 = vpop.f32.mrf.mxu1  ;;  %v4208_v15 = vpop.f32.mrf.mxu3  ;;  %v4087_v22 = vadd.f32 %v8479_v10, %v8558_v57  ;;  %v4090_v57 = vadd.f32 %v8479_v10, %v8572_v16  ;;  %v3211_v6 = vld [vmem:[#allocation2 + $0x1a2] sm:$0xff] }
 0x7f9   : > { %4632 = vst.msk [vmem:[%s8703_s22 + $0x58] sm:$0xff] %vm460_vm0, %v4600_v40  ;;  %v4197_v26 = vadd.f32 %v4196_v61, %v4084_v13  ;;  %v4200_v0 = vadd.f32 %v4199_v25, %v4087_v22  ;;  %v4203_v25 = vadd.f32 %v4202_v27, %v4090_v57  ;;  %v5520_v40 = vld [vmem:[%s5875_s28 + $0x78] sm:$0xff] }
 0x7fb   : > { %v4310_v45 = vadd.f32 %v4309_v35, %v4197_v26  ;;  %v4313_v47 = vadd.f32 %v4312_v36, %v4200_v0  ;;  %v5519_v35 = vld [vmem:[%s5875_s28 + $0x70] sm:$0xff]  ;;  %v4316_v36 = vadd.f32 %v4315_v39, %v4203_v25  ;;  %v5521_v39 = vld [vmem:[%s5875_s28 + $0x80] sm:$0xff] }
 0x7fc   : > { %v4529_v52 = vpop.f32.mrf.mxu0  ;;  %v5523_v0 = vld [vmem:[%s5875_s28 + $0x90] sm:$0xff] }
 0x7fd   : > { %v4530_v3 = vadd.f32 %v4529_v52, %v4417_v33  ;;  %v4423_v48 = vadd.f32 %v4422_v32, %v4310_v45  ;;  %v4426_v32 = vadd.f32 %v4425_v34, %v4313_v47  ;;  %v4093_v33 = vadd.f32 %v8479_v10, %v8585_v56 }
 0x7fe   : > { %v4437_v63 = vpop.f32.mrf.mxu2  ;;  %v4429_v34 = vadd.f32 %v4428_v1, %v4316_v36 }
 0x7ff   : > { %v4601_v2 = vadd.f32 %v5517_v60, %v4530_v3  ;;  %4847 = vmatmul.msk.f32.gmra.mxu0 %vm460_vm0, %v3208_v51  ;;  %v4321_v61 = vpop.f32.mrf.mxu1  ;;  %v4211_v54 = vpop.f32.mrf.mxu3  ;;  %v4206_v27 = vadd.f32 %v4205_v55, %v4093_v33 }
 0x801   : > { %4633 = vst.msk [vmem:[%s8703_s22 + $0x60] sm:$0xff] %vm460_vm0, %v4601_v2  ;;  %v4319_v51 = vadd.f32 %v4318_v59, %v4206_v27  ;;  %v4096_v2 = vadd.f32 %v8479_v10, %v8598_v31 }
 0x803   : > { %v4432_v56 = vadd.f32 %v4431_v62, %v4319_v51  ;;  %v4209_v13 = vadd.f32 %v4208_v15, %v4096_v2  ;;  %v5527_v51 = vld [vmem:[%s5875_s28 + $0xa8] sm:$0xff] }
 0x804   : > { %v4532_v37 = vpop.f32.mrf.mxu0 }
 0x805   : > { %v4533_v17 = vadd.f32 %v4532_v37, %v4420_v18  ;;  %v4322_v37 = vadd.f32 %v4321_v61, %v4209_v13 }
 0x806   : > { %v4440_v18 = vpop.f32.mrf.mxu2 }
 0x807   : > { %v4602_v4 = vadd.f32 %v5518_v29, %v4533_v17  ;;  %4848 = vmatmul.msk.f32.gmra.mxu0 %vm460_vm0, %v3209_v19  ;;  %v4324_v42 = vpop.f32.mrf.mxu1  ;;  %v4214_v16 = vpop.f32.mrf.mxu3  ;;  %v5522_v17 = vld [vmem:[%s5875_s28 + $0x88] sm:$0xff]  ;;  %v4099_v19 = vadd.f32 %v8479_v10, %v8609_v14  ;;  %v4435_v31 = vadd.f32 %v4434_v28, %v4322_v37 }
 0x809   : > { %4634 = vst.msk [vmem:[%s8703_s22 + $0x68] sm:$0xff] %vm460_vm0, %v4602_v4  ;;  %v4212_v29 = vadd.f32 %v4211_v54, %v4099_v19  ;;  %v5525_v54 = vld [vmem:[%s5875_s28 + $0x98] sm:$0xff] }
 0x80c   : > { %v4535_v53 = vpop.f32.mrf.mxu0 }
 0x80d   : > { %v4536_v38 = vadd.f32 %v4535_v53, %v4423_v48  ;;  %v4325_v48 = vadd.f32 %v4324_v42, %v4212_v29  ;;  %v8819_v53 = vld [vmem:[%s8929_s9] ss:$0 sm:$0xff] }
 0x80e   : > { %v4443_v62 = vpop.f32.mrf.mxu2  ;;  %v4102_v10 = vadd.f32 %v8819_v53, %v8618_v21  ;;  %v4105_v25 = vadd.f32 %v8819_v53, %v8627_v49  ;;  %v4108_v33 = vadd.f32 %v8819_v53, %v8637_v23 }
 0x80f   : > { %v4603_v44 = vadd.f32 %v5519_v35, %v4536_v38  ;;  %4849 = vmatmul.msk.f32.gmra.mxu0 %vm460_vm0, %v3210_v12  ;;  %v4327_v60 = vpop.f32.mrf.mxu1  ;;  %v4217_v26 = vpop.f32.mrf.mxu3  ;;  %v4438_v14 = vadd.f32 %v4437_v63, %v4325_v48  ;;  %v4117_v48 = vadd.f32 %v8819_v53, %v8667_v11 }
 0x810   : > { %v4215_v12 = vadd.f32 %v4214_v16, %v4102_v10 }
 0x811   : > { %4635 = vst.msk [vmem:[%s8703_s22 + $0x70] sm:$0xff] %vm460_vm0, %v4603_v44 }
 0x812   : > { %v4328_v35 = vadd.f32 %v4327_v60, %v4215_v12  ;;  %v4111_v60 = vadd.f32 %v8819_v53, %v8647_v7 }
 0x814   : > { %v4538_v24 = vpop.f32.mrf.mxu0  ;;  %v4441_v21 = vadd.f32 %v4440_v18, %v4328_v35 }
 0x815   : > { %v4539_v41 = vadd.f32 %v4538_v24, %v4426_v32  ;;  %v4218_v24 = vadd.f32 %v4217_v26, %v4105_v25 }
 0x816   : > { %v4446_v44 = vpop.f32.mrf.mxu2 }
 0x817   : > { %v4604_v20 = vadd.f32 %v5520_v40, %v4539_v41  ;;  %4850 = vmatmul.msk.f32.gmra.mxu0 %vm460_vm0, %v3211_v6  ;;  %v4330_v45 = vpop.f32.mrf.mxu1  ;;  %v4220_v22 = vpop.f32.mrf.mxu3  ;;  %v5526_v40 = vld [vmem:[%s5875_s28 + $0xa0] sm:$0xff] }
 0x818   : > { %v4331_v36 = vadd.f32 %v4330_v45, %v4218_v24  ;;  %v5531_v24 = vld [vmem:[%s5875_s28 + $0xc8] sm:$0xff] }
 0x819   : > { %4636 = vst.msk [vmem:[%s8703_s22 + $0x78] sm:$0xff] %vm460_vm0, %v4604_v20 }
 0x81a   : > { %v4444_v49 = vadd.f32 %v4443_v62, %v4331_v36 }
 0x81c   : > { %v4541_v52 = vpop.f32.mrf.mxu0 }
 0x81d   : > { %v4542_v3 = vadd.f32 %v4541_v52, %v4429_v34  ;;  %v4221_v34 = vadd.f32 %v4220_v22, %v4108_v33 }
 0x81e   : > { %v4449_v63 = vpop.f32.mrf.mxu2 }
 0x81f   : > { %v4605_v43 = vadd.f32 %v5521_v39, %v4542_v3  ;;  %v4333_v38 = vpop.f32.mrf.mxu1  ;;  %v4223_v32 = vpop.f32.mrf.mxu3 }
 0x820   : > { %v4334_v3 = vadd.f32 %v4333_v38, %v4221_v34  ;;  %v4224_v2 = vadd.f32 %v4223_v32, %v4111_v60 }
 0x821   : > { %4637 = vst.msk [vmem:[%s8703_s22 + $0x80] sm:$0xff] %vm460_vm0, %v4605_v43 }
 0x822   : > { %v4447_v23 = vadd.f32 %v4446_v44, %v4334_v3  ;;  %v4120_v44 = vadd.f32 %v8819_v53, %v8673_v8 }
 0x824   : > { %v4544_v1 = vpop.f32.mrf.mxu0 }
 0x825   : > { %v4545_v55 = vadd.f32 %v4544_v1, %v4432_v56 }
 0x826   : > { %v4452_v56 = vpop.f32.mrf.mxu2 }
 0x827   : > { %v4606_v59 = vadd.f32 %v5522_v17, %v4545_v55  ;;  %v4336_v42 = vpop.f32.mrf.mxu1  ;;  %v4226_v16 = vpop.f32.mrf.mxu3  ;;  %v5528_v55 = vld [vmem:[%s5875_s28 + $0xb0] sm:$0xff]  ;;  %v4114_v17 = vadd.f32 %v8819_v53, %v8657_v50 }
 0x828   : > { %v4337_v1 = vadd.f32 %v4336_v42, %v4224_v2 }
 0x829   : > { %4638 = vst.msk [vmem:[%s8703_s22 + $0x88] sm:$0xff] %vm460_vm0, %v4606_v59  ;;  %v4227_v19 = vadd.f32 %v4226_v16, %v4114_v17  ;;  %v5532_v16 = vld [vmem:[%s5875_s28 + $0xd0] sm:$0xff] }
 0x82a   : > { %v4450_v7 = vadd.f32 %v4449_v63, %v4337_v1 }
 0x82c   : > { %v4547_v4 = vpop.f32.mrf.mxu0 }
 0x82d   : > { %v4548_v15 = vadd.f32 %v4547_v4, %v4435_v31 }
 0x82e   : > { %v4455_v31 = vpop.f32.mrf.mxu2 }
 0x82f   : > { %v4607_v61 = vadd.f32 %v5523_v0, %v4548_v15  ;;  %v4339_v43 = vpop.f32.mrf.mxu1  ;;  %v4229_v13 = vpop.f32.mrf.mxu3  ;;  %v5529_v15 = vld [vmem:[%s5875_s28 + $0xb8] sm:$0xff] }
 0x830   : > { %v4340_v62 = vadd.f32 %v4339_v43, %v4227_v19  ;;  %v4230_v0 = vadd.f32 %v4229_v13, %v4117_v48  ;;  %v4132_v19 = vadd.f32 %v8819_v53, %v8689_v30 }
 0x831   : > { %4639 = vst.msk [vmem:[%s8703_s22 + $0x90] sm:$0xff] %vm460_vm0, %v4607_v61 }
 0x832   : > { %v4453_v50 = vadd.f32 %v4452_v56, %v4340_v62  ;;  %v4129_v56 = vadd.f32 %v8819_v53, %v8685_v58 }
 0x834   : > { %v4550_v47 = vpop.f32.mrf.mxu0 }
 0x835   : > { %v4551_v28 = vadd.f32 %v4550_v47, %v4438_v14  ;;  %v5530_v47 = vld [vmem:[%s5875_s28 + $0xc0] sm:$0xff] }
 0x836   : > { %v4458_v38 = vpop.f32.mrf.mxu2 }
 0x837   : > { %v4608_v57 = vadd.f32 %v5525_v54, %v4551_v28  ;;  %v4342_v59 = vpop.f32.mrf.mxu1  ;;  %v4232_v4 = vpop.f32.mrf.mxu3 }
 0x838   : > { %v4343_v12 = vadd.f32 %v4342_v59, %v4230_v0  ;;  %v4233_v54 = vadd.f32 %v4232_v4, %v4120_v44  ;;  %v5534_v59 = vld [vmem:[%s5875_s28 + $0xe0] sm:$0xff]  ;;  %v4135_v0 = vadd.f32 %v8819_v53, %v8693_v46 }
 0x839   : > { %4640 = vst.msk [vmem:[%s8703_s22 + $0x98] sm:$0xff] %vm460_vm0, %v4608_v57 }
 0x83a   : > { %v4456_v11 = vadd.f32 %v4455_v31, %v4343_v12 }
 0x83c   : > { %v4553_v6 = vpop.f32.mrf.mxu0 }
 0x83d   : > { %v4554_v41 = vadd.f32 %v4553_v6, %v4441_v21 }
 0x83e   : > { %v4461_v42 = vpop.f32.mrf.mxu2 }
 0x83f   : > { %v4609_v20 = vadd.f32 %v5526_v40, %v4554_v41  ;;  %v4345_v61 = vpop.f32.mrf.mxu1  ;;  %v4235_v35 = vpop.f32.mrf.mxu3  ;;  %v4123_v41 = vadd.f32 %v8819_v53, %v8677_v5 }
 0x840   : > { %v4346_v21 = vadd.f32 %v4345_v61, %v4233_v54 }
 0x841   : > { %4641 = vst.msk [vmem:[%s8703_s22 + $0xa0] sm:$0xff] %vm460_vm0, %v4609_v20  ;;  %v4236_v40 = vadd.f32 %v4235_v35, %v4123_v41 }
 0x842   : > { %v4459_v8 = vadd.f32 %v4458_v38, %v4346_v21 }
 0x844   : > { %v4556_v27 = vpop.f32.mrf.mxu0 }
 0x845   : > { %v4557_v52 = vadd.f32 %v4556_v27, %v4444_v49  ;;  %v4126_v27 = vadd.f32 %v8819_v53, %v8681_v9 }
 0x846   : > { %v4464_v3 = vpop.f32.mrf.mxu2 }
 0x847   : > { %v4610_v39 = vadd.f32 %v5527_v51, %v4557_v52  ;;  %v4348_v25 = vpop.f32.mrf.mxu1  ;;  %v4238_v36 = vpop.f32.mrf.mxu3 }
 0x848   : > { %v4349_v63 = vadd.f32 %v4348_v25, %v4236_v40  ;;  %v4239_v52 = vadd.f32 %v4238_v36, %v4126_v27 }
 0x849   : > { %4642 = vst.msk [vmem:[%s8703_s22 + $0xa8] sm:$0xff] %vm460_vm0, %v4610_v39 }
 0x84a   : > { %v4462_v5 = vadd.f32 %v4461_v42, %v4349_v63 }
 0x84c   : > { %v4559_v18 = vpop.f32.mrf.mxu0 }
 0x84d   : > { %v4560_v26 = vadd.f32 %v4559_v18, %v4447_v23  ;;  %v5533_v23 = vld [vmem:[%s5875_s28 + $0xd8] sm:$0xff] }
 0x84f   : > { %v4611_v37 = vadd.f32 %v5528_v55, %v4560_v26  ;;  %v4351_v34 = vpop.f32.mrf.mxu1  ;;  %v4241_v51 = vpop.f32.mrf.mxu3 }
 0x850   : > { %v4352_v60 = vadd.f32 %v4351_v34, %v4239_v52  ;;  %v4242_v18 = vadd.f32 %v4241_v51, %v4129_v56  ;;  %v4467_v55 = vpop.f32.mrf.mxu2 }
 0x851   : > { %4643 = vst.msk [vmem:[%s8703_s22 + $0xb0] sm:$0xff] %vm460_vm0, %v4611_v37 }
 0x852   : > { %v4465_v9 = vadd.f32 %v4464_v3, %v4352_v60 }
 0x854   : > { %v4562_v45 = vpop.f32.mrf.mxu0 }
 0x855   : > { %v4563_v29 = vadd.f32 %v4562_v45, %v4450_v7 }
 0x857   : > { %v4612_v22 = vadd.f32 %v5529_v15, %v4563_v29  ;;  %v4354_v13 = vpop.f32.mrf.mxu1  ;;  %v4244_v37 = vpop.f32.mrf.mxu3  ;;  %v5535_v15 = vld [vmem:[%s5875_s28 + $0xe8] sm:$0xff] }
 0x858   : > { %v4355_v17 = vadd.f32 %v4354_v13, %v4242_v18  ;;  %v4245_v45 = vadd.f32 %v4244_v37, %v4132_v19  ;;  %v4470_v48 = vpop.f32.mrf.mxu2 }
 0x859   : > { %4644 = vst.msk [vmem:[%s8703_s22 + $0xb8] sm:$0xff] %vm460_vm0, %v4612_v22 }
 0x85a   : > { %v4468_v58 = vadd.f32 %v4467_v55, %v4355_v17 }
 0x85c   : > { %v4565_v10 = vpop.f32.mrf.mxu0 }
 0x85d   : > { %v4566_v14 = vadd.f32 %v4565_v10, %v4453_v50 }
 0x85f   : > { %v4613_v28 = vadd.f32 %v5530_v47, %v4566_v14  ;;  %v4357_v31 = vpop.f32.mrf.mxu1  ;;  %v4247_v50 = vpop.f32.mrf.mxu3  ;;  %v5536_v47 = vld [vmem:[%s5875_s28 + $0xf0] sm:$0xff] }
 0x860   : > { %v4358_v62 = vadd.f32 %v4357_v31, %v4245_v45  ;;  %v4248_v61 = vadd.f32 %v4247_v50, %v4135_v0  ;;  %v4473_v35 = vpop.f32.mrf.mxu2 }
 0x861   : > { %4645 = vst.msk [vmem:[%s8703_s22 + $0xc0] sm:$0xff] %vm460_vm0, %v4613_v28 }
 0x862   : > { %v4471_v30 = vadd.f32 %v4470_v48, %v4358_v62 }
 0x864   : > { %v4568_v57 = vpop.f32.mrf.mxu0 }
 0x865   : > { %v4569_v32 = vadd.f32 %v4568_v57, %v4456_v11  ;;  %v5537_v11 = vld [vmem:[%s5875_s28 + $0xf8] sm:$0xff] }
 0x867   : > { %v4614_v6 = vadd.f32 %v5531_v24, %v4569_v32  ;;  %v4360_v12 = vpop.f32.mrf.mxu1 }
 0x868   : > { %v4361_v38 = vadd.f32 %v4360_v12, %v4248_v61 }
 0x869   : > { %4646 = vst.msk [vmem:[%s8703_s22 + $0xc8] sm:$0xff] %vm460_vm0, %v4614_v6 }
 0x86a   : > { %v4474_v46 = vadd.f32 %v4473_v35, %v4361_v38 }
 0x86c   : > { %v4571_v20 = vpop.f32.mrf.mxu0 }
 0x86d   : > { %v4572_v33 = vadd.f32 %v4571_v20, %v4459_v8 }
 0x86f   : > { %v4615_v49 = vadd.f32 %v5532_v16, %v4572_v33 }
 0x871   : > { %4647 = vst.msk [vmem:[%s8703_s22 + $0xd0] sm:$0xff] %vm460_vm0, %v4615_v49 }
 0x874   : > { %v4574_v39 = vpop.f32.mrf.mxu0 }
 0x875   : > { %v4575_v43 = vadd.f32 %v4574_v39, %v4462_v5 }
 0x877   : > { %v4616_v2 = vadd.f32 %v5533_v23, %v4575_v43 }
 0x879   : > { %4648 = vst.msk [vmem:[%s8703_s22 + $0xd8] sm:$0xff] %vm460_vm0, %v4616_v2 }
 0x87c   : > { %v4577_v26 = vpop.f32.mrf.mxu0 }
 0x87d   : > { %v4578_v1 = vadd.f32 %v4577_v26, %v4465_v9 }
 0x87f   : > { %v4617_v7 = vadd.f32 %v5534_v59, %v4578_v1 }
 0x881   : > { %4649 = vst.msk [vmem:[%s8703_s22 + $0xe0] sm:$0xff] %vm460_vm0, %v4617_v7 }
 0x884   : > { %v4580_v29 = vpop.f32.mrf.mxu0 }
 0x885   : > { %v4581_v4 = vadd.f32 %v4580_v29, %v4468_v58 }
 0x887   : > { %v4618_v22 = vadd.f32 %v5535_v15, %v4581_v4 }
 0x889   : > { %4650 = vst.msk [vmem:[%s8703_s22 + $0xe8] sm:$0xff] %vm460_vm0, %v4618_v22 }
 0x88c   : > { %v4583_v10 = vpop.f32.mrf.mxu0 }
 0x88d   : > { %v4584_v14 = vadd.f32 %v4583_v10, %v4471_v30 }
 0x88f   : > { %v4619_v28 = vadd.f32 %v5536_v47, %v4584_v14 }
 0x891   : > { %4651 = vst.msk [vmem:[%s8703_s22 + $0xf0] sm:$0xff] %vm460_vm0, %v4619_v28 }
 0x894   : > { %v4586_v53 = vpop.f32.mrf.mxu0 }
 0x895   : > { %v4587_v44 = vadd.f32 %v4586_v53, %v4474_v46 }
 0x897   : > { %v4620_v54 = vadd.f32 %v5537_v11, %v4587_v44 }
 0x899   : > { %4652 = vst.msk [vmem:[%s8703_s22 + $0xf8] sm:$0xff] %vm460_vm0, %v4620_v54 }
 0x89a   : > { %5655 = shalt.err (!%p5652_p12)
}
 0x89b   : > { %s5707_s29 = smov 128   ;;  %s5708_s28 = smov 8  }
 0x89c   : > { %4900 = dma.vmem_to_hbm [thread:$0]  (%p5836_p3), %s4667_s23, 4096, %s4669_s6, %s4654_s17, %s5707_s29, %s5707_s29, %s5708_s28  }
 0x89d PF: > { %s4683_s22 = sand.u32 1, %s5686_s13   ;;  %p9099_p13 = scmp.ge.s32.totalorder %s5698_s16, 2 }
 0x89e   : > { %s4684_s11 = scalar_lea.sflag [#allocation5], %s4683_s22 }
 0x89f   : > { %p4914_p0 = pnand %p9099_p13, %p5799_p6 }
 0x8a1   : > { %p4915_p5 = pneg %p4914_p0 }
 0x8a3   : > { %5681 = dma.done.wait (%p4915_p5), %s4684_s11, 4096  }
 0x8a4   : > { %5683 = vsyncadd (%p4915_p5), %s4684_s11, 4294963200  ;;  %s9100_s26 = sld [smem:[#allocation13_spill]]  ;;  %p24_p7 = scmp.ge.s32.totalorder %s5826_s21, 4  }
 0x8a5   : > { %s9101_s15 = sld [smem:[#allocation14_spill]]  ;;  %s9102_s13 = smov %s5690_s14 }
 0x8a6   : > { %s9104_s16 = smov %s5826_s21  ;;  %26 = sbr.rel (!%p24_p7) target bundleno = 9 (0x9), region = 118 }
 0x8aa   : > { %s9103_s14 = smov %s9100_s26 }
 0x8ab   :  { %4690 = vsyncpa [#allocation4], 1 }
 0x8ac   :  { %4692 = vsyncpa [#allocation4 + $0x1], 1 }
 0x8ad   :  { %4693 = vsyncpa [#allocation7], 1 }
 0x8ae   :  { %4694 = vsyncpa [#allocation5], 1 }
 0x8af   :  { %4696 = vsyncpa [#allocation5 + $0x1], 1 }

</bundles_post_ra>
